<compile_context>
chip_gen: v7x
topology: tpu7x:2x2x1
jax: 0.10.0
libtpu: 0.0.40
codegen_flags: <defaults>
</compile_context>

<pallas_src>
import functools

import jax
import jax.numpy as jnp
from jax import lax
from jax.experimental import pallas as pl
from jax.experimental.pallas import tpu as pltpu


def _rup8(c):
    return ((c + 7) // 8) * 8


# ----------------------------------------------------------------------------
# Fused Pallas kernel: 5x (3x3 conv + folded BN + ReLU) + dual soft-argmax,
# one grid step = one block of B images.
# ----------------------------------------------------------------------------
def fused_head_kernel(x_ref, w_ref, ss_ref, aux_ref, o_ref, halo, patch,
                      *, H, W, B, base, cfg):
    """Whole Corner_Predictor_Lite head for a block of B images.

    x_ref   : (cin_p0, B*HW) input, channels-first, B images concatenated
                             along the lane axis (W fastest within an image).
    w_ref   : (L, 16, 144)   per-layer (Coutp, 9*Cinp) weights, zero padded.
    ss_ref  : (L, 16, 2)     folded-BN scale (col 0) / shift (col 1).
    aux_ref : (11, B*HW)     rows 0,1 = coord_x/img_sz, coord_y/img_sz (tiled
                             per image); rows 2..10 = per-tap border masks.
    o_ref   : (16, 128)      lane-dense output slab; rows 2b / 2b+1 hold
                             [x_tl, y_tl] / [x_br, y_br] for image b.
    halo    : (cmax, base + B*HW + 128) activation scratch; border columns
                             only need to be finite (masks zero their taps).
    patch   : (kmax, B*HW)   im2col scratch, 9 taps stacked along sublanes.
    """
    HW = H * W
    BHW = B * HW
    L = len(cfg)
    cmax = halo.shape[0]

    # Zero only the two border column ranges; redone every step (scratch is
    # per-core and uninitialised — do NOT gate this on program_id == 0).
    halo[0:cmax, 0:base] = jnp.zeros((cmax, base), jnp.float32)
    halo[0:cmax, base + BHW:base + BHW + 128] = jnp.zeros((cmax, 128),
                                                          jnp.float32)

    # Stage the input block (channels already zero-padded host-side, so the
    # padded sublane rows of the halo centre are clean zeros too).
    cin0 = x_ref.shape[0]
    halo[0:cin0, base:base + BHW] = x_ref[...]

    act = None
    for li, (cin_p, cout_p, relu) in enumerate(cfg):
        K = 9 * cin_p
        # im2col: 9 shifted taps -> patch rows [k*cin_p, (k+1)*cin_p).
        # Each tap mask zeroes both the SAME zero-padding positions and any
        # cross-image bleed caused by concatenating images along lanes.
        for k in range(9):
            ky, kx = divmod(k, 3)
            off = (ky - 1) * W + (kx - 1)
            tap = halo[0:cin_p, base + off:base + off + BHW]
            if k != 4:                              # centre tap needs no mask
                tap = tap * aux_ref[2 + k:3 + k, :]
            patch[k * cin_p:(k + 1) * cin_p, :] = tap

        # ONE K = 9*Cin matmul over all B images (RHS N = B*HW lanes), then
        # folded BN (+ ReLU).  f32 operands/accumulation keep 1e-4 accuracy.
        y = jnp.dot(w_ref[li, 0:cout_p, 0:K], patch[0:K, :],
                    preferred_element_type=jnp.float32)
        y = y * ss_ref[li, 0:cout_p, 0:1] + ss_ref[li, 0:cout_p, 1:2]
        if relu:
            y = jnp.maximum(y, 0.0)
        act = y
        if li + 1 < L:                              # stage next layer's input
            halo[0:cout_p, base:base + BHW] = act

    # Dual soft-argmax per image, numerator/denominator form (2 scalar divides
    # per image, exact division).  Coords are pre-divided by img_sz.
    cx = aux_ref[0:1, 0:HW]
    cy = aux_ref[1:2, 0:HW]
    for b in range(B):
        s = act[0:2, b * HW:(b + 1) * HW]                 # (2, HW): TL, BR
        m = jnp.max(s, axis=1, keepdims=True)
        e = jnp.exp(s - m)
        inv = 1.0 / jnp.sum(e, axis=1, keepdims=True)     # (2, 1), exact div
        ex = jnp.sum(e * cx, axis=1, keepdims=True) * inv  # (2, 1)
        ey = jnp.sum(e * cy, axis=1, keepdims=True) * inv  # (2, 1)
        # single merged (2,2) store: [[x_tl, y_tl], [x_br, y_br]]
        o_ref[2 * b:2 * b + 2, 0:2] = jnp.concatenate([ex, ey], axis=1)


# ----------------------------------------------------------------------------
# Wrapper: one pallas_call for the full head (return_dist=False path)
# ----------------------------------------------------------------------------
def _pick_batch_block(n):
    b = min(8, n)
    if n > 1:
        b = min(b, -(-n // 2))     # keep >= 2 grid steps for v7x megacore
    return max(b, 1)


def corner_predictor_lite_forward(x_nchw, w_all, ss_all, aux_hw, cfg,
                                  batch_block=None):
    N, Cin, H, W = x_nchw.shape
    HW = H * W
    assert W + 1 <= 128, "halo base assumes the 1-pixel halo fits in 128 lanes"
    base = 128
    cin_p0 = cfg[0][0]
    cmax = max(max(ci, co) for (ci, co, _) in cfg)
    kmax = 9 * max(ci for (ci, _, _) in cfg)

    B = batch_block if batch_block is not None else _pick_batch_block(N)
    steps = -(-N // B)
    n_pad = steps * B
    BHW = B * HW

    # NCHW -> (steps, cin_p0, B*HW): zero-pad batch & channels, concatenate
    # the B images of each step along the lane axis.  Wrapper-side layout
    # plumbing only; keeps every in-kernel access lane-dense / aligned.
    x = x_nchw.astype(jnp.float32).reshape(N, Cin, HW)
    x = jnp.pad(x, ((0, n_pad - N), (0, cin_p0 - Cin), (0, 0)))
    x = x.reshape(steps, B, cin_p0, HW).transpose(0, 2, 1, 3)
    x = x.reshape(steps, cin_p0, BHW)

    aux = jnp.tile(aux_hw, (1, B))                         # (11, B*HW)

    kern = functools.partial(fused_head_kernel, H=H, W=W, B=B, base=base,
                             cfg=tuple(cfg))
    out = pl.pallas_call(
        kern,
        out_shape=jax.ShapeDtypeStruct((steps, 16, 128), jnp.float32),
        grid=(steps,),
        in_specs=[
            pl.BlockSpec((None, cin_p0, BHW), lambda n: (n, 0, 0)),
            pl.BlockSpec(w_all.shape, lambda n: (0, 0, 0)),   # constant index:
            pl.BlockSpec(ss_all.shape, lambda n: (0, 0, 0)),  # fetched once
            pl.BlockSpec(aux.shape, lambda n: (0, 0)),
        ],
        out_specs=pl.BlockSpec((None, 16, 128), lambda n: (n, 0, 0)),
        scratch_shapes=[
            pltpu.VMEM((cmax, base + BHW + 128), jnp.float32),  # halo buffer
            pltpu.VMEM((kmax, BHW), jnp.float32),               # im2col patch
        ],
        compiler_params=pltpu.CompilerParams(
            dimension_semantics=("parallel",)),
    )(x, w_all, ss_all, aux)

    # (steps, 16, 128) -> (N, 4) = [x_tl, y_tl, x_br, y_br]; already / img_sz.
    res = out[:, :2 * B, :2].reshape(steps * B, 2, 2).reshape(steps * B, 4)
    return res[:N]


# ----------------------------------------------------------------------------
# Deterministic parameter construction (mirrors the PyTorch __init__ shapes)
# ----------------------------------------------------------------------------
def build_params(key, inplanes, channel, feat_sz, stride):
    cfg_ch = [
        (inplanes, channel, True),
        (channel, channel // 2, True),
        (channel // 2, channel // 4, True),
        (channel // 4, channel // 8, True),
        (channel // 8, 2, False),
    ]
    eps = 1e-5
    H = W = feat_sz
    HW = H * W
    img_sz = float(feat_sz * stride)

    cout_pmax = _rup8(max(co for (_, co, _) in cfg_ch))     # 16
    kmax = 9 * _rup8(max(ci for (ci, _, _) in cfg_ch))      # 144

    cfg = []           # per layer: (cin_p, cout_p, relu)  — static kernel cfg
    w_slabs, ss_slabs = [], []
    ref_layers = []    # reference: (w OIHW, scale, shift, relu)
    for (cin, cout, bn) in cfg_ch:
        key, kw, kb, kg, kbe, km, kv = jax.random.split(key, 7)
        w = jax.random.normal(kw, (cout, cin, 3, 3), jnp.float32) * 0.1
        b = jax.random.normal(kb, (cout,), jnp.float32) * 0.1
        if bn:
            gamma = 1.0 + 0.1 * jax.random.normal(kg, (cout,), jnp.float32)
            beta = 0.1 * jax.random.normal(kbe, (cout,), jnp.float32)
            mean = 0.1 * jax.random.normal(km, (cout,), jnp.float32)
            var = 1.0 + 0.1 * jnp.abs(jax.random.normal(kv, (cout,), jnp.float32))
            scale = gamma / jnp.sqrt(var + eps)
            shift = beta + (b - mean) * scale
        else:
            scale = jnp.ones((cout,), jnp.float32)
            shift = b
        ref_layers.append((w, scale, shift, bn))

        cin_p, cout_p = _rup8(cin), _rup8(cout)
        w_p = jnp.pad(w, ((0, cout_p - cout), (0, cin_p - cin), (0, 0), (0, 0)))
        # (Coutp,Cinp,3,3) -> (Coutp,3,3,Cinp) -> (Coutp, 9*Cinp); column index
        # = (ky*3 + kx)*Cinp + ci  — matches the im2col patch row layout.
        w_mat = jnp.transpose(w_p, (0, 2, 3, 1)).reshape(cout_p, 9 * cin_p)
        w_slabs.append(jnp.pad(w_mat, ((0, cout_pmax - cout_p),
                                       (0, kmax - 9 * cin_p))))
        ss = jnp.stack([jnp.pad(scale, (0, cout_p - cout)),
                        jnp.pad(shift, (0, cout_p - cout))], axis=1)
        ss_slabs.append(jnp.pad(ss, ((0, cout_pmax - cout_p), (0, 0))))
        cfg.append((cin_p, cout_p, bn))

    w_all = jnp.stack(w_slabs, axis=0)      # (5, 16, 144)
    ss_all = jnp.stack(ss_slabs, axis=0)    # (5, 16, 2)

    # coord_x / coord_y exactly as in the PyTorch __init__ (pre-divided by
    # img_sz) plus the 9 per-tap border masks (zero where a 3x3 tap would read
    # SAME zero-padding, or bleed into the neighbouring concatenated image).
    indice = (jnp.arange(feat_sz, dtype=jnp.float32) + 0.5) * stride
    coord_x = jnp.tile(indice, feat_sz)       # x varies fastest (i %  feat_sz)
    coord_y = jnp.repeat(indice, feat_sz)     # y = i // feat_sz
    col = jnp.arange(HW, dtype=jnp.int32) % W
    row = jnp.arange(HW, dtype=jnp.int32) // W
    ones = jnp.ones((HW,), jnp.bool_)
    mx = {-1: col != 0, 0: ones, 1: col != W - 1}
    my = {-1: row != 0, 0: ones, 1: row != H - 1}
    tap_masks = [(my[k // 3 - 1] & mx[k % 3 - 1]).astype(jnp.float32)
                 for k in range(9)]
    aux_hw = jnp.stack([coord_x / img_sz, coord_y / img_sz] + tap_masks, 0)

    return w_all, ss_all, aux_hw, cfg, ref_layers, coord_x, coord_y, img_sz


# ----------------------------------------------------------------------------
# Pure-JAX reference (same folded-BN math) for a correctness check
# ----------------------------------------------------------------------------
def reference_forward(x_nchw, ref_layers, coord_x, coord_y, img_sz):
    y = x_nchw.astype(jnp.float32)
    for (w, scale, shift, relu) in ref_layers:
        y = lax.conv_general_dilated(
            y, w, window_strides=(1, 1), padding="SAME",
            dimension_numbers=("NCHW", "OIHW", "NCHW"))
        y = y * scale[None, :, None, None] + shift[None, :, None, None]
        if relu:
            y = jnp.maximum(y, 0.0)
    N = y.shape[0]

    def soft_argmax(s_map):
        s = s_map.reshape(N, -1)
        p = jax.nn.softmax(s, axis=1)
        return (jnp.sum(coord_x[None, :] * p, axis=1),
                jnp.sum(coord_y[None, :] * p, axis=1))

    ex_tl, ey_tl = soft_argmax(y[:, 0])
    ex_br, ey_br = soft_argmax(y[:, 1])
    return jnp.stack([ex_tl, ey_tl, ex_br, ey_br], axis=1) / img_sz


# ----------------------------------------------------------------------------
if __name__ == "__main__":
    # Small, consistent shapes: inplanes=4, channel=16, feat_sz=16, stride=4
    inplanes, channel, feat_sz, stride = 4, 16, 16, 4
    N = 2

    key = jax.random.PRNGKey(0)
    key, kx = jax.random.split(key)
    x = jax.random.normal(kx, (N, inplanes, feat_sz, feat_sz), jnp.float32)

    (w_all, ss_all, aux_hw, cfg, ref_layers,
     coord_x, coord_y, img_sz) = build_params(key, inplanes, channel,
                                              feat_sz, stride)

    ref = reference_forward(x, ref_layers, coord_x, coord_y, img_sz)
    ref = jax.block_until_ready(ref)

    # TODO(synk): return_dist=True path (prob/score vector outputs) not implemented.
    # Default block choice (keeps 2 grid steps here -> B = 1 per step).
    out = corner_predictor_lite_forward(x, w_all, ss_all, aux_hw, cfg)
    out = jax.block_until_ready(out)
    assert out.shape == (N, 4)
    assert jnp.all(jnp.isfinite(out))
    assert jnp.allclose(out, ref, atol=1e-4, rtol=1e-4), (out, ref)

    # Also exercise the batched-lane path (both images in one grid step).
    out_b = corner_predictor_lite_forward(x, w_all, ss_all, aux_hw, cfg,
                                          batch_block=2)
    out_b = jax.block_until_ready(out_b)
    assert jnp.allclose(out_b, ref, atol=1e-4, rtol=1e-4), (out_b, ref)

    print("KERNEL_OK")
</pallas_src>

<mosaic_0001>
module attributes {stable_mosaic.version = 11 : i64} {
  func.func @fused_head_kernel(%arg0: i32, %arg1: memref<1x8x256xf32, #tpu.memory_space<vmem>>, %arg2: memref<5x16x144xf32, #tpu.memory_space<vmem>>, %arg3: memref<5x16x2xf32, #tpu.memory_space<vmem>>, %arg4: memref<11x256xf32, #tpu.memory_space<vmem>>, %arg5: memref<1x16x128xf32, #tpu.memory_space<vmem>>, %arg6: memref<16x512xf32, #tpu.memory_space<vmem>>, %arg7: memref<144x256xf32, #tpu.memory_space<vmem>>) attributes {dimension_semantics = [#tpu.dimension_semantics<parallel>], iteration_bounds = array<i64: 2>, scalar_prefetch = 0 : i64, scratch_operands = 2 : i64, tpu.core_type = #tpu.core_type<tc>, window_params = [{transform_indices = @transform_0, window_bounds = array<i64: 1, 8, 256>}, {pipeline_mode = #tpu.pipeline_mode<synchronous>, transform_indices = @transform_1, window_bounds = array<i64: 5, 16, 144>}, {pipeline_mode = #tpu.pipeline_mode<synchronous>, transform_indices = @transform_2, window_bounds = array<i64: 5, 16, 2>}, {pipeline_mode = #tpu.pipeline_mode<synchronous>, transform_indices = @transform_3, window_bounds = array<i64: 11, 256>}, {transform_indices = @transform_4, window_bounds = array<i64: 1, 16, 128>}]} {
    %cst = arith.constant 0.000000e+00 : f32
    %0 = vector.broadcast %cst : f32 to vector<16x128xf32>
    %c0 = arith.constant 0 : index
    %c0_0 = arith.constant 0 : index
    %1 = vector.load %arg6[%c0, %c0_0] : memref<16x512xf32, #tpu.memory_space<vmem>>, vector<16x128xf32>
    tpu.vector_store %arg6[%c0, %c0_0], %0 {strides = array<i32>} : memref<16x512xf32, #tpu.memory_space<vmem>>, vector<16x128xf32>,
    %cst_1 = arith.constant 0.000000e+00 : f32
    %2 = vector.broadcast %cst_1 : f32 to vector<16x128xf32>
    %c0_2 = arith.constant 0 : index
    %c384 = arith.constant 384 : index
    %3 = vector.load %arg6[%c0_2, %c384] : memref<16x512xf32, #tpu.memory_space<vmem>>, vector<16x128xf32>
    tpu.vector_store %arg6[%c0_2, %c384], %2 {strides = array<i32>} : memref<16x512xf32, #tpu.memory_space<vmem>>, vector<16x128xf32>,
    %c0_3 = arith.constant 0 : index
    %c0_4 = arith.constant 0 : index
    %c0_5 = arith.constant 0 : index
    %4 = vector.load %arg1[%c0_3, %c0_4, %c0_5] : memref<1x8x256xf32, #tpu.memory_space<vmem>>, vector<1x8x256xf32>
    %5 = vector.shape_cast %4 : vector<1x8x256xf32> to vector<8x256xf32>
    %c0_6 = arith.constant 0 : index
    %c128 = arith.constant 128 : index
    %6 = vector.load %arg6[%c0_6, %c128] : memref<16x512xf32, #tpu.memory_space<vmem>>, vector<8x256xf32>
    tpu.vector_store %arg6[%c0_6, %c128], %5 {strides = array<i32>} : memref<16x512xf32, #tpu.memory_space<vmem>>, vector<8x256xf32>,
    %c0_7 = arith.constant 0 : index
    %c111 = arith.constant 111 : index
    %7 = vector.load %arg6[%c0_7, %c111] : memref<16x512xf32, #tpu.memory_space<vmem>>, vector<8x256xf32>
    %c2 = arith.constant 2 : index
    %c0_8 = arith.constant 0 : index
    %8 = vector.load %arg4[%c2, %c0_8] : memref<11x256xf32, #tpu.memory_space<vmem>>, vector<1x256xf32>
    %9 = vector.broadcast %8 : vector<1x256xf32> to vector<8x256xf32>
    %10 = arith.mulf %7, %9 : vector<8x256xf32>
    %c0_9 = arith.constant 0 : index
    %c0_10 = arith.constant 0 : index
    %11 = vector.load %arg7[%c0_9, %c0_10] : memref<144x256xf32, #tpu.memory_space<vmem>>, vector<8x256xf32>
    tpu.vector_store %arg7[%c0_9, %c0_10], %10 {strides = array<i32>} : memref<144x256xf32, #tpu.memory_space<vmem>>, vector<8x256xf32>,
    %c0_11 = arith.constant 0 : index
    %c112 = arith.constant 112 : index
    %12 = vector.load %arg6[%c0_11, %c112] : memref<16x512xf32, #tpu.memory_space<vmem>>, vector<8x256xf32>
    %c3 = arith.constant 3 : index
    %c0_12 = arith.constant 0 : index
    %13 = vector.load %arg4[%c3, %c0_12] : memref<11x256xf32, #tpu.memory_space<vmem>>, vector<1x256xf32>
    %14 = vector.broadcast %13 : vector<1x256xf32> to vector<8x256xf32>
    %15 = arith.mulf %12, %14 : vector<8x256xf32>
    %c8 = arith.constant 8 : index
    %c0_13 = arith.constant 0 : index
    %16 = vector.load %arg7[%c8, %c0_13] : memref<144x256xf32, #tpu.memory_space<vmem>>, vector<8x256xf32>
    tpu.vector_store %arg7[%c8, %c0_13], %15 {strides = array<i32>} : memref<144x256xf32, #tpu.memory_space<vmem>>, vector<8x256xf32>,
    %c0_14 = arith.constant 0 : index
    %c113 = arith.constant 113 : index
    %17 = vector.load %arg6[%c0_14, %c113] : memref<16x512xf32, #tpu.memory_space<vmem>>, vector<8x256xf32>
    %c4 = arith.constant 4 : index
    %c0_15 = arith.constant 0 : index
    %18 = vector.load %arg4[%c4, %c0_15] : memref<11x256xf32, #tpu.memory_space<vmem>>, vector<1x256xf32>
    %19 = vector.broadcast %18 : vector<1x256xf32> to vector<8x256xf32>
    %20 = arith.mulf %17, %19 : vector<8x256xf32>
    %c16 = arith.constant 16 : index
    %c0_16 = arith.constant 0 : index
    %21 = vector.load %arg7[%c16, %c0_16] : memref<144x256xf32, #tpu.memory_space<vmem>>, vector<8x256xf32>
    tpu.vector_store %arg7[%c16, %c0_16], %20 {strides = array<i32>} : memref<144x256xf32, #tpu.memory_space<vmem>>, vector<8x256xf32>,
    %c0_17 = arith.constant 0 : index
    %c127 = arith.constant 127 : index
    %22 = vector.load %arg6[%c0_17, %c127] : memref<16x512xf32, #tpu.memory_space<vmem>>, vector<8x256xf32>
    %c5 = arith.constant 5 : index
    %c0_18 = arith.constant 0 : index
    %23 = vector.load %arg4[%c5, %c0_18] : memref<11x256xf32, #tpu.memory_space<vmem>>, vector<1x256xf32>
    %24 = vector.broadcast %23 : vector<1x256xf32> to vector<8x256xf32>
    %25 = arith.mulf %22, %24 : vector<8x256xf32>
    %c24 = arith.constant 24 : index
    %c0_19 = arith.constant 0 : index
    %26 = vector.load %arg7[%c24, %c0_19] : memref<144x256xf32, #tpu.memory_space<vmem>>, vector<8x256xf32>
    tpu.vector_store %arg7[%c24, %c0_19], %25 {strides = array<i32>} : memref<144x256xf32, #tpu.memory_space<vmem>>, vector<8x256xf32>,
    %c0_20 = arith.constant 0 : index
    %c128_21 = arith.constant 128 : index
    %27 = vector.load %arg6[%c0_20, %c128_21] : memref<16x512xf32, #tpu.memory_space<vmem>>, vector<8x256xf32>
    %c32 = arith.constant 32 : index
    %c0_22 = arith.constant 0 : index
    %28 = vector.load %arg7[%c32, %c0_22] : memref<144x256xf32, #tpu.memory_space<vmem>>, vector<8x256xf32>
    tpu.vector_store %arg7[%c32, %c0_22], %27 {strides = array<i32>} : memref<144x256xf32, #tpu.memory_space<vmem>>, vector<8x256xf32>,
    %c0_23 = arith.constant 0 : index
    %c129 = arith.constant 129 : index
    %29 = vector.load %arg6[%c0_23, %c129] : memref<16x512xf32, #tpu.memory_space<vmem>>, vector<8x256xf32>
    %c7 = arith.constant 7 : index
    %c0_24 = arith.constant 0 : index
    %30 = vector.load %arg4[%c7, %c0_24] : memref<11x256xf32, #tpu.memory_space<vmem>>, vector<1x256xf32>
    %31 = vector.broadcast %30 : vector<1x256xf32> to vector<8x256xf32>
    %32 = arith.mulf %29, %31 : vector<8x256xf32>
    %c40 = arith.constant 40 : index
    %c0_25 = arith.constant 0 : index
    %33 = vector.load %arg7[%c40, %c0_25] : memref<144x256xf32, #tpu.memory_space<vmem>>, vector<8x256xf32>
    tpu.vector_store %arg7[%c40, %c0_25], %32 {strides = array<i32>} : memref<144x256xf32, #tpu.memory_space<vmem>>, vector<8x256xf32>,
    %c0_26 = arith.constant 0 : index
    %c143 = arith.constant 143 : index
    %34 = vector.load %arg6[%c0_26, %c143] : memref<16x512xf32, #tpu.memory_space<vmem>>, vector<8x256xf32>
    %c8_27 = arith.constant 8 : index
    %c0_28 = arith.constant 0 : index
    %35 = vector.load %arg4[%c8_27, %c0_28] : memref<11x256xf32, #tpu.memory_space<vmem>>, vector<1x256xf32>
    %36 = vector.broadcast %35 : vector<1x256xf32> to vector<8x256xf32>
    %37 = arith.mulf %34, %36 : vector<8x256xf32>
    %c48 = arith.constant 48 : index
    %c0_29 = arith.constant 0 : index
    %38 = vector.load %arg7[%c48, %c0_29] : memref<144x256xf32, #tpu.memory_space<vmem>>, vector<8x256xf32>
    tpu.vector_store %arg7[%c48, %c0_29], %37 {strides = array<i32>} : memref<144x256xf32, #tpu.memory_space<vmem>>, vector<8x256xf32>,
    %c0_30 = arith.constant 0 : index
    %c144 = arith.constant 144 : index
    %39 = vector.load %arg6[%c0_30, %c144] : memref<16x512xf32, #tpu.memory_space<vmem>>, vector<8x256xf32>
    %c9 = arith.constant 9 : index
    %c0_31 = arith.constant 0 : index
    %40 = vector.load %arg4[%c9, %c0_31] : memref<11x256xf32, #tpu.memory_space<vmem>>, vector<1x256xf32>
    %41 = vector.broadcast %40 : vector<1x256xf32> to vector<8x256xf32>
    %42 = arith.mulf %39, %41 : vector<8x256xf32>
    %c56 = arith.constant 56 : index
    %c0_32 = arith.constant 0 : index
    %43 = vector.load %arg7[%c56, %c0_32] : memref<144x256xf32, #tpu.memory_space<vmem>>, vector<8x256xf32>
    tpu.vector_store %arg7[%c56, %c0_32], %42 {strides = array<i32>} : memref<144x256xf32, #tpu.memory_space<vmem>>, vector<8x256xf32>,
    %c0_33 = arith.constant 0 : index
    %c145 = arith.constant 145 : index
    %44 = vector.load %arg6[%c0_33, %c145] : memref<16x512xf32, #tpu.memory_space<vmem>>, vector<8x256xf32>
    %c10 = arith.constant 10 : index
    %c0_34 = arith.constant 0 : index
    %45 = vector.load %arg4[%c10, %c0_34] : memref<11x256xf32, #tpu.memory_space<vmem>>, vector<1x256xf32>
    %46 = vector.broadcast %45 : vector<1x256xf32> to vector<8x256xf32>
    %47 = arith.mulf %44, %46 : vector<8x256xf32>
    %c64 = arith.constant 64 : index
    %c0_35 = arith.constant 0 : index
    %48 = vector.load %arg7[%c64, %c0_35] : memref<144x256xf32, #tpu.memory_space<vmem>>, vector<8x256xf32>
    tpu.vector_store %arg7[%c64, %c0_35], %47 {strides = array<i32>} : memref<144x256xf32, #tpu.memory_space<vmem>>, vector<8x256xf32>,
    %c0_36 = arith.constant 0 : index
    %c0_37 = arith.constant 0 : index
    %c0_38 = arith.constant 0 : index
    %49 = vector.load %arg2[%c0_36, %c0_37, %c0_38] : memref<5x16x144xf32, #tpu.memory_space<vmem>>, vector<1x16x72xf32>
    %50 = vector.shape_cast %49 : vector<1x16x72xf32> to vector<16x72xf32>
    %c0_39 = arith.constant 0 : index
    %c0_40 = arith.constant 0 : index
    %51 = vector.load %arg7[%c0_39, %c0_40] : memref<144x256xf32, #tpu.memory_space<vmem>>, vector<72x256xf32>
    %cst_41 = arith.constant dense<0.000000e+00> : vector<16x256xf32>
    %52 = tpu.matmul %50, %51, %cst_41 {dimension_numbers = #tpu.dot_dimension_numbers<[1], [0], [0], [1], [0, 0, 1, 1], [], []>} : vector<16x72xf32>, vector<72x256xf32>, vector<16x256xf32> -> vector<16x256xf32>
    %c0_42 = arith.constant 0 : index
    %c0_43 = arith.constant 0 : index
    %c0_44 = arith.constant 0 : index
    %53 = vector.load %arg3[%c0_42, %c0_43, %c0_44] : memref<5x16x2xf32, #tpu.memory_space<vmem>>, vector<1x16x1xf32>
    %54 = vector.shape_cast %53 : vector<1x16x1xf32> to vector<16x1xf32>
    %55 = vector.broadcast %54 : vector<16x1xf32> to vector<16x256xf32>
    %56 = arith.mulf %52, %55 : vector<16x256xf32>
    %c0_45 = arith.constant 0 : index
    %c0_46 = arith.constant 0 : index
    %c1 = arith.constant 1 : index
    %57 = vector.load %arg3[%c0_45, %c0_46, %c1] : memref<5x16x2xf32, #tpu.memory_space<vmem>>, vector<1x16x1xf32>
    %58 = vector.shape_cast %57 : vector<1x16x1xf32> to vector<16x1xf32>
    %59 = vector.broadcast %58 : vector<16x1xf32> to vector<16x256xf32>
    %60 = arith.addf %56, %59 : vector<16x256xf32>
    %cst_47 = arith.constant 0.000000e+00 : f32
    %61 = vector.broadcast %cst_47 : f32 to vector<16x256xf32>
    %62 = arith.maximumf %60, %61 : vector<16x256xf32>
    %c0_48 = arith.constant 0 : index
    %c128_49 = arith.constant 128 : index
    %63 = vector.load %arg6[%c0_48, %c128_49] : memref<16x512xf32, #tpu.memory_space<vmem>>, vector<16x256xf32>
    tpu.vector_store %arg6[%c0_48, %c128_49], %62 {strides = array<i32>} : memref<16x512xf32, #tpu.memory_space<vmem>>, vector<16x256xf32>,
    %c0_50 = arith.constant 0 : index
    %c111_51 = arith.constant 111 : index
    %64 = vector.load %arg6[%c0_50, %c111_51] : memref<16x512xf32, #tpu.memory_space<vmem>>, vector<16x256xf32>
    %c2_52 = arith.constant 2 : index
    %c0_53 = arith.constant 0 : index
    %65 = vector.load %arg4[%c2_52, %c0_53] : memref<11x256xf32, #tpu.memory_space<vmem>>, vector<1x256xf32>
    %66 = vector.broadcast %65 : vector<1x256xf32> to vector<16x256xf32>
    %67 = arith.mulf %64, %66 : vector<16x256xf32>
    %c0_54 = arith.constant 0 : index
    %c0_55 = arith.constant 0 : index
    %68 = vector.load %arg7[%c0_54, %c0_55] : memref<144x256xf32, #tpu.memory_space<vmem>>, vector<16x256xf32>
    tpu.vector_store %arg7[%c0_54, %c0_55], %67 {strides = array<i32>} : memref<144x256xf32, #tpu.memory_space<vmem>>, vector<16x256xf32>,
    %c0_56 = arith.constant 0 : index
    %c112_57 = arith.constant 112 : index
    %69 = vector.load %arg6[%c0_56, %c112_57] : memref<16x512xf32, #tpu.memory_space<vmem>>, vector<16x256xf32>
    %c3_58 = arith.constant 3 : index
    %c0_59 = arith.constant 0 : index
    %70 = vector.load %arg4[%c3_58, %c0_59] : memref<11x256xf32, #tpu.memory_space<vmem>>, vector<1x256xf32>
    %71 = vector.broadcast %70 : vector<1x256xf32> to vector<16x256xf32>
    %72 = arith.mulf %69, %71 : vector<16x256xf32>
    %c16_60 = arith.constant 16 : index
    %c0_61 = arith.constant 0 : index
    %73 = vector.load %arg7[%c16_60, %c0_61] : memref<144x256xf32, #tpu.memory_space<vmem>>, vector<16x256xf32>
    tpu.vector_store %arg7[%c16_60, %c0_61], %72 {strides = array<i32>} : memref<144x256xf32, #tpu.memory_space<vmem>>, vector<16x256xf32>,
    %c0_62 = arith.constant 0 : index
    %c113_63 = arith.constant 113 : index
    %74 = vector.load %arg6[%c0_62, %c113_63] : memref<16x512xf32, #tpu.memory_space<vmem>>, vector<16x256xf32>
    %c4_64 = arith.constant 4 : index
    %c0_65 = arith.constant 0 : index
    %75 = vector.load %arg4[%c4_64, %c0_65] : memref<11x256xf32, #tpu.memory_space<vmem>>, vector<1x256xf32>
    %76 = vector.broadcast %75 : vector<1x256xf32> to vector<16x256xf32>
    %77 = arith.mulf %74, %76 : vector<16x256xf32>
    %c32_66 = arith.constant 32 : index
    %c0_67 = arith.constant 0 : index
    %78 = vector.load %arg7[%c32_66, %c0_67] : memref<144x256xf32, #tpu.memory_space<vmem>>, vector<16x256xf32>
    tpu.vector_store %arg7[%c32_66, %c0_67], %77 {strides = array<i32>} : memref<144x256xf32, #tpu.memory_space<vmem>>, vector<16x256xf32>,
    %c0_68 = arith.constant 0 : index
    %c127_69 = arith.constant 127 : index
    %79 = vector.load %arg6[%c0_68, %c127_69] : memref<16x512xf32, #tpu.memory_space<vmem>>, vector<16x256xf32>
    %c5_70 = arith.constant 5 : index
    %c0_71 = arith.constant 0 : index
    %80 = vector.load %arg4[%c5_70, %c0_71] : memref<11x256xf32, #tpu.memory_space<vmem>>, vector<1x256xf32>
    %81 = vector.broadcast %80 : vector<1x256xf32> to vector<16x256xf32>
    %82 = arith.mulf %79, %81 : vector<16x256xf32>
    %c48_72 = arith.constant 48 : index
    %c0_73 = arith.constant 0 : index
    %83 = vector.load %arg7[%c48_72, %c0_73] : memref<144x256xf32, #tpu.memory_space<vmem>>, vector<16x256xf32>
    tpu.vector_store %arg7[%c48_72, %c0_73], %82 {strides = array<i32>} : memref<144x256xf32, #tpu.memory_space<vmem>>, vector<16x256xf32>,
    %c0_74 = arith.constant 0 : index
    %c128_75 = arith.constant 128 : index
    %84 = vector.load %arg6[%c0_74, %c128_75] : memref<16x512xf32, #tpu.memory_space<vmem>>, vector<16x256xf32>
    %c64_76 = arith.constant 64 : index
    %c0_77 = arith.constant 0 : index
    %85 = vector.load %arg7[%c64_76, %c0_77] : memref<144x256xf32, #tpu.memory_space<vmem>>, vector<16x256xf32>
    tpu.vector_store %arg7[%c64_76, %c0_77], %84 {strides = array<i32>} : memref<144x256xf32, #tpu.memory_space<vmem>>, vector<16x256xf32>,
    %c0_78 = arith.constant 0 : index
    %c129_79 = arith.constant 129 : index
    %86 = vector.load %arg6[%c0_78, %c129_79] : memref<16x512xf32, #tpu.memory_space<vmem>>, vector<16x256xf32>
    %c7_80 = arith.constant 7 : index
    %c0_81 = arith.constant 0 : index
    %87 = vector.load %arg4[%c7_80, %c0_81] : memref<11x256xf32, #tpu.memory_space<vmem>>, vector<1x256xf32>
    %88 = vector.broadcast %87 : vector<1x256xf32> to vector<16x256xf32>
    %89 = arith.mulf %86, %88 : vector<16x256xf32>
    %c80 = arith.constant 80 : index
    %c0_82 = arith.constant 0 : index
    %90 = vector.load %arg7[%c80, %c0_82] : memref<144x256xf32, #tpu.memory_space<vmem>>, vector<16x256xf32>
    tpu.vector_store %arg7[%c80, %c0_82], %89 {strides = array<i32>} : memref<144x256xf32, #tpu.memory_space<vmem>>, vector<16x256xf32>,
    %c0_83 = arith.constant 0 : index
    %c143_84 = arith.constant 143 : index
    %91 = vector.load %arg6[%c0_83, %c143_84] : memref<16x512xf32, #tpu.memory_space<vmem>>, vector<16x256xf32>
    %c8_85 = arith.constant 8 : index
    %c0_86 = arith.constant 0 : index
    %92 = vector.load %arg4[%c8_85, %c0_86] : memref<11x256xf32, #tpu.memory_space<vmem>>, vector<1x256xf32>
    %93 = vector.broadcast %92 : vector<1x256xf32> to vector<16x256xf32>
    %94 = arith.mulf %91, %93 : vector<16x256xf32>
    %c96 = arith.constant 96 : index
    %c0_87 = arith.constant 0 : index
    %95 = vector.load %arg7[%c96, %c0_87] : memref<144x256xf32, #tpu.memory_space<vmem>>, vector<16x256xf32>
    tpu.vector_store %arg7[%c96, %c0_87], %94 {strides = array<i32>} : memref<144x256xf32, #tpu.memory_space<vmem>>, vector<16x256xf32>,
    %c0_88 = arith.constant 0 : index
    %c144_89 = arith.constant 144 : index
    %96 = vector.load %arg6[%c0_88, %c144_89] : memref<16x512xf32, #tpu.memory_space<vmem>>, vector<16x256xf32>
    %c9_90 = arith.constant 9 : index
    %c0_91 = arith.constant 0 : index
    %97 = vector.load %arg4[%c9_90, %c0_91] : memref<11x256xf32, #tpu.memory_space<vmem>>, vector<1x256xf32>
    %98 = vector.broadcast %97 : vector<1x256xf32> to vector<16x256xf32>
    %99 = arith.mulf %96, %98 : vector<16x256xf32>
    %c112_92 = arith.constant 112 : index
    %c0_93 = arith.constant 0 : index
    %100 = vector.load %arg7[%c112_92, %c0_93] : memref<144x256xf32, #tpu.memory_space<vmem>>, vector<16x256xf32>
    tpu.vector_store %arg7[%c112_92, %c0_93], %99 {strides = array<i32>} : memref<144x256xf32, #tpu.memory_space<vmem>>, vector<16x256xf32>,
    %c0_94 = arith.constant 0 : index
    %c145_95 = arith.constant 145 : index
    %101 = vector.load %arg6[%c0_94, %c145_95] : memref<16x512xf32, #tpu.memory_space<vmem>>, vector<16x256xf32>
    %c10_96 = arith.constant 10 : index
    %c0_97 = arith.constant 0 : index
    %102 = vector.load %arg4[%c10_96, %c0_97] : memref<11x256xf32, #tpu.memory_space<vmem>>, vector<1x256xf32>
    %103 = vector.broadcast %102 : vector<1x256xf32> to vector<16x256xf32>
    %104 = arith.mulf %101, %103 : vector<16x256xf32>
    %c128_98 = arith.constant 128 : index
    %c0_99 = arith.constant 0 : index
    %105 = vector.load %arg7[%c128_98, %c0_99] : memref<144x256xf32, #tpu.memory_space<vmem>>, vector<16x256xf32>
    tpu.vector_store %arg7[%c128_98, %c0_99], %104 {strides = array<i32>} : memref<144x256xf32, #tpu.memory_space<vmem>>, vector<16x256xf32>,
    %c1_100 = arith.constant 1 : index
    %c0_101 = arith.constant 0 : index
    %c0_102 = arith.constant 0 : index
    %106 = vector.load %arg2[%c1_100, %c0_101, %c0_102] : memref<5x16x144xf32, #tpu.memory_space<vmem>>, vector<1x8x144xf32>
    %107 = vector.shape_cast %106 : vector<1x8x144xf32> to vector<8x144xf32>
    %c0_103 = arith.constant 0 : index
    %c0_104 = arith.constant 0 : index
    %108 = vector.load %arg7[%c0_103, %c0_104] : memref<144x256xf32, #tpu.memory_space<vmem>>, vector<144x256xf32>
    %cst_105 = arith.constant dense<0.000000e+00> : vector<8x256xf32>
    %109 = tpu.matmul %107, %108, %cst_105 {dimension_numbers = #tpu.dot_dimension_numbers<[1], [0], [0], [1], [0, 0, 1, 1], [], []>} : vector<8x144xf32>, vector<144x256xf32>, vector<8x256xf32> -> vector<8x256xf32>
    %c1_106 = arith.constant 1 : index
    %c0_107 = arith.constant 0 : index
    %c0_108 = arith.constant 0 : index
    %110 = vector.load %arg3[%c1_106, %c0_107, %c0_108] : memref<5x16x2xf32, #tpu.memory_space<vmem>>, vector<1x8x1xf32>
    %111 = vector.shape_cast %110 : vector<1x8x1xf32> to vector<8x1xf32>
    %112 = vector.broadcast %111 : vector<8x1xf32> to vector<8x256xf32>
    %113 = arith.mulf %109, %112 : vector<8x256xf32>
    %c1_109 = arith.constant 1 : index
    %c0_110 = arith.constant 0 : index
    %c1_111 = arith.constant 1 : index
    %114 = vector.load %arg3[%c1_109, %c0_110, %c1_111] : memref<5x16x2xf32, #tpu.memory_space<vmem>>, vector<1x8x1xf32>
    %115 = vector.shape_cast %114 : vector<1x8x1xf32> to vector<8x1xf32>
    %116 = vector.broadcast %115 : vector<8x1xf32> to vector<8x256xf32>
    %117 = arith.addf %113, %116 : vector<8x256xf32>
    %cst_112 = arith.constant 0.000000e+00 : f32
    %118 = vector.broadcast %cst_112 : f32 to vector<8x256xf32>
    %119 = arith.maximumf %117, %118 : vector<8x256xf32>
    %c0_113 = arith.constant 0 : index
    %c128_114 = arith.constant 128 : index
    %120 = vector.load %arg6[%c0_113, %c128_114] : memref<16x512xf32, #tpu.memory_space<vmem>>, vector<8x256xf32>
    tpu.vector_store %arg6[%c0_113, %c128_114], %119 {strides = array<i32>} : memref<16x512xf32, #tpu.memory_space<vmem>>, vector<8x256xf32>,
    %c0_115 = arith.constant 0 : index
    %c111_116 = arith.constant 111 : index
    %121 = vector.load %arg6[%c0_115, %c111_116] : memref<16x512xf32, #tpu.memory_space<vmem>>, vector<8x256xf32>
    %c2_117 = arith.constant 2 : index
    %c0_118 = arith.constant 0 : index
    %122 = vector.load %arg4[%c2_117, %c0_118] : memref<11x256xf32, #tpu.memory_space<vmem>>, vector<1x256xf32>
    %123 = vector.broadcast %122 : vector<1x256xf32> to vector<8x256xf32>
    %124 = arith.mulf %121, %123 : vector<8x256xf32>
    %c0_119 = arith.constant 0 : index
    %c0_120 = arith.constant 0 : index
    %125 = vector.load %arg7[%c0_119, %c0_120] : memref<144x256xf32, #tpu.memory_space<vmem>>, vector<8x256xf32>
    tpu.vector_store %arg7[%c0_119, %c0_120], %124 {strides = array<i32>} : memref<144x256xf32, #tpu.memory_space<vmem>>, vector<8x256xf32>,
    %c0_121 = arith.constant 0 : index
    %c112_122 = arith.constant 112 : index
    %126 = vector.load %arg6[%c0_121, %c112_122] : memref<16x512xf32, #tpu.memory_space<vmem>>, vector<8x256xf32>
    %c3_123 = arith.constant 3 : index
    %c0_124 = arith.constant 0 : index
    %127 = vector.load %arg4[%c3_123, %c0_124] : memref<11x256xf32, #tpu.memory_space<vmem>>, vector<1x256xf32>
    %128 = vector.broadcast %127 : vector<1x256xf32> to vector<8x256xf32>
    %129 = arith.mulf %126, %128 : vector<8x256xf32>
    %c8_125 = arith.constant 8 : index
    %c0_126 = arith.constant 0 : index
    %130 = vector.load %arg7[%c8_125, %c0_126] : memref<144x256xf32, #tpu.memory_space<vmem>>, vector<8x256xf32>
    tpu.vector_store %arg7[%c8_125, %c0_126], %129 {strides = array<i32>} : memref<144x256xf32, #tpu.memory_space<vmem>>, vector<8x256xf32>,
    %c0_127 = arith.constant 0 : index
    %c113_128 = arith.constant 113 : index
    %131 = vector.load %arg6[%c0_127, %c113_128] : memref<16x512xf32, #tpu.memory_space<vmem>>, vector<8x256xf32>
    %c4_129 = arith.constant 4 : index
    %c0_130 = arith.constant 0 : index
    %132 = vector.load %arg4[%c4_129, %c0_130] : memref<11x256xf32, #tpu.memory_space<vmem>>, vector<1x256xf32>
    %133 = vector.broadcast %132 : vector<1x256xf32> to vector<8x256xf32>
    %134 = arith.mulf %131, %133 : vector<8x256xf32>
    %c16_131 = arith.constant 16 : index
    %c0_132 = arith.constant 0 : index
    %135 = vector.load %arg7[%c16_131, %c0_132] : memref<144x256xf32, #tpu.memory_space<vmem>>, vector<8x256xf32>
    tpu.vector_store %arg7[%c16_131, %c0_132], %134 {strides = array<i32>} : memref<144x256xf32, #tpu.memory_space<vmem>>, vector<8x256xf32>,
    %c0_133 = arith.constant 0 : index
    %c127_134 = arith.constant 127 : index
    %136 = vector.load %arg6[%c0_133, %c127_134] : memref<16x512xf32, #tpu.memory_space<vmem>>, vector<8x256xf32>
    %c5_135 = arith.constant 5 : index
    %c0_136 = arith.constant 0 : index
    %137 = vector.load %arg4[%c5_135, %c0_136] : memref<11x256xf32, #tpu.memory_space<vmem>>, vector<1x256xf32>
    %138 = vector.broadcast %137 : vector<1x256xf32> to vector<8x256xf32>
    %139 = arith.mulf %136, %138 : vector<8x256xf32>
    %c24_137 = arith.constant 24 : index
    %c0_138 = arith.constant 0 : index
    %140 = vector.load %arg7[%c24_137, %c0_138] : memref<144x256xf32, #tpu.memory_space<vmem>>, vector<8x256xf32>
    tpu.vector_store %arg7[%c24_137, %c0_138], %139 {strides = array<i32>} : memref<144x256xf32, #tpu.memory_space<vmem>>, vector<8x256xf32>,
    %c0_139 = arith.constant 0 : index
    %c128_140 = arith.constant 128 : index
    %141 = vector.load %arg6[%c0_139, %c128_140] : memref<16x512xf32, #tpu.memory_space<vmem>>, vector<8x256xf32>
    %c32_141 = arith.constant 32 : index
    %c0_142 = arith.constant 0 : index
    %142 = vector.load %arg7[%c32_141, %c0_142] : memref<144x256xf32, #tpu.memory_space<vmem>>, vector<8x256xf32>
    tpu.vector_store %arg7[%c32_141, %c0_142], %141 {strides = array<i32>} : memref<144x256xf32, #tpu.memory_space<vmem>>, vector<8x256xf32>,
    %c0_143 = arith.constant 0 : index
    %c129_144 = arith.constant 129 : index
    %143 = vector.load %arg6[%c0_143, %c129_144] : memref<16x512xf32, #tpu.memory_space<vmem>>, vector<8x256xf32>
    %c7_145 = arith.constant 7 : index
    %c0_146 = arith.constant 0 : index
    %144 = vector.load %arg4[%c7_145, %c0_146] : memref<11x256xf32, #tpu.memory_space<vmem>>, vector<1x256xf32>
    %145 = vector.broadcast %144 : vector<1x256xf32> to vector<8x256xf32>
    %146 = arith.mulf %143, %145 : vector<8x256xf32>
    %c40_147 = arith.constant 40 : index
    %c0_148 = arith.constant 0 : index
    %147 = vector.load %arg7[%c40_147, %c0_148] : memref<144x256xf32, #tpu.memory_space<vmem>>, vector<8x256xf32>
    tpu.vector_store %arg7[%c40_147, %c0_148], %146 {strides = array<i32>} : memref<144x256xf32, #tpu.memory_space<vmem>>, vector<8x256xf32>,
    %c0_149 = arith.constant 0 : index
    %c143_150 = arith.constant 143 : index
    %148 = vector.load %arg6[%c0_149, %c143_150] : memref<16x512xf32, #tpu.memory_space<vmem>>, vector<8x256xf32>
    %c8_151 = arith.constant 8 : index
    %c0_152 = arith.constant 0 : index
    %149 = vector.load %arg4[%c8_151, %c0_152] : memref<11x256xf32, #tpu.memory_space<vmem>>, vector<1x256xf32>
    %150 = vector.broadcast %149 : vector<1x256xf32> to vector<8x256xf32>
    %151 = arith.mulf %148, %150 : vector<8x256xf32>
    %c48_153 = arith.constant 48 : index
    %c0_154 = arith.constant 0 : index
    %152 = vector.load %arg7[%c48_153, %c0_154] : memref<144x256xf32, #tpu.memory_space<vmem>>, vector<8x256xf32>
    tpu.vector_store %arg7[%c48_153, %c0_154], %151 {strides = array<i32>} : memref<144x256xf32, #tpu.memory_space<vmem>>, vector<8x256xf32>,
    %c0_155 = arith.constant 0 : index
    %c144_156 = arith.constant 144 : index
    %153 = vector.load %arg6[%c0_155, %c144_156] : memref<16x512xf32, #tpu.memory_space<vmem>>, vector<8x256xf32>
    %c9_157 = arith.constant 9 : index
    %c0_158 = arith.constant 0 : index
    %154 = vector.load %arg4[%c9_157, %c0_158] : memref<11x256xf32, #tpu.memory_space<vmem>>, vector<1x256xf32>
    %155 = vector.broadcast %154 : vector<1x256xf32> to vector<8x256xf32>
    %156 = arith.mulf %153, %155 : vector<8x256xf32>
    %c56_159 = arith.constant 56 : index
    %c0_160 = arith.constant 0 : index
    %157 = vector.load %arg7[%c56_159, %c0_160] : memref<144x256xf32, #tpu.memory_space<vmem>>, vector<8x256xf32>
    tpu.vector_store %arg7[%c56_159, %c0_160], %156 {strides = array<i32>} : memref<144x256xf32, #tpu.memory_space<vmem>>, vector<8x256xf32>,
    %c0_161 = arith.constant 0 : index
    %c145_162 = arith.constant 145 : index
    %158 = vector.load %arg6[%c0_161, %c145_162] : memref<16x512xf32, #tpu.memory_space<vmem>>, vector<8x256xf32>
    %c10_163 = arith.constant 10 : index
    %c0_164 = arith.constant 0 : index
    %159 = vector.load %arg4[%c10_163, %c0_164] : memref<11x256xf32, #tpu.memory_space<vmem>>, vector<1x256xf32>
    %160 = vector.broadcast %159 : vector<1x256xf32> to vector<8x256xf32>
    %161 = arith.mulf %158, %160 : vector<8x256xf32>
    %c64_165 = arith.constant 64 : index
    %c0_166 = arith.constant 0 : index
    %162 = vector.load %arg7[%c64_165, %c0_166] : memref<144x256xf32, #tpu.memory_space<vmem>>, vector<8x256xf32>
    tpu.vector_store %arg7[%c64_165, %c0_166], %161 {strides = array<i32>} : memref<144x256xf32, #tpu.memory_space<vmem>>, vector<8x256xf32>,
    %c2_167 = arith.constant 2 : index
    %c0_168 = arith.constant 0 : index
    %c0_169 = arith.constant 0 : index
    %163 = vector.load %arg2[%c2_167, %c0_168, %c0_169] : memref<5x16x144xf32, #tpu.memory_space<vmem>>, vector<1x8x72xf32>
    %164 = vector.shape_cast %163 : vector<1x8x72xf32> to vector<8x72xf32>
    %c0_170 = arith.constant 0 : index
    %c0_171 = arith.constant 0 : index
    %165 = vector.load %arg7[%c0_170, %c0_171] : memref<144x256xf32, #tpu.memory_space<vmem>>, vector<72x256xf32>
    %cst_172 = arith.constant dense<0.000000e+00> : vector<8x256xf32>
    %166 = tpu.matmul %164, %165, %cst_172 {dimension_numbers = #tpu.dot_dimension_numbers<[1], [0], [0], [1], [0, 0, 1, 1], [], []>} : vector<8x72xf32>, vector<72x256xf32>, vector<8x256xf32> -> vector<8x256xf32>
    %c2_173 = arith.constant 2 : index
    %c0_174 = arith.constant 0 : index
    %c0_175 = arith.constant 0 : index
    %167 = vector.load %arg3[%c2_173, %c0_174, %c0_175] : memref<5x16x2xf32, #tpu.memory_space<vmem>>, vector<1x8x1xf32>
    %168 = vector.shape_cast %167 : vector<1x8x1xf32> to vector<8x1xf32>
    %169 = vector.broadcast %168 : vector<8x1xf32> to vector<8x256xf32>
    %170 = arith.mulf %166, %169 : vector<8x256xf32>
    %c2_176 = arith.constant 2 : index
    %c0_177 = arith.constant 0 : index
    %c1_178 = arith.constant 1 : index
    %171 = vector.load %arg3[%c2_176, %c0_177, %c1_178] : memref<5x16x2xf32, #tpu.memory_space<vmem>>, vector<1x8x1xf32>
    %172 = vector.shape_cast %171 : vector<1x8x1xf32> to vector<8x1xf32>
    %173 = vector.broadcast %172 : vector<8x1xf32> to vector<8x256xf32>
    %174 = arith.addf %170, %173 : vector<8x256xf32>
    %cst_179 = arith.constant 0.000000e+00 : f32
    %175 = vector.broadcast %cst_179 : f32 to vector<8x256xf32>
    %176 = arith.maximumf %174, %175 : vector<8x256xf32>
    %c0_180 = arith.constant 0 : index
    %c128_181 = arith.constant 128 : index
    %177 = vector.load %arg6[%c0_180, %c128_181] : memref<16x512xf32, #tpu.memory_space<vmem>>, vector<8x256xf32>
    tpu.vector_store %arg6[%c0_180, %c128_181], %176 {strides = array<i32>} : memref<16x512xf32, #tpu.memory_space<vmem>>, vector<8x256xf32>,
    %c0_182 = arith.constant 0 : index
    %c111_183 = arith.constant 111 : index
    %178 = vector.load %arg6[%c0_182, %c111_183] : memref<16x512xf32, #tpu.memory_space<vmem>>, vector<8x256xf32>
    %c2_184 = arith.constant 2 : index
    %c0_185 = arith.constant 0 : index
    %179 = vector.load %arg4[%c2_184, %c0_185] : memref<11x256xf32, #tpu.memory_space<vmem>>, vector<1x256xf32>
    %180 = vector.broadcast %179 : vector<1x256xf32> to vector<8x256xf32>
    %181 = arith.mulf %178, %180 : vector<8x256xf32>
    %c0_186 = arith.constant 0 : index
    %c0_187 = arith.constant 0 : index
    %182 = vector.load %arg7[%c0_186, %c0_187] : memref<144x256xf32, #tpu.memory_space<vmem>>, vector<8x256xf32>
    tpu.vector_store %arg7[%c0_186, %c0_187], %181 {strides = array<i32>} : memref<144x256xf32, #tpu.memory_space<vmem>>, vector<8x256xf32>,
    %c0_188 = arith.constant 0 : index
    %c112_189 = arith.constant 112 : index
    %183 = vector.load %arg6[%c0_188, %c112_189] : memref<16x512xf32, #tpu.memory_space<vmem>>, vector<8x256xf32>
    %c3_190 = arith.constant 3 : index
    %c0_191 = arith.constant 0 : index
    %184 = vector.load %arg4[%c3_190, %c0_191] : memref<11x256xf32, #tpu.memory_space<vmem>>, vector<1x256xf32>
    %185 = vector.broadcast %184 : vector<1x256xf32> to vector<8x256xf32>
    %186 = arith.mulf %183, %185 : vector<8x256xf32>
    %c8_192 = arith.constant 8 : index
    %c0_193 = arith.constant 0 : index
    %187 = vector.load %arg7[%c8_192, %c0_193] : memref<144x256xf32, #tpu.memory_space<vmem>>, vector<8x256xf32>
    tpu.vector_store %arg7[%c8_192, %c0_193], %186 {strides = array<i32>} : memref<144x256xf32, #tpu.memory_space<vmem>>, vector<8x256xf32>,
    %c0_194 = arith.constant 0 : index
    %c113_195 = arith.constant 113 : index
    %188 = vector.load %arg6[%c0_194, %c113_195] : memref<16x512xf32, #tpu.memory_space<vmem>>, vector<8x256xf32>
    %c4_196 = arith.constant 4 : index
    %c0_197 = arith.constant 0 : index
    %189 = vector.load %arg4[%c4_196, %c0_197] : memref<11x256xf32, #tpu.memory_space<vmem>>, vector<1x256xf32>
    %190 = vector.broadcast %189 : vector<1x256xf32> to vector<8x256xf32>
    %191 = arith.mulf %188, %190 : vector<8x256xf32>
    %c16_198 = arith.constant 16 : index
    %c0_199 = arith.constant 0 : index
    %192 = vector.load %arg7[%c16_198, %c0_199] : memref<144x256xf32, #tpu.memory_space<vmem>>, vector<8x256xf32>
    tpu.vector_store %arg7[%c16_198, %c0_199], %191 {strides = array<i32>} : memref<144x256xf32, #tpu.memory_space<vmem>>, vector<8x256xf32>,
    %c0_200 = arith.constant 0 : index
    %c127_201 = arith.constant 127 : index
    %193 = vector.load %arg6[%c0_200, %c127_201] : memref<16x512xf32, #tpu.memory_space<vmem>>, vector<8x256xf32>
    %c5_202 = arith.constant 5 : index
    %c0_203 = arith.constant 0 : index
    %194 = vector.load %arg4[%c5_202, %c0_203] : memref<11x256xf32, #tpu.memory_space<vmem>>, vector<1x256xf32>
    %195 = vector.broadcast %194 : vector<1x256xf32> to vector<8x256xf32>
    %196 = arith.mulf %193, %195 : vector<8x256xf32>
    %c24_204 = arith.constant 24 : index
    %c0_205 = arith.constant 0 : index
    %197 = vector.load %arg7[%c24_204, %c0_205] : memref<144x256xf32, #tpu.memory_space<vmem>>, vector<8x256xf32>
    tpu.vector_store %arg7[%c24_204, %c0_205], %196 {strides = array<i32>} : memref<144x256xf32, #tpu.memory_space<vmem>>, vector<8x256xf32>,
    %c0_206 = arith.constant 0 : index
    %c128_207 = arith.constant 128 : index
    %198 = vector.load %arg6[%c0_206, %c128_207] : memref<16x512xf32, #tpu.memory_space<vmem>>, vector<8x256xf32>
    %c32_208 = arith.constant 32 : index
    %c0_209 = arith.constant 0 : index
    %199 = vector.load %arg7[%c32_208, %c0_209] : memref<144x256xf32, #tpu.memory_space<vmem>>, vector<8x256xf32>
    tpu.vector_store %arg7[%c32_208, %c0_209], %198 {strides = array<i32>} : memref<144x256xf32, #tpu.memory_space<vmem>>, vector<8x256xf32>,
    %c0_210 = arith.constant 0 : index
    %c129_211 = arith.constant 129 : index
    %200 = vector.load %arg6[%c0_210, %c129_211] : memref<16x512xf32, #tpu.memory_space<vmem>>, vector<8x256xf32>
    %c7_212 = arith.constant 7 : index
    %c0_213 = arith.constant 0 : index
    %201 = vector.load %arg4[%c7_212, %c0_213] : memref<11x256xf32, #tpu.memory_space<vmem>>, vector<1x256xf32>
    %202 = vector.broadcast %201 : vector<1x256xf32> to vector<8x256xf32>
    %203 = arith.mulf %200, %202 : vector<8x256xf32>
    %c40_214 = arith.constant 40 : index
    %c0_215 = arith.constant 0 : index
    %204 = vector.load %arg7[%c40_214, %c0_215] : memref<144x256xf32, #tpu.memory_space<vmem>>, vector<8x256xf32>
    tpu.vector_store %arg7[%c40_214, %c0_215], %203 {strides = array<i32>} : memref<144x256xf32, #tpu.memory_space<vmem>>, vector<8x256xf32>,
    %c0_216 = arith.constant 0 : index
    %c143_217 = arith.constant 143 : index
    %205 = vector.load %arg6[%c0_216, %c143_217] : memref<16x512xf32, #tpu.memory_space<vmem>>, vector<8x256xf32>
    %c8_218 = arith.constant 8 : index
    %c0_219 = arith.constant 0 : index
    %206 = vector.load %arg4[%c8_218, %c0_219] : memref<11x256xf32, #tpu.memory_space<vmem>>, vector<1x256xf32>
    %207 = vector.broadcast %206 : vector<1x256xf32> to vector<8x256xf32>
    %208 = arith.mulf %205, %207 : vector<8x256xf32>
    %c48_220 = arith.constant 48 : index
    %c0_221 = arith.constant 0 : index
    %209 = vector.load %arg7[%c48_220, %c0_221] : memref<144x256xf32, #tpu.memory_space<vmem>>, vector<8x256xf32>
    tpu.vector_store %arg7[%c48_220, %c0_221], %208 {strides = array<i32>} : memref<144x256xf32, #tpu.memory_space<vmem>>, vector<8x256xf32>,
    %c0_222 = arith.constant 0 : index
    %c144_223 = arith.constant 144 : index
    %210 = vector.load %arg6[%c0_222, %c144_223] : memref<16x512xf32, #tpu.memory_space<vmem>>, vector<8x256xf32>
    %c9_224 = arith.constant 9 : index
    %c0_225 = arith.constant 0 : index
    %211 = vector.load %arg4[%c9_224, %c0_225] : memref<11x256xf32, #tpu.memory_space<vmem>>, vector<1x256xf32>
    %212 = vector.broadcast %211 : vector<1x256xf32> to vector<8x256xf32>
    %213 = arith.mulf %210, %212 : vector<8x256xf32>
    %c56_226 = arith.constant 56 : index
    %c0_227 = arith.constant 0 : index
    %214 = vector.load %arg7[%c56_226, %c0_227] : memref<144x256xf32, #tpu.memory_space<vmem>>, vector<8x256xf32>
    tpu.vector_store %arg7[%c56_226, %c0_227], %213 {strides = array<i32>} : memref<144x256xf32, #tpu.memory_space<vmem>>, vector<8x256xf32>,
    %c0_228 = arith.constant 0 : index
    %c145_229 = arith.constant 145 : index
    %215 = vector.load %arg6[%c0_228, %c145_229] : memref<16x512xf32, #tpu.memory_space<vmem>>, vector<8x256xf32>
    %c10_230 = arith.constant 10 : index
    %c0_231 = arith.constant 0 : index
    %216 = vector.load %arg4[%c10_230, %c0_231] : memref<11x256xf32, #tpu.memory_space<vmem>>, vector<1x256xf32>
    %217 = vector.broadcast %216 : vector<1x256xf32> to vector<8x256xf32>
    %218 = arith.mulf %215, %217 : vector<8x256xf32>
    %c64_232 = arith.constant 64 : index
    %c0_233 = arith.constant 0 : index
    %219 = vector.load %arg7[%c64_232, %c0_233] : memref<144x256xf32, #tpu.memory_space<vmem>>, vector<8x256xf32>
    tpu.vector_store %arg7[%c64_232, %c0_233], %218 {strides = array<i32>} : memref<144x256xf32, #tpu.memory_space<vmem>>, vector<8x256xf32>,
    %c3_234 = arith.constant 3 : index
    %c0_235 = arith.constant 0 : index
    %c0_236 = arith.constant 0 : index
    %220 = vector.load %arg2[%c3_234, %c0_235, %c0_236] : memref<5x16x144xf32, #tpu.memory_space<vmem>>, vector<1x8x72xf32>
    %221 = vector.shape_cast %220 : vector<1x8x72xf32> to vector<8x72xf32>
    %c0_237 = arith.constant 0 : index
    %c0_238 = arith.constant 0 : index
    %222 = vector.load %arg7[%c0_237, %c0_238] : memref<144x256xf32, #tpu.memory_space<vmem>>, vector<72x256xf32>
    %cst_239 = arith.constant dense<0.000000e+00> : vector<8x256xf32>
    %223 = tpu.matmul %221, %222, %cst_239 {dimension_numbers = #tpu.dot_dimension_numbers<[1], [0], [0], [1], [0, 0, 1, 1], [], []>} : vector<8x72xf32>, vector<72x256xf32>, vector<8x256xf32> -> vector<8x256xf32>
    %c3_240 = arith.constant 3 : index
    %c0_241 = arith.constant 0 : index
    %c0_242 = arith.constant 0 : index
    %224 = vector.load %arg3[%c3_240, %c0_241, %c0_242] : memref<5x16x2xf32, #tpu.memory_space<vmem>>, vector<1x8x1xf32>
    %225 = vector.shape_cast %224 : vector<1x8x1xf32> to vector<8x1xf32>
    %226 = vector.broadcast %225 : vector<8x1xf32> to vector<8x256xf32>
    %227 = arith.mulf %223, %226 : vector<8x256xf32>
    %c3_243 = arith.constant 3 : index
    %c0_244 = arith.constant 0 : index
    %c1_245 = arith.constant 1 : index
    %228 = vector.load %arg3[%c3_243, %c0_244, %c1_245] : memref<5x16x2xf32, #tpu.memory_space<vmem>>, vector<1x8x1xf32>
    %229 = vector.shape_cast %228 : vector<1x8x1xf32> to vector<8x1xf32>
    %230 = vector.broadcast %229 : vector<8x1xf32> to vector<8x256xf32>
    %231 = arith.addf %227, %230 : vector<8x256xf32>
    %cst_246 = arith.constant 0.000000e+00 : f32
    %232 = vector.broadcast %cst_246 : f32 to vector<8x256xf32>
    %233 = arith.maximumf %231, %232 : vector<8x256xf32>
    %c0_247 = arith.constant 0 : index
    %c128_248 = arith.constant 128 : index
    %234 = vector.load %arg6[%c0_247, %c128_248] : memref<16x512xf32, #tpu.memory_space<vmem>>, vector<8x256xf32>
    tpu.vector_store %arg6[%c0_247, %c128_248], %233 {strides = array<i32>} : memref<16x512xf32, #tpu.memory_space<vmem>>, vector<8x256xf32>,
    %c0_249 = arith.constant 0 : index
    %c111_250 = arith.constant 111 : index
    %235 = vector.load %arg6[%c0_249, %c111_250] : memref<16x512xf32, #tpu.memory_space<vmem>>, vector<8x256xf32>
    %c2_251 = arith.constant 2 : index
    %c0_252 = arith.constant 0 : index
    %236 = vector.load %arg4[%c2_251, %c0_252] : memref<11x256xf32, #tpu.memory_space<vmem>>, vector<1x256xf32>
    %237 = vector.broadcast %236 : vector<1x256xf32> to vector<8x256xf32>
    %238 = arith.mulf %235, %237 : vector<8x256xf32>
    %c0_253 = arith.constant 0 : index
    %c0_254 = arith.constant 0 : index
    %239 = vector.load %arg7[%c0_253, %c0_254] : memref<144x256xf32, #tpu.memory_space<vmem>>, vector<8x256xf32>
    tpu.vector_store %arg7[%c0_253, %c0_254], %238 {strides = array<i32>} : memref<144x256xf32, #tpu.memory_space<vmem>>, vector<8x256xf32>,
    %c0_255 = arith.constant 0 : index
    %c112_256 = arith.constant 112 : index
    %240 = vector.load %arg6[%c0_255, %c112_256] : memref<16x512xf32, #tpu.memory_space<vmem>>, vector<8x256xf32>
    %c3_257 = arith.constant 3 : index
    %c0_258 = arith.constant 0 : index
    %241 = vector.load %arg4[%c3_257, %c0_258] : memref<11x256xf32, #tpu.memory_space<vmem>>, vector<1x256xf32>
    %242 = vector.broadcast %241 : vector<1x256xf32> to vector<8x256xf32>
    %243 = arith.mulf %240, %242 : vector<8x256xf32>
    %c8_259 = arith.constant 8 : index
    %c0_260 = arith.constant 0 : index
    %244 = vector.load %arg7[%c8_259, %c0_260] : memref<144x256xf32, #tpu.memory_space<vmem>>, vector<8x256xf32>
    tpu.vector_store %arg7[%c8_259, %c0_260], %243 {strides = array<i32>} : memref<144x256xf32, #tpu.memory_space<vmem>>, vector<8x256xf32>,
    %c0_261 = arith.constant 0 : index
    %c113_262 = arith.constant 113 : index
    %245 = vector.load %arg6[%c0_261, %c113_262] : memref<16x512xf32, #tpu.memory_space<vmem>>, vector<8x256xf32>
    %c4_263 = arith.constant 4 : index
    %c0_264 = arith.constant 0 : index
    %246 = vector.load %arg4[%c4_263, %c0_264] : memref<11x256xf32, #tpu.memory_space<vmem>>, vector<1x256xf32>
    %247 = vector.broadcast %246 : vector<1x256xf32> to vector<8x256xf32>
    %248 = arith.mulf %245, %247 : vector<8x256xf32>
    %c16_265 = arith.constant 16 : index
    %c0_266 = arith.constant 0 : index
    %249 = vector.load %arg7[%c16_265, %c0_266] : memref<144x256xf32, #tpu.memory_space<vmem>>, vector<8x256xf32>
    tpu.vector_store %arg7[%c16_265, %c0_266], %248 {strides = array<i32>} : memref<144x256xf32, #tpu.memory_space<vmem>>, vector<8x256xf32>,
    %c0_267 = arith.constant 0 : index
    %c127_268 = arith.constant 127 : index
    %250 = vector.load %arg6[%c0_267, %c127_268] : memref<16x512xf32, #tpu.memory_space<vmem>>, vector<8x256xf32>
    %c5_269 = arith.constant 5 : index
    %c0_270 = arith.constant 0 : index
    %251 = vector.load %arg4[%c5_269, %c0_270] : memref<11x256xf32, #tpu.memory_space<vmem>>, vector<1x256xf32>
    %252 = vector.broadcast %251 : vector<1x256xf32> to vector<8x256xf32>
    %253 = arith.mulf %250, %252 : vector<8x256xf32>
    %c24_271 = arith.constant 24 : index
    %c0_272 = arith.constant 0 : index
    %254 = vector.load %arg7[%c24_271, %c0_272] : memref<144x256xf32, #tpu.memory_space<vmem>>, vector<8x256xf32>
    tpu.vector_store %arg7[%c24_271, %c0_272], %253 {strides = array<i32>} : memref<144x256xf32, #tpu.memory_space<vmem>>, vector<8x256xf32>,
    %c0_273 = arith.constant 0 : index
    %c128_274 = arith.constant 128 : index
    %255 = vector.load %arg6[%c0_273, %c128_274] : memref<16x512xf32, #tpu.memory_space<vmem>>, vector<8x256xf32>
    %c32_275 = arith.constant 32 : index
    %c0_276 = arith.constant 0 : index
    %256 = vector.load %arg7[%c32_275, %c0_276] : memref<144x256xf32, #tpu.memory_space<vmem>>, vector<8x256xf32>
    tpu.vector_store %arg7[%c32_275, %c0_276], %255 {strides = array<i32>} : memref<144x256xf32, #tpu.memory_space<vmem>>, vector<8x256xf32>,
    %c0_277 = arith.constant 0 : index
    %c129_278 = arith.constant 129 : index
    %257 = vector.load %arg6[%c0_277, %c129_278] : memref<16x512xf32, #tpu.memory_space<vmem>>, vector<8x256xf32>
    %c7_279 = arith.constant 7 : index
    %c0_280 = arith.constant 0 : index
    %258 = vector.load %arg4[%c7_279, %c0_280] : memref<11x256xf32, #tpu.memory_space<vmem>>, vector<1x256xf32>
    %259 = vector.broadcast %258 : vector<1x256xf32> to vector<8x256xf32>
    %260 = arith.mulf %257, %259 : vector<8x256xf32>
    %c40_281 = arith.constant 40 : index
    %c0_282 = arith.constant 0 : index
    %261 = vector.load %arg7[%c40_281, %c0_282] : memref<144x256xf32, #tpu.memory_space<vmem>>, vector<8x256xf32>
    tpu.vector_store %arg7[%c40_281, %c0_282], %260 {strides = array<i32>} : memref<144x256xf32, #tpu.memory_space<vmem>>, vector<8x256xf32>,
    %c0_283 = arith.constant 0 : index
    %c143_284 = arith.constant 143 : index
    %262 = vector.load %arg6[%c0_283, %c143_284] : memref<16x512xf32, #tpu.memory_space<vmem>>, vector<8x256xf32>
    %c8_285 = arith.constant 8 : index
    %c0_286 = arith.constant 0 : index
    %263 = vector.load %arg4[%c8_285, %c0_286] : memref<11x256xf32, #tpu.memory_space<vmem>>, vector<1x256xf32>
    %264 = vector.broadcast %263 : vector<1x256xf32> to vector<8x256xf32>
    %265 = arith.mulf %262, %264 : vector<8x256xf32>
    %c48_287 = arith.constant 48 : index
    %c0_288 = arith.constant 0 : index
    %266 = vector.load %arg7[%c48_287, %c0_288] : memref<144x256xf32, #tpu.memory_space<vmem>>, vector<8x256xf32>
    tpu.vector_store %arg7[%c48_287, %c0_288], %265 {strides = array<i32>} : memref<144x256xf32, #tpu.memory_space<vmem>>, vector<8x256xf32>,
    %c0_289 = arith.constant 0 : index
    %c144_290 = arith.constant 144 : index
    %267 = vector.load %arg6[%c0_289, %c144_290] : memref<16x512xf32, #tpu.memory_space<vmem>>, vector<8x256xf32>
    %c9_291 = arith.constant 9 : index
    %c0_292 = arith.constant 0 : index
    %268 = vector.load %arg4[%c9_291, %c0_292] : memref<11x256xf32, #tpu.memory_space<vmem>>, vector<1x256xf32>
    %269 = vector.broadcast %268 : vector<1x256xf32> to vector<8x256xf32>
    %270 = arith.mulf %267, %269 : vector<8x256xf32>
    %c56_293 = arith.constant 56 : index
    %c0_294 = arith.constant 0 : index
    %271 = vector.load %arg7[%c56_293, %c0_294] : memref<144x256xf32, #tpu.memory_space<vmem>>, vector<8x256xf32>
    tpu.vector_store %arg7[%c56_293, %c0_294], %270 {strides = array<i32>} : memref<144x256xf32, #tpu.memory_space<vmem>>, vector<8x256xf32>,
    %c0_295 = arith.constant 0 : index
    %c145_296 = arith.constant 145 : index
    %272 = vector.load %arg6[%c0_295, %c145_296] : memref<16x512xf32, #tpu.memory_space<vmem>>, vector<8x256xf32>
    %c10_297 = arith.constant 10 : index
    %c0_298 = arith.constant 0 : index
    %273 = vector.load %arg4[%c10_297, %c0_298] : memref<11x256xf32, #tpu.memory_space<vmem>>, vector<1x256xf32>
    %274 = vector.broadcast %273 : vector<1x256xf32> to vector<8x256xf32>
    %275 = arith.mulf %272, %274 : vector<8x256xf32>
    %c64_299 = arith.constant 64 : index
    %c0_300 = arith.constant 0 : index
    %276 = vector.load %arg7[%c64_299, %c0_300] : memref<144x256xf32, #tpu.memory_space<vmem>>, vector<8x256xf32>
    tpu.vector_store %arg7[%c64_299, %c0_300], %275 {strides = array<i32>} : memref<144x256xf32, #tpu.memory_space<vmem>>, vector<8x256xf32>,
    %c4_301 = arith.constant 4 : index
    %c0_302 = arith.constant 0 : index
    %c0_303 = arith.constant 0 : index
    %277 = vector.load %arg2[%c4_301, %c0_302, %c0_303] : memref<5x16x144xf32, #tpu.memory_space<vmem>>, vector<1x8x72xf32>
    %278 = vector.shape_cast %277 : vector<1x8x72xf32> to vector<8x72xf32>
    %c0_304 = arith.constant 0 : index
    %c0_305 = arith.constant 0 : index
    %279 = vector.load %arg7[%c0_304, %c0_305] : memref<144x256xf32, #tpu.memory_space<vmem>>, vector<72x256xf32>
    %cst_306 = arith.constant dense<0.000000e+00> : vector<8x256xf32>
    %280 = tpu.matmul %278, %279, %cst_306 {dimension_numbers = #tpu.dot_dimension_numbers<[1], [0], [0], [1], [0, 0, 1, 1], [], []>} : vector<8x72xf32>, vector<72x256xf32>, vector<8x256xf32> -> vector<8x256xf32>
    %c4_307 = arith.constant 4 : index
    %c0_308 = arith.constant 0 : index
    %c0_309 = arith.constant 0 : index
    %281 = vector.load %arg3[%c4_307, %c0_308, %c0_309] : memref<5x16x2xf32, #tpu.memory_space<vmem>>, vector<1x8x1xf32>
    %282 = vector.shape_cast %281 : vector<1x8x1xf32> to vector<8x1xf32>
    %283 = vector.broadcast %282 : vector<8x1xf32> to vector<8x256xf32>
    %284 = arith.mulf %280, %283 : vector<8x256xf32>
    %c4_310 = arith.constant 4 : index
    %c0_311 = arith.constant 0 : index
    %c1_312 = arith.constant 1 : index
    %285 = vector.load %arg3[%c4_310, %c0_311, %c1_312] : memref<5x16x2xf32, #tpu.memory_space<vmem>>, vector<1x8x1xf32>
    %286 = vector.shape_cast %285 : vector<1x8x1xf32> to vector<8x1xf32>
    %287 = vector.broadcast %286 : vector<8x1xf32> to vector<8x256xf32>
    %288 = arith.addf %284, %287 : vector<8x256xf32>
    %c0_313 = arith.constant 0 : index
    %c0_314 = arith.constant 0 : index
    %289 = vector.load %arg4[%c0_313, %c0_314] : memref<11x256xf32, #tpu.memory_space<vmem>>, vector<1x256xf32>
    %c1_315 = arith.constant 1 : index
    %c0_316 = arith.constant 0 : index
    %290 = vector.load %arg4[%c1_315, %c0_316] : memref<11x256xf32, #tpu.memory_space<vmem>>, vector<1x256xf32>
    %291 = vector.extract_strided_slice %288 {offsets = [0, 0], sizes = [2, 256], strides = [1, 1]} : vector<8x256xf32> to vector<2x256xf32>
    %cst_317 = arith.constant dense<0xFF800000> : vector<2xf32>
    %292 = vector.multi_reduction <maximumf>, %291, %cst_317 [1] : vector<2x256xf32> to vector<2xf32>
    %293 = vector.shape_cast %292 : vector<2xf32> to vector<2x1xf32>
    %294 = vector.broadcast %293 : vector<2x1xf32> to vector<2x256xf32>
    %295 = arith.subf %291, %294 : vector<2x256xf32>
    %296 = math.exp %295 : vector<2x256xf32>
    %cst_318 = arith.constant dense<0.000000e+00> : vector<2xf32>
    %297 = vector.multi_reduction <add>, %296, %cst_318 [1] : vector<2x256xf32> to vector<2xf32>
    %298 = vector.shape_cast %297 : vector<2xf32> to vector<2x1xf32>
    %cst_319 = arith.constant 1.000000e+00 : f32
    %299 = vector.broadcast %cst_319 : f32 to vector<2x1xf32>
    %300 = arith.divf %299, %298 : vector<2x1xf32>
    %301 = vector.broadcast %289 : vector<1x256xf32> to vector<2x256xf32>
    %302 = arith.mulf %296, %301 : vector<2x256xf32>
    %cst_320 = arith.constant dense<0.000000e+00> : vector<2xf32>
    %303 = vector.multi_reduction <add>, %302, %cst_320 [1] : vector<2x256xf32> to vector<2xf32>
    %304 = vector.shape_cast %303 : vector<2xf32> to vector<2x1xf32>
    %305 = arith.mulf %304, %300 : vector<2x1xf32>
    %306 = vector.broadcast %290 : vector<1x256xf32> to vector<2x256xf32>
    %307 = arith.mulf %296, %306 : vector<2x256xf32>
    %cst_321 = arith.constant dense<0.000000e+00> : vector<2xf32>
    %308 = vector.multi_reduction <add>, %307, %cst_321 [1] : vector<2x256xf32> to vector<2xf32>
    %309 = vector.shape_cast %308 : vector<2xf32> to vector<2x1xf32>
    %310 = arith.mulf %309, %300 : vector<2x1xf32>
    %311 = tpu.concatenate %305, %310 in 1 : vector<2x1xf32>, vector<2x1xf32> -> vector<2x2xf32>
    %c0_322 = arith.constant 0 : index
    %c0_323 = arith.constant 0 : index
    %c0_324 = arith.constant 0 : index
    %312 = vector.load %arg5[%c0_322, %c0_323, %c0_324] : memref<1x16x128xf32, #tpu.memory_space<vmem>>, vector<1x2x2xf32>
    %313 = vector.shape_cast %312 : vector<1x2x2xf32> to vector<2x2xf32>
    %314 = vector.shape_cast %311 : vector<2x2xf32> to vector<1x2x2xf32>
    tpu.vector_store %arg5[%c0_322, %c0_323, %c0_324], %314 {strides = array<i32>} : memref<1x16x128xf32, #tpu.memory_space<vmem>>, vector<1x2x2xf32>,
    return
  }
  func.func @transform_0(%arg0: i32) -> (i32, i32, i32) {
    %c0_i32 = arith.constant 0 : i32
    %c0_i32_0 = arith.constant 0 : i32
    %c0_i32_1 = arith.constant 0 : i32
    return %arg0, %c0_i32, %c0_i32_0 : i32, i32, i32
  }
  func.func @transform_1(%arg0: i32) -> (i32, i32, i32) {
    %c0_i32 = arith.constant 0 : i32
    %c0_i32_0 = arith.constant 0 : i32
    %c0_i32_1 = arith.constant 0 : i32
    %c0_i32_2 = arith.constant 0 : i32
    return %c0_i32, %c0_i32_0, %c0_i32_1 : i32, i32, i32
  }
  func.func @transform_2(%arg0: i32) -> (i32, i32, i32) {
    %c0_i32 = arith.constant 0 : i32
    %c0_i32_0 = arith.constant 0 : i32
    %c0_i32_1 = arith.constant 0 : i32
    %c0_i32_2 = arith.constant 0 : i32
    return %c0_i32, %c0_i32_0, %c0_i32_1 : i32, i32, i32
  }
  func.func @transform_3(%arg0: i32) -> (i32, i32) {
    %c0_i32 = arith.constant 0 : i32
    %c0_i32_0 = arith.constant 0 : i32
    %c0_i32_1 = arith.constant 0 : i32
    return %c0_i32, %c0_i32_0 : i32, i32
  }
  func.func @transform_4(%arg0: i32) -> (i32, i32, i32) {
    %c0_i32 = arith.constant 0 : i32
    %c0_i32_0 = arith.constant 0 : i32
    %c0_i32_1 = arith.constant 0 : i32
    return %arg0, %c0_i32, %c0_i32_0 : i32, i32, i32
  }
}

</mosaic_0001>

<bundles_post_ra>
// kernel: tpu_custom_call.1
= control target key start
LH: loop header
LB: loop body
LE: loop exit
PB: predicated region body
PF: predicated region fallthrough
CT: control target
= control target key end

     0   :  { %9 = vsyncpa [#allocation5], 0  ;;  %s4250_s0 = inlined_call_operand.vmem [shape: f32[2,8,256], index: 0, kind: input, shape index: {}]   ;;  %s4251_s1 = inlined_call_operand.hbm [shape: f32[5,16,144], index: 1, kind: input, shape index: {}]   ;;  %s4252_s2 = inlined_call_operand.vmem [shape: f32[5,16,2], index: 2, kind: input, shape index: {}]   ;;  %s4253_s3 = inlined_call_operand.vmem [shape: f32[11,256], index: 3, kind: input, shape index: {}]   ;;  %s4254_s4 = inlined_call_operand.hbm [shape: f32[2,16,128], index: 4, kind: output, shape index: {}]  }
   0x1   :  { %10 = vsyncpa [#allocation6], 0 }
   0x2   :  { %12 = vsyncpa [#allocation6 + $0x1], 0  ;;  %s3389_s15 = smov 0   ;;  %s3391_s16 = smov 0  }
   0x3   :  { %s3393_s17 = smov 0   ;;  %s3395_s18 = smov 0  }
   0x4 LB: > { %s3410_s19 = sadd.s32 4294967295, %s3345_s18   ;;  %s2745_s20 = sadd.s32 4294967294, %s3345_s18   ;;  %s3345_s18 = sphi %s3395_s18, %s4270_s18   ;;  %s3341_s17 = sphi %s3393_s17, %s4269_s17   ;;  %s3337_s16 = sphi %s3391_s16, %s4268_s16   ;;  %s3333_s15 = sphi %s3389_s15, %s4267_s15  }
   0x5   : > { %s3414_s21 = sadd.s32 1, %s3345_s18   ;;  %s114_s22 = sadd.s32 1, %s3341_s17 }
   0x6   : > { %s111_s23 = ssub.s32 %s3345_s18, %s3414_s21  ;;  %p124_p0 = scmp.ne.s32.totalorder %s3341_s17, %s3337_s16 }
   0x7   : > { %p112_p1 = scmp.eq.s32.totalorder %s111_s23, 0  ;;  %p125_p2 = scmp.eq.s32.totalorder %s3410_s19, 1 }
   0x8   : > { %p130_p3 = scmp.ne.s32.totalorder %s3337_s16, %s3333_s15  ;;  %p131_p4 = scmp.eq.s32.totalorder %s2745_s20, 1 }
   0x9   : > { %s3425_s24 = scalar_select %p112_p1, %s3341_s17, %s114_s22  }
   0xa   : > { %p3427_p5 = por %p125_p2, %p124_p0  ;;  %p3431_p6 = por %p131_p4, %p130_p3 }
   0xb   : > { %p2746_p7 = scmp.ge.s32.totalorder %s3345_s18, 1  ;;  %p138_p8 = scmp.lt.s32.totalorder %s3345_s18, 3 }
   0xc   : > { %s4258_s25 = scalar_select %p3427_p5, 1, 0 }
   0xd   : > { %s4259_s26 = scalar_select %p3431_p6, 1, 0 }
   0xe   : > { %p4255_p9 = scmp.eq.s32.totalorder %s3410_s19, 0  ;;  %p3438_p10 = pnand %p2746_p7, %p138_p8 }
   0xf   : > { %s3347_s28 = smov [#allocation4]   ;;  %s3251_s7 = scalar_lea.hbm %s4251_s1, 2560 }
  0x10   : > { %s4260_s27 = scalar_select %p3438_p10, 1, 0 }
  0x11   : > { %s150_s29 = sshll.u32 %s3347_s28, 4  ;;  %p2918_p11 = pneg %p3438_p10  ;;  %s151_s29 = int_to_ptr.vmem [resolvable:$true] %s150_s29 }
  0x12   : > { %p3252_p13 = scmp.ne.s32.totalorder %s4251_s1, %s3251_s7  ;;  %p3258_p3 = scmp.lt.u32.totalorder %s3251_s7, %s4251_s1 }
  0x13   : > { %p3446_p12 = pnand %p4255_p9, %p2918_p11 }
  0x15   : > { %p3253_p0 = pneg %p3446_p12 }
  0x17   : > { %p3254_p1 = pnand %p3253_p0, %p3252_p13 }
  0x19   : > { %p3255_p2 = pneg %p3254_p1 }
  0x1b   : > { %p3260_p4 = pnand %p3258_p3, %p3255_p2 }
  0x1d   : > { %3263 = shalt.err (!%p3260_p4)
}
  0x1e   : > { %s3264_s12 = scalar_lea.vmem %s151_s29, 2560  ;;  %p3272_p9 = scmp.lt.s32.totalorder %s151_s29, %s151_s29 }
  0x1f   : > { %p3265_p7 = scmp.ne.s32.totalorder %s151_s29, %s3264_s12  ;;  %p3273_p6 = scmp.lt.s32.totalorder %s3264_s12, %s3264_s12 }
  0x21   : > { %p3267_p8 = pnand %p3265_p7, %p3253_p0  ;;  %p3274_p5 = por %p3273_p6, %p3272_p9 }
  0x23   : > { %p3268_p11 = pneg %p3267_p8 }
  0x25   : > { %p3275_p10 = pnand %p3274_p5, %p3268_p11 }
  0x27   : > { %3278 = shalt.err (!%p3275_p10)
}
  0x28   : > { %s3348_s13 = smov 256   ;;  %s3349_s14 = smov 16  }
  0x29   : > { %2921 = dma.hbm_to_vmem [thread:$0]  (!%p3446_p12), %s4251_s1, 2560, %s151_s29, [#allocation5], %s3348_s13, %s3348_s13, %s3349_s14  }
  0x2a   : > { %p4262_p13 = scmp.ne.s32.totalorder %s4260_s27, 0 }
  0x2b   : > { %p4263_p1 = scmp.eq.s32.totalorder (!%p4262_p13), %s3410_s19, 0 }
  0x2c   : > { %180 = sbr.rel (%p4262_p13) target bundleno = 2365 (0x93d), region = 36 }
  0x33   : > { %3324 = dma.done.wait (%p4263_p1), [#allocation5], 2560   ;;  %p4264_p0 = pmov %p4263_p1 }
  0x34   : > { %v225_v0 = vlaneseq  ;;  %v2755_v4 = vld [vmem:[%s4253_s3 + $0x3] ss:$8 sm:$0x3]  ;;  %v2754_v5 = vld [vmem:[%s4253_s3 + $0x2] ss:$8 sm:$0x3] }
  0x35   : > { %3326 = vsyncadd (%p4264_p0), [#allocation5], 4294964736  ;;  %s3350_s27 = smov 112   ;;  %s3351_s5 = smov 111   ;;  %vm237_vm0 = vcmask 908288   ;;  %vm279_vm1 = vcmask 916480  }
  0x36   : > { %v226_v1 = vshrl.u32 %v225_v0, 7  ;;  %v2756_v10 = vld [vmem:[%s4253_s3 + $0x4] ss:$8 sm:$0x3]  ;;  %s3352_s10 = smov 113   ;;  %s3353_s13 = smov 127  }
  0x37   : > { %v2757_v13 = vld [vmem:[%s4253_s3 + $0x5] ss:$8 sm:$0x3]  ;;  %v2758_v16 = vld [vmem:[%s4253_s3 + $0x7] ss:$8 sm:$0x3] }
  0x38   : > { %v3472_v2 = vsub.s32 0, %v226_v1  ;;  %v3474_v3 = vsub.s32 1, %v226_v1  ;;  %v2759_v19 = vld [vmem:[%s4253_s3 + $0x10] ss:$8 sm:$0x3]  ;;  %s3354_s22 = smov 1  }
  0x39   : > { %v2760_v22 = vld [vmem:[%s4253_s3 + $0x11] ss:$8 sm:$0x3]  ;;  %s3355_s29 = smov 15   ;;  %s3356_s7 = smov 16   ;;  %vm321_vm2 = vcmask 924672  }
  0x3a   : > { %v270_v6 = vrot.slane %v2755_v4, %v3472_v2  ;;  %v228_v7 = vrot.slane %v2754_v5, %v3472_v2  ;;  %v274_v8 = vrot.slane %v2755_v4, %v3474_v3  ;;  %v232_v9 = vrot.slane %v2754_v5, %v3474_v3  ;;  %v2761_v25 = vld [vmem:[%s4253_s3 + $0x12] ss:$8 sm:$0x3]  ;;  %s3357_s8 = smov 17   ;;  %p206_p5 = scmp.lt.s32.totalorder %s3410_s19, 1 }
  0x3b   : > { %v316_v11 = vrot.slane %v2756_v10, %v3474_v3  ;;  %v312_v12 = vrot.slane %v2756_v10, %v3472_v2  ;;  %v358_v14 = vrot.slane %v2757_v13, %v3474_v3  ;;  %v354_v15 = vrot.slane %v2757_v13, %v3472_v2  ;;  %s2811_s30 = sshll.u32 %s3410_s19, 8  ;;  %p4265_p9 = scmp.ne.s32.totalorder %s4258_s25, 0 }
  0x3c   : > { %275 = vrot.lane.b32.xlu1 %v270_v6, %s3350_s27  ;;  %233 = vrot.lane.b32.xlu0 %v228_v7, %s3351_s5  ;;  %v404_v17 = vrot.slane %v2758_v16, %v3474_v3  ;;  %v400_v18 = vrot.slane %v2758_v16, %v3472_v2  ;;  %v444_v20 = vrot.slane %v2759_v19, %v3474_v3  ;;  %s207_s9 = scalar_select %p206_p5, %s3410_s19, 1  ;;  %vm363_vm3 = vcmask 1039360  }
  0x3d   : > { %v440_v21 = vrot.slane %v2759_v19, %v3472_v2  ;;  %v484_v23 = vrot.slane %v2760_v22, %v3474_v3  ;;  %v480_v24 = vrot.slane %v2760_v22, %v3472_v2  ;;  %v524_v26 = vrot.slane %v2761_v25, %v3474_v3  ;;  %s4204_s14 = scalar_lea.hbm %s4254_s4, %s2811_s30  ;;  %s3361_s23 = smov [#allocation7]  }
  0x3e   : > { %v520_v27 = vrot.slane %v2761_v25, %v3472_v2  ;;  %s2810_s11 = sshll.u32 %s207_s9, 4  ;;  %vm380_vm4 = vcmask 7168   ;;  %vm338_vm5 = vcmask 121856   ;;  %vm296_vm6 = vcmask 130048   ;;  %v655_v25 = vld [vmem:[%s4252_s2] sm:$0xff]  ;;  %s3283_s28 = sshll.u32 %s3361_s23, 4  ;;  %s3284_s28 = int_to_ptr.vmem [resolvable:$false] %s3283_s28 }
  0x3f   : > { %s210_s20 = scalar_lea.vmem %s4250_s0, %s2810_s11  ;;  %vm254_vm7 = vcmask 138240   ;;  %v3358_v19 = vmov 0.0   ;;  %v3359_v22 = vmov 0   ;;  %vm571_vm8 = vcmask 588800  }
  0x40   : > { %277 = vrot.lane.b32.xlu1 %v274_v8, %s3350_s27  ;;  %235 = vrot.lane.b32.xlu0 %v232_v9, %s3351_s5  ;;  %v3539_v34 = vld [vmem:[%s210_s20] sm:$0xff]  ;;  %v3541_v35 = vld [vmem:[%s210_s20 + $0x8] sm:$0xff]  ;;  %vm2597_vm9 = vcmask 1041408   ;;  %vm2655_vm10 = vcmask 9216  }
  0x41   : > { %642 = vmatprep.mubr.f32.mxu0 %v3358_v19  ;;  %3012 = vset.pattern.permute.xlu1 %v3359_v22 }
  0x42   : > { %3013 = vset.pattern.permute.xlu0 %v3359_v22 }
  0x44   : > { %319 = vrot.lane.b32.xlu1 %v316_v11, %s3352_s10  ;;  %317 = vrot.lane.b32.xlu0 %v312_v12, %s3352_s10 }
  0x48   : > { %361 = vrot.lane.b32.xlu1 %v358_v14, %s3353_s13  ;;  %359 = vrot.lane.b32.xlu0 %v354_v15, %s3353_s13 }
  0x4c   : > { %407 = vrot.lane.b32.xlu1 %v404_v17, %s3354_s22  ;;  %405 = vrot.lane.b32.xlu0 %v400_v18, %s3354_s22 }
  0x50   : > { %447 = vrot.lane.b32.xlu1 %v444_v20, %s3355_s29  ;;  %445 = vrot.lane.b32.xlu0 %v440_v21, %s3355_s29 }
  0x54   : > { %487 = vrot.lane.b32.xlu1 %v484_v23, %s3356_s7  ;;  %485 = vrot.lane.b32.xlu0 %v480_v24, %s3356_s7 }
  0x58   : > { %527 = vrot.lane.b32.xlu1 %v524_v26, %s3357_s8  ;;  %525 = vrot.lane.b32.xlu0 %v520_v27, %s3357_s8  ;;  %v656_v26 = vld [vmem:[%s4252_s2 + $0x8] sm:$0xff] }
  0x59   : > { %v2764_v27 = vld [vmem:[%s4253_s3 + $0x2] ss:$8 sm:$0x3] }
  0xae   : > { %v276_v28 = vpop.permute.xlu1 %275  ;;  %v234_v29 = vpop.permute.xlu0 %233 }
  0xaf   : > { %v284_v30 = vmul.f32 0.0, %v276_v28  ;;  %v242_v31 = vmul.f32 0.0, %v234_v29 }
  0xb1   : > { %248 = vrot.lane.b32.xlu0 %v242_v31, %s3357_s8  ;;  %290 = vrot.lane.b32.xlu1 %v284_v30, %s3356_s7  ;;  %v3360_v30 = vmov 1  }
  0xb2   : > { %v278_v32 = vpop.permute.xlu1 %277  ;;  %v236_v33 = vpop.permute.xlu0 %235 }
  0xb3   : > { %v238_v36 = vsel %vm237_vm0, %v234_v29, %v236_v33  ;;  %v280_v39 = vsel %vm279_vm1, %v276_v28, %v278_v32  ;;  %v244_v41 = vmul.f32 %v236_v33, %v3541_v35  ;;  %v286_v45 = vmul.f32 %v278_v32, %v3541_v35  ;;  %v2765_v29 = vld [vmem:[%s4253_s3 + $0x3] ss:$8 sm:$0x3]  ;;  %v2766_v32 = vld [vmem:[%s4253_s3 + $0x4] ss:$8 sm:$0x3] }
  0xb4   : > { %v243_v40 = vmul.f32 %v238_v36, %v3539_v34  ;;  %v285_v44 = vmul.f32 %v280_v39, %v3539_v34  ;;  %v702_v28 = vrot.slane %v2764_v27, %v3472_v2  ;;  %v762_v31 = vrot.slane %v2765_v29, %v3472_v2 }
  0xb5   : > { %v822_v33 = vrot.slane %v2766_v32, %v3472_v2  ;;  %v706_v36 = vrot.slane %v2764_v27, %v3474_v3  ;;  %v766_v39 = vrot.slane %v2765_v29, %v3474_v3 }
  0xb6   : > { %v320_v37 = vpop.permute.xlu1 %319  ;;  %v318_v38 = vpop.permute.xlu0 %317  ;;  %v2977_v51 = vpack.i.bf16 %v244_v41, %v243_v40  ;;  %v2982_v55 = vpack.i.bf16 %v286_v45, %v285_v44  ;;  %v2768_v40 = vld [vmem:[%s4253_s3 + $0x7] ss:$8 sm:$0x3] }
  0xb7   : > { %v326_v42 = vmul.f32 0.0, %v318_v38  ;;  %v322_v43 = vsel %vm321_vm2, %v318_v38, %v320_v37  ;;  %v328_v48 = vmul.f32 %v320_v37, %v3541_v35  ;;  %v2767_v37 = vld [vmem:[%s4253_s3 + $0x5] ss:$8 sm:$0x3]  ;;  %v950_v41 = vrot.slane %v2768_v40, %v3472_v2 }
  0xb8   : > { %v327_v49 = vmul.f32 %v322_v43, %v3539_v34  ;;  %v882_v38 = vrot.slane %v2767_v37, %v3472_v2  ;;  %v2769_v43 = vld [vmem:[%s4253_s3 + $0x10] ss:$8 sm:$0x3]  ;;  %v886_v45 = vrot.slane %v2767_v37, %v3474_v3 }
  0xb9   : > { %332 = vrot.lane.b32.xlu0 %v326_v42, %s3355_s29  ;;  %v826_v42 = vrot.slane %v2766_v32, %v3474_v3  ;;  %v1010_v44 = vrot.slane %v2769_v43, %v3472_v2 }
  0xba   : > { %v362_v46 = vpop.permute.xlu1 %361  ;;  %v360_v47 = vpop.permute.xlu0 %359  ;;  %v2987_v59 = vpack.i.bf16 %v328_v48, %v327_v49  ;;  %v954_v48 = vrot.slane %v2768_v40, %v3474_v3  ;;  %v2771_v49 = vld [vmem:[%s4253_s3 + $0x12] ss:$8 sm:$0x3] }
  0xbb   : > { %v368_v50 = vmul.f32 0.0, %v360_v47  ;;  %v364_v52 = vsel %vm363_vm3, %v360_v47, %v362_v46  ;;  %v370_v56 = vmul.f32 %v362_v46, %v3541_v35  ;;  %v2770_v46 = vld [vmem:[%s4253_s3 + $0x11] ss:$8 sm:$0x3] }
  0xbc   : > { %v369_v57 = vmul.f32 %v364_v52, %v3539_v34  ;;  %v1070_v47 = vrot.slane %v2770_v46, %v3472_v2  ;;  %v1074_v52 = vrot.slane %v2770_v46, %v3474_v3 }
  0xbd   : > { %374 = vrot.lane.b32.xlu1 %v368_v50, %s3354_s22  ;;  %2978 = vrot.lane.b32.xlu0 %v2977_v51, %s3357_s8  ;;  %v1130_v50 = vrot.slane %v2771_v49, %v3472_v2  ;;  %v1014_v51 = vrot.slane %v2769_v43, %v3474_v3 }
  0xbe   : > { %v408_v53 = vpop.permute.xlu1 %407  ;;  %v406_v54 = vpop.permute.xlu0 %405  ;;  %v2992_v1 = vpack.i.bf16 %v370_v56, %v369_v57 }
  0xbf   : > { %v409_v58 = vsel %vm380_vm4, %v406_v54, %v408_v53  ;;  %v415_v60 = vmul.f32 0.0, %v408_v53  ;;  %v413_v5 = vmul.f32 %v406_v54, %v3539_v34  ;;  %v1134_v53 = vrot.slane %v2771_v49, %v3474_v3  ;;  %v551_v49 = vld [vmem:[#allocation4] sm:$0xff] }
  0xc0   : > { %v414_v61 = vmul.f32 %v409_v58, %v3541_v35 }
  0xc1   : > { %2983 = vrot.lane.b32.xlu1 %v2982_v55, %s3356_s7  ;;  %2988 = vrot.lane.b32.xlu0 %v2987_v59, %s3355_s29 }
  0xc2   : > { %v448_v62 = vpop.permute.xlu1 %447  ;;  %v446_v63 = vpop.permute.xlu0 %445  ;;  %v2997_v8 = vpack.i.bf16 %v415_v60, %v414_v61 }
  0xc3   : > { %v453_v0 = vmul.f32 %v446_v63, %v3539_v34  ;;  %v449_v4 = vsel %vm338_vm5, %v446_v63, %v448_v62  ;;  %v455_v9 = vmul.f32 0.0, %v448_v62 }
  0xc4   : > { %v454_v10 = vmul.f32 %v449_v4, %v3541_v35 }
  0xc5   : > { %2993 = vrot.lane.b32.xlu1 %v2992_v1, %s3354_s22  ;;  %459 = vrot.lane.b32.xlu0 %v453_v0, %s3352_s10 }
  0xc6   : > { %v488_v6 = vpop.permute.xlu1 %487  ;;  %v486_v7 = vpop.permute.xlu0 %485  ;;  %v3002_v18 = vpack.i.bf16 %v455_v9, %v454_v10 }
  0xc7   : > { %v495_v11 = vmul.f32 0.0, %v488_v6  ;;  %v489_v12 = vsel %vm296_vm6, %v486_v7, %v488_v6  ;;  %v493_v21 = vmul.f32 %v486_v7, %v3539_v34 }
  0xc8   : > { %v494_v13 = vmul.f32 %v489_v12, %v3541_v35 }
  0xc9   : > { %419 = vrot.lane.b32.xlu1 %v413_v5, %s3353_s13  ;;  %2998 = vrot.lane.b32.xlu0 %v2997_v8, %s3353_s13 }
  0xca   : > { %v528_v14 = vpop.permute.xlu1 %527  ;;  %v526_v15 = vpop.permute.xlu0 %525  ;;  %v3007_v16 = vpack.i.bf16 %v495_v11, %v494_v13 }
  0xcb   : > { %v529_v17 = vsel %vm254_vm7, %v526_v15, %v528_v14  ;;  %v535_v23 = vmul.f32 0.0, %v528_v14  ;;  %v533_v24 = vmul.f32 %v526_v15, %v3539_v34 }
  0xcc   : > { %v534_v20 = vmul.f32 %v529_v17, %v3541_v35 }
  0xcd   : > { %3008 = vrot.lane.b32.xlu1 %v3007_v16, %s3350_s27  ;;  %3003 = vrot.lane.b32.xlu0 %v3002_v18, %s3352_s10 }
  0xd1   : > { %499 = vrot.lane.b32.xlu1 %v493_v21, %s3350_s27  ;;  %541 = vrot.lane.b32.xlu0 %v534_v20, %s3351_s5 }
  0xd5   : > { %543 = vrot.lane.b32.xlu1 %v535_v23, %s3351_s5  ;;  %539 = vrot.lane.b32.xlu0 %v533_v24, %s3351_s5 }
  0xd9   : > { %659 = vperm.xlu1 %3012, %v655_v25   ;;  %664 = vperm.xlu0 %3013, %v656_v26  }
  0xdd   : > { %3014 = vset.pattern.permute.xlu1 %v3360_v30  ;;  %707 = vrot.lane.b32.xlu0 %v702_v28, %s3351_s5 }
  0xde   : > { %672 = vperm.xlu1 %3014, %v655_v25  }
  0xe1   : > { %767 = vrot.lane.b32.xlu0 %v762_v31, %s3350_s27 }
  0xe2   : > { %676 = vperm.xlu1 %3014, %v656_v26  }
  0xe5   : > { %827 = vrot.lane.b32.xlu0 %v822_v33, %s3352_s10 }
  0xe6   : > { %709 = vrot.lane.b32.xlu1 %v706_v36, %s3351_s5 }
  0xe9   : > { %887 = vrot.lane.b32.xlu0 %v882_v38, %s3353_s13 }
  0xea   : > { %769 = vrot.lane.b32.xlu1 %v766_v39, %s3350_s27 }
  0xed   : > { %955 = vrot.lane.b32.xlu0 %v950_v41, %s3354_s22 }
  0xee   : > { %829 = vrot.lane.b32.xlu1 %v826_v42, %s3352_s10 }
  0xf1   : > { %1015 = vrot.lane.b32.xlu0 %v1010_v44, %s3355_s29 }
  0xf2   : > { %889 = vrot.lane.b32.xlu1 %v886_v45, %s3353_s13 }
  0xf5   : > { %1075 = vrot.lane.b32.xlu0 %v1070_v47, %s3356_s7 }
  0xf6   : > { %957 = vrot.lane.b32.xlu1 %v954_v48, %s3354_s22 }
  0xf9   : > { %1135 = vrot.lane.b32.xlu0 %v1130_v50, %s3357_s8 }
  0xfa   : > { %1017 = vrot.lane.b32.xlu1 %v1014_v51, %s3355_s29  ;;  %v552_v51 = vld [vmem:[#allocation4 + $0x10] sm:$0xff] }
  0xfe   : > { %1077 = vrot.lane.b32.xlu1 %v1074_v52, %s3356_s7 }
 0x102   : > { %1137 = vrot.lane.b32.xlu1 %v1134_v53, %s3357_s8 }
 0x123   : > { %v249_v54 = vpop.permute.xlu0 %248  ;;  %v291_v55 = vpop.permute.xlu1 %290 }
 0x12b   : > { %v333_v56 = vpop.permute.xlu0 %332 }
 0x12f   : > { %v375_v57 = vpop.permute.xlu1 %374  ;;  %v2979_v58 = vpop.permute.xlu0 %2978 }
 0x130   : > { %v2981_v59 = vunpack.i.h.bf16 %v2979_v58  ;;  %v2980_v60 = vunpack.i.l.bf16 %v2979_v58 }
 0x132   : > { %v256_v1 = vsel %vm254_vm7, %v2980_v60, %v2981_v59  ;;  %v255_v4 = vsel %vm254_vm7, %v249_v54, %v2980_v60 }
 0x133   : > { %v2984_v61 = vpop.permute.xlu1 %2983  ;;  %v2989_v62 = vpop.permute.xlu0 %2988 }
 0x134   : > { %v2986_v63 = vunpack.i.h.bf16 %v2984_v61  ;;  %v2985_v0 = vunpack.i.l.bf16 %v2984_v61  ;;  %v2991_v5 = vunpack.i.h.bf16 %v2989_v62  ;;  %v2990_v6 = vunpack.i.l.bf16 %v2989_v62 }
 0x136   : > { %v298_v7 = vsel %vm296_vm6, %v2985_v0, %v2986_v63  ;;  %v297_v8 = vsel %vm296_vm6, %v291_v55, %v2985_v0  ;;  %v340_v15 = vsel %vm338_vm5, %v2990_v6, %v2991_v5  ;;  %v339_v17 = vsel %vm338_vm5, %v333_v56, %v2990_v6 }
 0x137   : > { %v2994_v9 = vpop.permute.xlu1 %2993  ;;  %v460_v10 = vpop.permute.xlu0 %459  ;;  %v2812_v11 = vpack.c.bf16 %v298_v7, %v256_v1  ;;  %v2814_v12 = vpack.c.bf16 %v297_v8, %v255_v4 }
 0x138   : > { %v2996_v13 = vunpack.i.h.bf16 %v2994_v9  ;;  %v2995_v14 = vunpack.i.l.bf16 %v2994_v9 }
 0x139   : > { %2813 = vmatprep.subr.bf16.mxu0 %v2812_v11 }
 0x13a   : > { %2815 = vmatpush1.bf16.msra.mxu0 %v2814_v12  ;;  %v382_v16 = vsel %vm380_vm4, %v2995_v14, %v2996_v13  ;;  %v381_v18 = vsel %vm380_vm4, %v375_v57, %v2995_v14 }
 0x13b   : > { %v420_v20 = vpop.permute.xlu1 %419  ;;  %v2999_v21 = vpop.permute.xlu0 %2998  ;;  %v2816_v23 = vpack.c.bf16 %v382_v16, %v340_v15  ;;  %v2818_v24 = vpack.c.bf16 %v381_v18, %v339_v17 }
 0x13c   : > { %v3001_v25 = vunpack.i.h.bf16 %v2999_v21  ;;  %v3000_v26 = vunpack.i.l.bf16 %v2999_v21 }
 0x13d   : > { %2817 = vmatprep.subr.bf16.mxu0 %v2816_v23 }
 0x13e   : > { %2819 = vmatpush1.bf16.msra.mxu0 %v2818_v24  ;;  %v426_v27 = vsel %vm363_vm3, %v3000_v26, %v3001_v25  ;;  %v425_v28 = vsel %vm363_vm3, %v420_v20, %v3000_v26 }
 0x13f   : > { %v3009_v29 = vpop.permute.xlu1 %3008  ;;  %v3004_v31 = vpop.permute.xlu0 %3003  ;;  %v2820_v32 = vpack.c.bf16 %v426_v27, %v3541_v35  ;;  %v2822_v33 = vpack.c.bf16 %v425_v28, %v3539_v34 }
 0x140   : > { %v3011_v36 = vunpack.i.h.bf16 %v3009_v29  ;;  %v3010_v37 = vunpack.i.l.bf16 %v3009_v29  ;;  %v3006_v38 = vunpack.i.h.bf16 %v3004_v31  ;;  %v3005_v39 = vunpack.i.l.bf16 %v3004_v31 }
 0x141   : > { %2821 = vmatprep.subr.bf16.mxu0 %v2820_v32 }
 0x142   : > { %2823 = vmatpush1.bf16.msra.mxu0 %v2822_v33  ;;  %v466_v40 = vsel %vm321_vm2, %v3005_v39, %v3006_v38  ;;  %v506_v41 = vsel %vm279_vm1, %v3010_v37, %v3011_v36  ;;  %v465_v45 = vsel %vm321_vm2, %v460_v10, %v3005_v39 }
 0x143   : > { %v500_v42 = vpop.permute.xlu1 %499  ;;  %v542_v43 = vpop.permute.xlu0 %541  ;;  %v2824_v44 = vpack.c.bf16 %v506_v41, %v466_v40 }
 0x144   : > { %v505_v46 = vsel %vm279_vm1, %v500_v42, %v3010_v37 }
 0x145   : > { %v2826_v35 = vpack.c.bf16 %v505_v46, %v465_v45  ;;  %2825 = vmatprep.subr.bf16.mxu0 %v2824_v44 }
 0x147   : > { %v544_v34 = vpop.permute.xlu1 %543  ;;  %v540_v47 = vpop.permute.xlu0 %539  ;;  %2827 = vmatpush1.bf16.msra.mxu0 %v2826_v35 }
 0x148   : > { %v546_v48 = vsel %vm237_vm0, %v542_v43, %v544_v34  ;;  %v545_v50 = vsel %vm237_vm0, %v540_v47, %v542_v43 }
 0x149   : > { %594 = vmatprep.subr.mxu0 %v546_v48 }
 0x14b   : > { %595 = vmatpush1.msra.mxu0 %v545_v50 }
 0x14c   : > { %2762 = vmatmul.mubr.msk.f32.vlgmr.msra.gmra.mrb[0].mxu0 %vm571_vm8, %v551_v49 }
 0x14d   : > { %648 = vmatprep.mubr.f32.mxu0 %v3358_v19 }
 0x150   : > { %2763 = vmatmul.mubr.msk.f32.gmra.mrb[2].mxu0 %vm571_vm8, %v552_v51 }
 0x151   : > { %1714 = vmatprep.mubr.f32.mxu0 %v3358_v19 }
 0x158   : > { %v665_v52 = vpop.permute.xlu0 %664  ;;  %v660_v62 = vpop.permute.xlu1 %659 }
 0x15c   : > { %v708_v53 = vpop.permute.xlu0 %707 }
 0x15d   : > { %v715_v55 = vmul.f32 0.0, %v708_v53  ;;  %v673_v63 = vpop.permute.xlu1 %672 }
 0x15f   : > { %v3015_v58 = vpack.i.bf16 %v715_v55, %v715_v55 }
 0x160   : > { %v768_v54 = vpop.permute.xlu0 %767 }
 0x161   : > { %v775_v56 = vmul.f32 0.0, %v768_v54  ;;  %3016 = vrot.lane.b32.xlu0 %v3015_v58, %s3357_s8  ;;  %v677_v0 = vpop.permute.xlu1 %676 }
 0x163   : > { %v3020_v60 = vpack.i.bf16 %v775_v56, %v775_v56 }
 0x164   : > { %v828_v57 = vpop.permute.xlu0 %827 }
 0x165   : > { %v835_v59 = vmul.f32 0.0, %v828_v57  ;;  %3021 = vrot.lane.b32.xlu1 %v3020_v60, %s3356_s7  ;;  %v710_v1 = vpop.permute.xlu1 %709 }
 0x166   : > { %v711_v27 = vsel %vm237_vm0, %v708_v53, %v710_v1 }
 0x167   : > { %v3025_v61 = vpack.i.bf16 %v835_v59, %v835_v59 }
 0x168   : > { %v3673_v4 = vpop.permute.xlu0 %887 }
 0x169   : > { %3026 = vrot.lane.b32.xlu0 %v3025_v61, %s3355_s29  ;;  %v770_v5 = vpop.permute.xlu1 %769 }
 0x16a   : > { %v771_v16 = vsel %vm279_vm1, %v768_v54, %v770_v5 }
 0x16c   : > { %v956_v6 = vpop.permute.xlu0 %955 }
 0x16d   : > { %v830_v7 = vpop.permute.xlu1 %829 }
 0x16e   : > { %v831_v23 = vsel %vm321_vm2, %v828_v57, %v830_v7 }
 0x170   : > { %v3675_v11 = vpop.permute.xlu0 %1015 }
 0x171   : > { %v890_v17 = vpop.permute.xlu1 %889 }
 0x172   : > { %v891_v24 = vsel %vm363_vm3, %v3673_v4, %v890_v17 }
 0x174   : > { %v3687_v31 = vpop.permute.xlu0 %1075 }
 0x175   : > { %v958_v53 = vpop.permute.xlu1 %957 }
 0x176   : > { %v959_v58 = vsel %vm380_vm4, %v956_v6, %v958_v53 }
 0x178   : > { %v1136_v54 = vpop.permute.xlu0 %1135 }
 0x21f   : > { %v644_v8 = vpop.f32.mrb[0].mxu0 }
 0x220   : > { %v667_v9 = vmul.f32 %v660_v62, %v644_v8  ;;  %v646_v10 = vpop.f32.mrb[1].mxu0 }
 0x221   : > { %v668_v12 = vmul.f32 %v660_v62, %v646_v10 }
 0x222   : > { %v679_v13 = vadd.f32 %v673_v63, %v667_v9 }
 0x223   : > { %v680_v14 = vadd.f32 %v673_v63, %v668_v12  ;;  %v650_v15 = vpop.f32.mrb[2].mxu0  ;;  %v1018_v12 = vpop.permute.xlu1 %1017 }
 0x224   : > { %v3678_v18 = vmax.f32 %v679_v13, 0.0  ;;  %v669_v20 = vmul.f32 %v665_v52, %v650_v15  ;;  %v652_v21 = vpop.f32.mrb[3].mxu0 }
 0x225   : > { %v3683_v25 = vmax.f32 %v680_v14, 0.0  ;;  %v670_v26 = vmul.f32 %v665_v52, %v652_v21 }
 0x226   : > { %v681_v28 = vadd.f32 %v677_v0, %v669_v20  ;;  %v776_v29 = vmul.f32 %v771_v16, %v3678_v18  ;;  %v716_v36 = vmul.f32 %v711_v27, %v3678_v18  ;;  %v836_v39 = vmul.f32 %v831_v23, %v3678_v18 }
 0x227   : > { %v682_v32 = vadd.f32 %v677_v0, %v670_v26  ;;  %v777_v33 = vmul.f32 %v770_v5, %v3683_v25  ;;  %v717_v37 = vmul.f32 %v710_v1, %v3683_v25  ;;  %v837_v40 = vmul.f32 %v830_v7, %v3683_v25  ;;  %v1078_v26 = vpop.permute.xlu1 %1077 }
 0x228   : > { %v3692_v38 = vmax.f32 %v681_v28, 0.0  ;;  %v896_v41 = vmul.f32 %v891_v24, %v3678_v18  ;;  %v897_v45 = vmul.f32 %v890_v17, %v3683_v25  ;;  %v963_v60 = vmul.f32 %v956_v6, %v3678_v18 }
 0x229   : > { %v3697_v42 = vmax.f32 %v682_v32, 0.0  ;;  %v3035_v43 = vpack.i.bf16 %v777_v33, %v776_v29  ;;  %v3030_v44 = vpack.i.bf16 %v717_v37, %v716_v36  ;;  %v3040_v46 = vpack.i.bf16 %v837_v40, %v836_v39 }
 0x22a   : > { %v719_v35 = vmul.f32 %v711_v27, %v3692_v38  ;;  %v779_v34 = vmul.f32 %v771_v16, %v3692_v38  ;;  %v3050_v49 = vpack.i.bf16 %v897_v45, %v896_v41  ;;  %v839_v50 = vmul.f32 %v831_v23, %v3692_v38 }
 0x22b   : > { %3036 = vrot.lane.b32.xlu1 %v3035_v43, %s3356_s7  ;;  %3031 = vrot.lane.b32.xlu0 %v3030_v44, %s3357_s8  ;;  %v720_v47 = vmul.f32 %v710_v1, %v3697_v42  ;;  %v780_v48 = vmul.f32 %v770_v5, %v3697_v42  ;;  %v840_v51 = vmul.f32 %v830_v7, %v3697_v42  ;;  %v965_v0 = vmul.f32 0.0, %v958_v53  ;;  %v1138_v40 = vpop.permute.xlu1 %1137 }
 0x22c   : > { %v899_v52 = vmul.f32 %v891_v24, %v3692_v38  ;;  %v900_v57 = vmul.f32 %v890_v17, %v3697_v42  ;;  %v966_v61 = vmul.f32 %v956_v6, %v3692_v38  ;;  %v3714_v62 = vmul.f32 %v1136_v54, %v3692_v38 }
 0x22d   : > { %v3045_v55 = vpack.i.bf16 %v720_v47, %v719_v35  ;;  %v3055_v56 = vpack.i.bf16 %v780_v48, %v779_v34  ;;  %v3060_v59 = vpack.i.bf16 %v840_v51, %v839_v50  ;;  %v1083_v1 = vmul.f32 %v3687_v31, %v3678_v18  ;;  %v1181_v34 = vld [vmem:[#allocation4 + $0x28] sm:$0xff] }
 0x22e   : > { %v3075_v63 = vpack.i.bf16 %v900_v57, %v899_v52  ;;  %v1143_v5 = vmul.f32 %v1136_v54, %v3678_v18  ;;  %v3080_v7 = vpack.i.bf16 %v966_v61, %v963_v60  ;;  %v964_v8 = vmul.f32 %v959_v58, %v3683_v25  ;;  %2772 = vmatprep.mubr.msk.f32.mxu1 %vm296_vm6, %v1181_v34  ;;  %v2774_v50 = vld [vmem:[%s4253_s3 + $0x2] ss:$8 sm:$0x3]  ;;  %v2775_v51 = vld [vmem:[%s4253_s3 + $0x3] ss:$8 sm:$0x3] }
 0x22f   : > { %3041 = vrot.lane.b32.xlu0 %v3040_v46, %s3355_s29  ;;  %3046 = vrot.lane.b32.xlu1 %v3045_v55, %s3357_s8  ;;  %v1023_v6 = vmul.f32 %v3675_v11, %v3678_v18  ;;  %v1026_v9 = vmul.f32 %v3675_v11, %v3692_v38  ;;  %v1086_v10 = vmul.f32 %v3687_v31, %v3692_v38  ;;  %v895_v17 = vmul.f32 0.0, %v3673_v4  ;;  %v2776_v55 = vld [vmem:[%s4253_s3 + $0x4] ss:$8 sm:$0x3] }
 0x230   : > { %v3130_v15 = vpack.i.bf16 %v3714_v62, %v1143_v5  ;;  %v2844_v16 = vpack.c.bf16 %v3697_v42, %v3683_v25  ;;  %v3070_v20 = vpack.i.bf16 %v965_v0, %v964_v8  ;;  %v2846_v21 = vpack.c.bf16 %v3692_v38, %v3678_v18  ;;  %v2778_v61 = vld [vmem:[%s4253_s3 + $0x7] ss:$8 sm:$0x3] }
 0x231   : > { %v3095_v13 = vpack.i.bf16 %v1026_v9, %v1023_v6  ;;  %v3110_v14 = vpack.i.bf16 %v1086_v10, %v1083_v1  ;;  %v1019_v23 = vsel %vm338_vm5, %v3675_v11, %v1018_v12  ;;  %v1025_v24 = vmul.f32 0.0, %v1018_v12  ;;  %v2781_v9 = vld [vmem:[%s4253_s3 + $0x12] ss:$8 sm:$0x3] }
 0x232   : > { %v3065_v27 = vpack.i.bf16 %v895_v17, %v895_v17  ;;  %v1024_v28 = vmul.f32 %v1019_v23, %v3683_v25  ;;  %v1079_v29 = vsel %vm296_vm6, %v3687_v31, %v1078_v26  ;;  %v1085_v4 = vmul.f32 0.0, %v1078_v26 }
 0x233   : > { %3056 = vrot.lane.b32.xlu0 %v3055_v56, %s3356_s7  ;;  %3051 = vrot.lane.b32.xlu1 %v3050_v49, %s3354_s22  ;;  %v1084_v11 = vmul.f32 %v1079_v29, %v3683_v25  ;;  %v967_v33 = vmul.f32 %v959_v58, %v3697_v42  ;;  %v1027_v39 = vmul.f32 %v1019_v23, %v3697_v42  ;;  %v1145_v44 = vmul.f32 0.0, %v1138_v40  ;;  %v2773_v49 = vld [vmem:[%s4252_s2 + $0x10] sm:$0xff]  ;;  %v2777_v58 = vld [vmem:[%s4253_s3 + $0x5] ss:$8 sm:$0x3] }
 0x234   : > { %v3085_v32 = vpack.i.bf16 %v1025_v24, %v1024_v28  ;;  %v1087_v41 = vmul.f32 %v1079_v29, %v3697_v42  ;;  %v1139_v43 = vsel %vm254_vm7, %v1136_v54, %v1138_v40  ;;  %v1319_v52 = vrot.slane %v2774_v50, %v3472_v2 }
 0x235   : > { %v3100_v36 = vpack.i.bf16 %v1085_v4, %v1084_v11  ;;  %v3090_v37 = vpack.i.bf16 %v965_v0, %v967_v33  ;;  %v3105_v31 = vpack.i.bf16 %v1025_v24, %v1027_v39  ;;  %v1147_v46 = vmul.f32 %v1139_v43, %v3697_v42  ;;  %v2779_v0 = vld [vmem:[%s4253_s3 + $0x10] ss:$8 sm:$0x3] }
 0x236   : > { %v3115_v45 = vpack.i.bf16 %v1085_v4, %v1087_v41  ;;  %v1144_v35 = vmul.f32 %v1139_v43, %v3683_v25  ;;  %v1323_v53 = vrot.slane %v2774_v50, %v3474_v3  ;;  %v1358_v54 = vrot.slane %v2775_v51, %v3472_v2 }
 0x237   : > { %3071 = vrot.lane.b32.xlu0 %v3070_v20, %s3353_s13  ;;  %3061 = vrot.lane.b32.xlu1 %v3060_v59, %s3355_s29  ;;  %v3125_v47 = vpack.i.bf16 %v1145_v44, %v1147_v46  ;;  %v1362_v56 = vrot.slane %v2775_v51, %v3474_v3  ;;  %v1397_v57 = vrot.slane %v2776_v55, %v3472_v2 }
 0x238   : > { %v3120_v48 = vpack.i.bf16 %v1145_v44, %v1144_v35  ;;  %v1401_v59 = vrot.slane %v2776_v55, %v3474_v3  ;;  %v1436_v60 = vrot.slane %v2777_v58, %v3472_v2  ;;  %v1440_v62 = vrot.slane %v2777_v58, %v3474_v3 }
 0x239   : > { %v1483_v1 = vrot.slane %v2778_v61, %v3474_v3  ;;  %v1518_v5 = vrot.slane %v2779_v0, %v3472_v2  ;;  %v1522_v8 = vrot.slane %v2779_v0, %v3474_v3  ;;  %v1596_v12 = vrot.slane %v2781_v9, %v3472_v2 }
 0x23b   : > { %3076 = vrot.lane.b32.xlu0 %v3075_v63, %s3354_s22  ;;  %3066 = vrot.lane.b32.xlu1 %v3065_v27, %s3354_s22  ;;  %v1479_v63 = vrot.slane %v2778_v61, %v3472_v2 }
 0x23f   : > { %3081 = vrot.lane.b32.xlu0 %v3080_v7, %s3353_s13  ;;  %3086 = vrot.lane.b32.xlu1 %v3085_v32, %s3352_s10  ;;  %v2780_v7 = vld [vmem:[%s4253_s3 + $0x11] ss:$8 sm:$0x3] }
 0x240   : > { %v1557_v6 = vrot.slane %v2780_v7, %v3472_v2  ;;  %v1561_v10 = vrot.slane %v2780_v7, %v3474_v3 }
 0x243   : > { %3101 = vrot.lane.b32.xlu0 %v3100_v36, %s3350_s27  ;;  %3091 = vrot.lane.b32.xlu1 %v3090_v37, %s3353_s13 }
 0x247   : > { %3106 = vrot.lane.b32.xlu0 %v3105_v31, %s3352_s10  ;;  %3096 = vrot.lane.b32.xlu1 %v3095_v13, %s3352_s10  ;;  %v1600_v13 = vrot.slane %v2781_v9, %v3474_v3 }
 0x24b   : > { %3111 = vrot.lane.b32.xlu0 %v3110_v14, %s3350_s27  ;;  %3116 = vrot.lane.b32.xlu1 %v3115_v45, %s3350_s27  ;;  %v3017_v14 = vpop.permute.xlu0 %3016 }
 0x24c   : > { %v3019_v29 = vunpack.i.h.bf16 %v3017_v14  ;;  %v3018_v4 = vunpack.i.l.bf16 %v3017_v14 }
 0x24f   : > { %3126 = vrot.lane.b32.xlu0 %v3125_v47, %s3351_s5  ;;  %3121 = vrot.lane.b32.xlu1 %v3120_v48, %s3351_s5  ;;  %v3027_v17 = vpop.permute.xlu0 %3026 }
 0x253   : > { %1296 = vperm.xlu0 %3013, %v2773_v49   ;;  %3131 = vrot.lane.b32.xlu1 %v3130_v15, %s3351_s5  ;;  %v3022_v15 = vpop.permute.xlu1 %3021 }
 0x254   : > { %v3024_v46 = vunpack.i.h.bf16 %v3022_v15  ;;  %v3023_v35 = vunpack.i.l.bf16 %v3022_v15 }
 0x257   : > { %1302 = vperm.xlu1 %3014, %v2773_v49   ;;  %3171 = vset.pattern.permute.xlu0 %v3360_v30 }
 0x258   : > { %1324 = vrot.lane.b32.xlu0 %v1319_v52, %s3351_s5 }
 0x25b   : > { %1326 = vrot.lane.b32.xlu1 %v1323_v53, %s3351_s5 }
 0x25c   : > { %3170 = vset.pattern.permute.xlu1 %v3359_v22  ;;  %1363 = vrot.lane.b32.xlu0 %v1358_v54, %s3350_s27  ;;  %v3028_v54 = vunpack.i.l.bf16 %v3027_v17 }
 0x25f   : > { %1365 = vrot.lane.b32.xlu1 %v1362_v56, %s3350_s27 }
 0x260   : > { %1402 = vrot.lane.b32.xlu0 %v1397_v57, %s3352_s10 }
 0x263   : > { %1404 = vrot.lane.b32.xlu1 %v1401_v59, %s3352_s10  ;;  %v3029_v59 = vunpack.i.h.bf16 %v3027_v17 }
 0x264   : > { %1441 = vrot.lane.b32.xlu0 %v1436_v60, %s3353_s13 }
 0x267   : > { %1443 = vrot.lane.b32.xlu1 %v1440_v62, %s3353_s13 }
 0x268   : > { %1484 = vrot.lane.b32.xlu0 %v1479_v63, %s3354_s22 }
 0x26b   : > { %1486 = vrot.lane.b32.xlu1 %v1483_v1, %s3354_s22 }
 0x26c   : > { %1523 = vrot.lane.b32.xlu0 %v1518_v5, %s3355_s29 }
 0x26f   : > { %1525 = vrot.lane.b32.xlu1 %v1522_v8, %s3355_s29 }
 0x270   : > { %1562 = vrot.lane.b32.xlu0 %v1557_v6, %s3356_s7 }
 0x273   : > { %1564 = vrot.lane.b32.xlu1 %v1561_v10, %s3356_s7 }
 0x274   : > { %1601 = vrot.lane.b32.xlu0 %v1596_v12, %s3357_s8 }
 0x277   : > { %1603 = vrot.lane.b32.xlu1 %v1600_v13, %s3357_s8 }
 0x29d   : > { %v3037_v20 = vpop.permute.xlu1 %3036  ;;  %v3032_v23 = vpop.permute.xlu0 %3031 }
 0x29e   : > { %v3034_v24 = vunpack.i.h.bf16 %v3032_v23  ;;  %v3033_v26 = vunpack.i.l.bf16 %v3032_v23  ;;  %v3039_v33 = vunpack.i.h.bf16 %v3037_v20  ;;  %v3038_v36 = vunpack.i.l.bf16 %v3037_v20 }
 0x2a0   : > { %v740_v37 = vsel %vm254_vm7, %v3033_v26, %v3034_v24  ;;  %v739_v40 = vsel %vm254_vm7, %v3018_v4, %v3033_v26  ;;  %v800_v50 = vsel %vm296_vm6, %v3038_v36, %v3039_v33  ;;  %v799_v52 = vsel %vm296_vm6, %v3023_v35, %v3038_v36 }
 0x2a1   : > { %v3042_v27 = vpop.permute.xlu0 %3041  ;;  %v3047_v28 = vpop.permute.xlu1 %3046 }
 0x2a2   : > { %v3049_v32 = vunpack.i.h.bf16 %v3047_v28  ;;  %v3048_v11 = vunpack.i.l.bf16 %v3047_v28  ;;  %v3044_v48 = vunpack.i.h.bf16 %v3042_v27  ;;  %v3043_v49 = vunpack.i.l.bf16 %v3042_v27 }
 0x2a4   : > { %v742_v39 = vsel %vm254_vm7, %v3048_v11, %v3049_v32  ;;  %v741_v31 = vsel %vm254_vm7, %v3019_v29, %v3048_v11  ;;  %v860_v62 = vsel %vm338_vm5, %v3043_v49, %v3044_v48  ;;  %v859_v63 = vsel %vm338_vm5, %v3028_v54, %v3043_v49 }
 0x2a5   : > { %v3057_v41 = vpop.permute.xlu0 %3056  ;;  %v3052_v43 = vpop.permute.xlu1 %3051  ;;  %v2828_v44 = vpack.c.bf16 %v742_v39, %v740_v37  ;;  %v2830_v45 = vpack.c.bf16 %v741_v31, %v739_v40 }
 0x2a6   : > { %v3059_v34 = vunpack.i.h.bf16 %v3057_v41  ;;  %v3058_v47 = vunpack.i.l.bf16 %v3057_v41  ;;  %v3054_v0 = vunpack.i.h.bf16 %v3052_v43  ;;  %v3053_v1 = vunpack.i.l.bf16 %v3052_v43 }
 0x2a7   : > { %2829 = vmatprep.subr.bf16.mxu1 %v2828_v44 }
 0x2a8   : > { %2831 = vmatpush1.bf16.msra.mxu1 %v2830_v45  ;;  %v802_v51 = vsel %vm296_vm6, %v3058_v47, %v3059_v34  ;;  %v801_v53 = vsel %vm296_vm6, %v3024_v46, %v3058_v47  ;;  %v920_v17 = vsel %vm380_vm4, %v3053_v1, %v3054_v0 }
 0x2a9   : > { %v3072_v55 = vpop.permute.xlu0 %3071  ;;  %v3062_v56 = vpop.permute.xlu1 %3061  ;;  %v2832_v57 = vpack.c.bf16 %v802_v51, %v800_v50  ;;  %v2834_v58 = vpack.c.bf16 %v801_v53, %v799_v52 }
 0x2aa   : > { %v3064_v60 = vunpack.i.h.bf16 %v3062_v56  ;;  %v3063_v61 = vunpack.i.l.bf16 %v3062_v56  ;;  %v3074_v4 = vunpack.i.h.bf16 %v3072_v55  ;;  %v3073_v32 = vunpack.i.l.bf16 %v3072_v55 }
 0x2ab   : > { %2833 = vmatprep.subr.bf16.mxu1 %v2832_v57 }
 0x2ac   : > { %2835 = vmatpush1.bf16.msra.mxu1 %v2834_v58  ;;  %v862_v5 = vsel %vm338_vm5, %v3063_v61, %v3064_v60  ;;  %v861_v7 = vsel %vm338_vm5, %v3029_v59, %v3063_v61  ;;  %v988_v43 = vsel %vm363_vm3, %v3073_v32, %v3074_v4 }
 0x2ad   : > { %v3077_v8 = vpop.permute.xlu0 %3076  ;;  %v3067_v6 = vpop.permute.xlu1 %3066  ;;  %v2836_v9 = vpack.c.bf16 %v862_v5, %v860_v62  ;;  %v2838_v10 = vpack.c.bf16 %v861_v7, %v859_v63 }
 0x2ae   : > { %v3079_v12 = vunpack.i.h.bf16 %v3077_v8  ;;  %v3078_v13 = vunpack.i.l.bf16 %v3077_v8  ;;  %v3069_v14 = vunpack.i.h.bf16 %v3067_v6  ;;  %v3068_v15 = vunpack.i.l.bf16 %v3067_v6 }
 0x2af   : > { %2837 = vmatprep.subr.bf16.mxu1 %v2836_v9 }
 0x2b0   : > { %2839 = vmatpush1.bf16.msra.mxu1 %v2838_v10  ;;  %v922_v20 = vsel %vm380_vm4, %v3078_v13, %v3079_v12  ;;  %v919_v23 = vsel %vm380_vm4, %v3068_v15, %v3053_v1  ;;  %v921_v24 = vsel %vm380_vm4, %v3069_v14, %v3078_v13 }
 0x2b1   : > { %v3082_v26 = vpop.permute.xlu0 %3081  ;;  %v3087_v27 = vpop.permute.xlu1 %3086  ;;  %v2840_v28 = vpack.c.bf16 %v922_v20, %v920_v17  ;;  %v2842_v29 = vpack.c.bf16 %v921_v24, %v919_v23 }
 0x2b2   : > { %v3083_v11 = vunpack.i.l.bf16 %v3082_v26  ;;  %v3084_v37 = vunpack.i.h.bf16 %v3082_v26  ;;  %v3089_v31 = vunpack.i.h.bf16 %v3087_v27  ;;  %v3088_v41 = vunpack.i.l.bf16 %v3087_v27 }
 0x2b3   : > { %2841 = vmatprep.subr.bf16.mxu1 %v2840_v28  ;;  %v1180_v28 = vld [vmem:[#allocation4 + $0x20] sm:$0xff] }
 0x2b4   : > { %2843 = vmatpush1.bf16.msra.mxu1 %v2842_v29  ;;  %v987_v45 = vsel %vm363_vm3, %v3083_v11, %v3073_v32  ;;  %v1048_v18 = vsel %vm321_vm2, %v3088_v41, %v3089_v31 }
 0x2b5   : > { %v3102_v33 = vpop.permute.xlu0 %3101  ;;  %v3092_v36 = vpop.permute.xlu1 %3091  ;;  %2845 = vmatprep.subr.bf16.mxu1 %v2844_v16 }
 0x2b6   : > { %v3094_v39 = vunpack.i.h.bf16 %v3092_v36  ;;  %v3093_v40 = vunpack.i.l.bf16 %v3092_v36  ;;  %v3104_v50 = vunpack.i.h.bf16 %v3102_v33  ;;  %v3103_v38 = vunpack.i.l.bf16 %v3102_v33 }
 0x2b8   : > { %2847 = vmatpush1.bf16.msra.mxu1 %v2846_v21  ;;  %v990_v44 = vsel %vm363_vm3, %v3093_v40, %v3094_v39  ;;  %v989_v46 = vsel %vm363_vm3, %v3084_v37, %v3093_v40  ;;  %v1108_v61 = vsel %vm279_vm1, %v3103_v38, %v3104_v50 }
 0x2b9   : > { %v3107_v35 = vpop.permute.xlu0 %3106  ;;  %v3097_v25 = vpop.permute.xlu1 %3096  ;;  %v2848_v42 = vpack.c.bf16 %v990_v44, %v988_v43  ;;  %v2850_v16 = vpack.c.bf16 %v989_v46, %v987_v45 }
 0x2ba   : > { %v3109_v34 = vunpack.i.h.bf16 %v3107_v35  ;;  %v3108_v47 = vunpack.i.l.bf16 %v3107_v35  ;;  %v3099_v48 = vunpack.i.h.bf16 %v3097_v25  ;;  %v3098_v49 = vunpack.i.l.bf16 %v3097_v25 }
 0x2bb   : > { %2849 = vmatprep.subr.bf16.mxu1 %v2848_v42 }
 0x2bc   : > { %2851 = vmatpush1.bf16.msra.mxu1 %v2850_v16  ;;  %v1050_v21 = vsel %vm321_vm2, %v3108_v47, %v3109_v34  ;;  %v1047_v51 = vsel %vm321_vm2, %v3098_v49, %v3088_v41  ;;  %v1049_v52 = vsel %vm321_vm2, %v3099_v48, %v3108_v47 }
 0x2bd   : > { %v3112_v53 = vpop.permute.xlu0 %3111  ;;  %v3117_v54 = vpop.permute.xlu1 %3116  ;;  %v2852_v55 = vpack.c.bf16 %v1050_v21, %v1048_v18  ;;  %v2854_v56 = vpack.c.bf16 %v1049_v52, %v1047_v51 }
 0x2be   : > { %v3114_v57 = vunpack.i.h.bf16 %v3112_v53  ;;  %v3113_v58 = vunpack.i.l.bf16 %v3112_v53  ;;  %v3119_v59 = vunpack.i.h.bf16 %v3117_v54  ;;  %v3118_v60 = vunpack.i.l.bf16 %v3117_v54 }
 0x2bf   : > { %2853 = vmatprep.subr.bf16.mxu1 %v2852_v55 }
 0x2c0   : > { %2855 = vmatpush1.bf16.msra.mxu1 %v2854_v56  ;;  %v1110_v62 = vsel %vm279_vm1, %v3118_v60, %v3119_v59  ;;  %v1107_v63 = vsel %vm279_vm1, %v3113_v58, %v3103_v38  ;;  %v1109_v0 = vsel %vm279_vm1, %v3114_v57, %v3118_v60 }
 0x2c1   : > { %v3127_v1 = vpop.permute.xlu0 %3126  ;;  %v3122_v5 = vpop.permute.xlu1 %3121  ;;  %v2856_v7 = vpack.c.bf16 %v1110_v62, %v1108_v61  ;;  %v2858_v8 = vpack.c.bf16 %v1109_v0, %v1107_v63 }
 0x2c2   : > { %v3129_v6 = vunpack.i.h.bf16 %v3127_v1  ;;  %v3128_v9 = vunpack.i.l.bf16 %v3127_v1  ;;  %v3124_v10 = vunpack.i.h.bf16 %v3122_v5  ;;  %v3123_v12 = vunpack.i.l.bf16 %v3122_v5 }
 0x2c3   : > { %2857 = vmatprep.subr.bf16.mxu1 %v2856_v7 }
 0x2c4   : > { %2859 = vmatpush1.bf16.msra.mxu1 %v2858_v8  ;;  %v1168_v13 = vsel %vm237_vm0, %v3123_v12, %v3124_v10  ;;  %v1170_v14 = vsel %vm237_vm0, %v3128_v9, %v3129_v6 }
 0x2c5   : > { %v3132_v15 = vpop.permute.xlu1 %3131  ;;  %v2860_v17 = vpack.c.bf16 %v1170_v14, %v1168_v13 }
 0x2c6   : > { %v3134_v20 = vunpack.i.h.bf16 %v3132_v15  ;;  %v3133_v23 = vunpack.i.l.bf16 %v3132_v15 }
 0x2c7   : > { %2861 = vmatprep.subr.bf16.mxu1 %v2860_v17 }
 0x2c8   : > { %v1167_v24 = vsel %vm237_vm0, %v3133_v23, %v3123_v12  ;;  %v1169_v26 = vsel %vm237_vm0, %v3134_v20, %v3128_v9 }
 0x2c9   : > { %v2862_v27 = vpack.c.bf16 %v1169_v26, %v1167_v24 }
 0x2cb   : > { %2863 = vmatpush1.bf16.msra.mxu1 %v2862_v27 }
 0x2ce   : > { %1286 = vmatmul.mubr.f32.vlgmr.msra.gmra.mrb[0].mxu1 %v1180_v28 }
 0x2cf   : > { %2572 = vmatprep.mubr.f32.mxu1 %v3358_v19 }
 0x2d2   : > { %v1297_v29 = vpop.permute.xlu0 %1296 }
 0x2d6   : > { %v1325_v4 = vpop.permute.xlu0 %1324  ;;  %v1303_v31 = vpop.permute.xlu1 %1302 }
 0x2d7   : > { %v1332_v32 = vmul.f32 0.0, %v1325_v4 }
 0x2d9   : > { %1338 = vrot.lane.b32.xlu0 %v1332_v32, %s3357_s8 }
 0x2da   : > { %v1364_v11 = vpop.permute.xlu0 %1363  ;;  %v1327_v41 = vpop.permute.xlu1 %1326 }
 0x2db   : > { %v1371_v33 = vmul.f32 0.0, %v1364_v11  ;;  %v1328_v50 = vsel %vm237_vm0, %v1325_v4, %v1327_v41 }
 0x2dd   : > { %1377 = vrot.lane.b32.xlu1 %v1371_v33, %s3356_s7 }
 0x2de   : > { %v1403_v36 = vpop.permute.xlu0 %1402  ;;  %v1366_v43 = vpop.permute.xlu1 %1365 }
 0x2df   : > { %v1410_v37 = vmul.f32 0.0, %v1403_v36  ;;  %v1367_v18 = vsel %vm279_vm1, %v1364_v11, %v1366_v43 }
 0x2e1   : > { %1416 = vrot.lane.b32.xlu0 %v1410_v37, %s3355_s29  ;;  %v2784_v37 = vld [vmem:[%s4253_s3 + $0x2] ss:$8 sm:$0x3] }
 0x2e2   : > { %v1442_v39 = vpop.permute.xlu0 %1441  ;;  %v1405_v44 = vpop.permute.xlu1 %1404 }
 0x2e3   : > { %v1449_v40 = vmul.f32 0.0, %v1442_v39  ;;  %v1406_v51 = vsel %vm321_vm2, %v1403_v36, %v1405_v44  ;;  %v2783_v36 = vld [vmem:[%s4252_s2 + $0x20] sm:$0xff] }
 0x2e5   : > { %1455 = vrot.lane.b32.xlu1 %v1449_v40, %s3354_s22  ;;  %v1748_v40 = vrot.slane %v2784_v37, %v3472_v2 }
 0x2e6   : > { %v1444_v45 = vpop.permute.xlu1 %1443  ;;  %v1485_v42 = vpop.permute.xlu0 %1484 }
 0x2e7   : > { %v1445_v38 = vsel %vm363_vm3, %v1442_v39, %v1444_v45 }
 0x2ea   : > { %v1487_v16 = vpop.permute.xlu1 %1486  ;;  %v1524_v54 = vpop.permute.xlu0 %1523 }
 0x2eb   : > { %v1488_v8 = vsel %vm380_vm4, %v1485_v42, %v1487_v16  ;;  %v1494_v9 = vmul.f32 0.0, %v1487_v16  ;;  %v2788_v16 = vld [vmem:[%s4253_s3 + $0x7] ss:$8 sm:$0x3] }
 0x2ee   : > { %v1526_v55 = vpop.permute.xlu1 %1525  ;;  %v1563_v0 = vpop.permute.xlu0 %1562 }
 0x2ef   : > { %v1527_v17 = vsel %vm338_vm5, %v1524_v54, %v1526_v55  ;;  %v1533_v20 = vmul.f32 0.0, %v1526_v55 }
 0x2f2   : > { %v1565_v1 = vpop.permute.xlu1 %1564  ;;  %v1602_v27 = vpop.permute.xlu0 %1601 }
 0x2f3   : > { %v1566_v6 = vsel %vm296_vm6, %v1563_v0, %v1565_v1  ;;  %v1572_v10 = vmul.f32 0.0, %v1565_v1 }
 0x2f6   : > { %v1604_v28 = vpop.permute.xlu1 %1603 }
 0x2f7   : > { %v1605_v32 = vsel %vm254_vm7, %v1602_v27, %v1604_v28  ;;  %v1611_v11 = vmul.f32 0.0, %v1604_v28 }
 0x3a1   : > { %v1287_v46 = vpop.f32.mrb[0].mxu1 }
 0x3a2   : > { %v1299_v35 = vmul.f32 %v1297_v29, %v1287_v46  ;;  %v1289_v25 = vpop.f32.mrb[1].mxu1 }
 0x3a3   : > { %v1300_v34 = vmul.f32 %v1297_v29, %v1289_v25 }
 0x3a4   : > { %v1305_v47 = vadd.f32 %v1303_v31, %v1299_v35  ;;  %v2787_v35 = vld [vmem:[%s4253_s3 + $0x5] ss:$8 sm:$0x3] }
 0x3a5   : > { %v1306_v48 = vadd.f32 %v1303_v31, %v1300_v34  ;;  %v2785_v31 = vld [vmem:[%s4253_s3 + $0x3] ss:$8 sm:$0x3]  ;;  %v1869_v34 = vrot.slane %v2787_v35, %v3474_v3 }
 0x3a6   : > { %v3868_v49 = vmax.f32 %v1305_v47, 0.0  ;;  %v1908_v47 = vrot.slane %v2788_v16, %v3472_v2 }
 0x3a7   : > { %v3873_v21 = vmax.f32 %v1306_v48, 0.0  ;;  %v2789_v48 = vld [vmem:[%s4253_s3 + $0x10] ss:$8 sm:$0x3] }
 0x3a8   : > { %v1372_v52 = vmul.f32 %v1367_v18, %v3868_v49  ;;  %v1333_v53 = vmul.f32 %v1328_v50, %v3868_v49  ;;  %v1450_v58 = vmul.f32 %v1445_v38, %v3868_v49  ;;  %v1411_v62 = vmul.f32 %v1406_v51, %v3868_v49  ;;  %v2790_v38 = vld [vmem:[%s4253_s3 + $0x11] ss:$8 sm:$0x3] }
 0x3a9   : > { %v1373_v56 = vmul.f32 %v1366_v43, %v3873_v21  ;;  %v1334_v57 = vmul.f32 %v1327_v41, %v3873_v21  ;;  %v1451_v59 = vmul.f32 %v1444_v45, %v3873_v21  ;;  %v1412_v63 = vmul.f32 %v1405_v44, %v3873_v21  ;;  %v2786_v44 = vld [vmem:[%s4253_s3 + $0x4] ss:$8 sm:$0x3] }
 0x3aa   : > { %v1571_v12 = vmul.f32 %v1566_v6, %v3873_v21  ;;  %v1492_v13 = vmul.f32 %v1485_v42, %v3868_v49  ;;  %v1531_v14 = vmul.f32 %v1524_v54, %v3868_v49  ;;  %v1493_v15 = vmul.f32 %v1488_v8, %v3873_v21 }
 0x3ab   : > { %v3140_v60 = vpack.i.bf16 %v1373_v56, %v1372_v52  ;;  %v3135_v61 = vpack.i.bf16 %v1334_v57, %v1333_v53  ;;  %v3150_v5 = vpack.i.bf16 %v1451_v59, %v1450_v58  ;;  %v3145_v7 = vpack.i.bf16 %v1412_v63, %v1411_v62  ;;  %v2791_v53 = vld [vmem:[%s4253_s3 + $0x12] ss:$8 sm:$0x3]  ;;  %v1378_v57 = vpop.permute.xlu1 %1377  ;;  %v1339_v58 = vpop.permute.xlu0 %1338 }
 0x3ac   : > { %v3165_v23 = vpack.i.bf16 %v1572_v10, %v1571_v12  ;;  %v3155_v24 = vpack.i.bf16 %v1494_v9, %v1493_v15  ;;  %v1532_v26 = vmul.f32 %v1527_v17, %v3873_v21  ;;  %v1570_v29 = vmul.f32 %v1563_v0, %v3868_v49 }
 0x3ad   : > { %3141 = vrot.lane.b32.xlu1 %v3140_v60, %s3356_s7  ;;  %3136 = vrot.lane.b32.xlu0 %v3135_v61, %s3357_s8  ;;  %v1610_v33 = vmul.f32 %v1605_v32, %v3873_v21  ;;  %v1609_v39 = vmul.f32 %v1602_v27, %v3868_v49  ;;  %v1752_v41 = vrot.slane %v2784_v37, %v3474_v3 }
 0x3ae   : > { %v3160_v4 = vpack.i.bf16 %v1533_v20, %v1532_v26  ;;  %v1787_v43 = vrot.slane %v2785_v31, %v3472_v2  ;;  %v1791_v45 = vrot.slane %v2785_v31, %v3474_v3  ;;  %v1826_v46 = vrot.slane %v2786_v44, %v3472_v2 }
 0x3af   : > { %v1830_v25 = vrot.slane %v2786_v44, %v3474_v3  ;;  %v1865_v42 = vrot.slane %v2787_v35, %v3472_v2  ;;  %v1912_v50 = vrot.slane %v2788_v16, %v3474_v3  ;;  %v1947_v18 = vrot.slane %v2789_v48, %v3472_v2  ;;  %v1417_v59 = vpop.permute.xlu0 %1416  ;;  %v1456_v60 = vpop.permute.xlu1 %1455 }
 0x3b0   : > { %v1951_v51 = vrot.slane %v2789_v48, %v3474_v3  ;;  %v1986_v52 = vrot.slane %v2790_v38, %v3472_v2  ;;  %v1990_v54 = vrot.slane %v2790_v38, %v3474_v3  ;;  %v2025_v55 = vrot.slane %v2791_v53, %v3472_v2 }
 0x3b1   : > { %3151 = vrot.lane.b32.xlu1 %v3150_v5, %s3354_s22  ;;  %3146 = vrot.lane.b32.xlu0 %v3145_v7, %s3355_s29  ;;  %v2029_v56 = vrot.slane %v2791_v53, %v3474_v3  ;;  %v1628_v53 = vld [vmem:[#allocation4 + $0x40] sm:$0xff] }
 0x3b5   : > { %1498 = vrot.lane.b32.xlu1 %v1492_v13, %s3353_s13  ;;  %1537 = vrot.lane.b32.xlu0 %v1531_v14, %s3352_s10 }
 0x3b9   : > { %3166 = vrot.lane.b32.xlu1 %v3165_v23, %s3350_s27  ;;  %3156 = vrot.lane.b32.xlu0 %v3155_v24, %s3353_s13 }
 0x3bd   : > { %1576 = vrot.lane.b32.xlu1 %v1570_v29, %s3350_s27  ;;  %3161 = vrot.lane.b32.xlu0 %v3160_v4, %s3352_s10 }
 0x3c1   : > { %1619 = vrot.lane.b32.xlu1 %v1611_v11, %s3351_s5  ;;  %1617 = vrot.lane.b32.xlu0 %v1610_v33, %s3351_s5 }
 0x3c5   : > { %1615 = vrot.lane.b32.xlu0 %v1609_v39, %s3351_s5  ;;  %1725 = vperm.xlu1 %3170, %v2783_v36  }
 0x3c9   : > { %1731 = vperm.xlu0 %3171, %v2783_v36   ;;  %1753 = vrot.lane.b32.xlu1 %v1748_v40, %s3351_s5 }
 0x3cd   : > { %1755 = vrot.lane.b32.xlu1 %v1752_v41, %s3351_s5  ;;  %1792 = vrot.lane.b32.xlu0 %v1787_v43, %s3350_s27 }
 0x3d1   : > { %1794 = vrot.lane.b32.xlu1 %v1791_v45, %s3350_s27  ;;  %1831 = vrot.lane.b32.xlu0 %v1826_v46, %s3352_s10 }
 0x3d5   : > { %1833 = vrot.lane.b32.xlu1 %v1830_v25, %s3352_s10  ;;  %1870 = vrot.lane.b32.xlu0 %v1865_v42, %s3353_s13 }
 0x3d9   : > { %1872 = vrot.lane.b32.xlu1 %v1869_v34, %s3353_s13  ;;  %1913 = vrot.lane.b32.xlu0 %v1908_v47, %s3354_s22 }
 0x3dd   : > { %1915 = vrot.lane.b32.xlu1 %v1912_v50, %s3354_s22  ;;  %1952 = vrot.lane.b32.xlu0 %v1947_v18, %s3355_s29 }
 0x3e1   : > { %1954 = vrot.lane.b32.xlu1 %v1951_v51, %s3355_s29  ;;  %1991 = vrot.lane.b32.xlu0 %v1986_v52, %s3356_s7 }
 0x3e5   : > { %1993 = vrot.lane.b32.xlu1 %v1990_v54, %s3356_s7  ;;  %2030 = vrot.lane.b32.xlu0 %v2025_v55, %s3357_s8 }
 0x3e9   : > { %2032 = vrot.lane.b32.xlu1 %v2029_v56, %s3357_s8 }
 0x41f   : > { %v3142_v61 = vpop.permute.xlu1 %3141  ;;  %v3137_v62 = vpop.permute.xlu0 %3136 }
 0x420   : > { %v3144_v63 = vunpack.i.h.bf16 %v3142_v61  ;;  %v3143_v0 = vunpack.i.l.bf16 %v3142_v61  ;;  %v3139_v1 = vunpack.i.h.bf16 %v3137_v62  ;;  %v3138_v5 = vunpack.i.l.bf16 %v3137_v62 }
 0x422   : > { %v1383_v7 = vsel %vm296_vm6, %v1378_v57, %v3143_v0  ;;  %v1344_v8 = vsel %vm254_vm7, %v1339_v58, %v3138_v5  ;;  %v1345_v6 = vsel %vm254_vm7, %v3138_v5, %v3139_v1  ;;  %v1384_v9 = vsel %vm296_vm6, %v3143_v0, %v3144_v63 }
 0x423   : > { %v2866_v10 = vpack.c.bf16 %v1383_v7, %v1344_v8  ;;  %v3152_v12 = vpop.permute.xlu1 %3151  ;;  %v3147_v13 = vpop.permute.xlu0 %3146  ;;  %v2864_v14 = vpack.c.bf16 %v1384_v9, %v1345_v6 }
 0x424   : > { %v3154_v15 = vunpack.i.h.bf16 %v3152_v12  ;;  %v3153_v17 = vunpack.i.l.bf16 %v3152_v12  ;;  %v3149_v20 = vunpack.i.h.bf16 %v3147_v13  ;;  %v3148_v23 = vunpack.i.l.bf16 %v3147_v13 }
 0x425   : > { %2865 = vmatprep.subr.bf16.mxu0 %v2864_v14 }
 0x426   : > { %v1461_v24 = vsel %vm380_vm4, %v1456_v60, %v3153_v17  ;;  %v1422_v26 = vsel %vm338_vm5, %v1417_v59, %v3148_v23  ;;  %2867 = vmatpush1.bf16.msra.mxu0 %v2866_v10  ;;  %v1423_v27 = vsel %vm338_vm5, %v3148_v23, %v3149_v20  ;;  %v1462_v28 = vsel %vm380_vm4, %v3153_v17, %v3154_v15 }
 0x427   : > { %v2870_v29 = vpack.c.bf16 %v1461_v24, %v1422_v26  ;;  %v1499_v4 = vpop.permute.xlu1 %1498  ;;  %v1538_v32 = vpop.permute.xlu0 %1537  ;;  %v2868_v11 = vpack.c.bf16 %v1462_v28, %v1423_v27 }
 0x429   : > { %2869 = vmatprep.subr.bf16.mxu0 %v2868_v11 }
 0x42a   : > { %2871 = vmatpush1.bf16.msra.mxu0 %v2870_v29 }
 0x42b   : > { %v3167_v33 = vpop.permute.xlu1 %3166  ;;  %v3157_v36 = vpop.permute.xlu0 %3156 }
 0x42c   : > { %v3159_v37 = vunpack.i.h.bf16 %v3157_v36  ;;  %v3158_v39 = vunpack.i.l.bf16 %v3157_v36  ;;  %v3169_v40 = vunpack.i.h.bf16 %v3167_v33  ;;  %v3168_v31 = vunpack.i.l.bf16 %v3167_v33 }
 0x42e   : > { %v1504_v41 = vsel %vm363_vm3, %v1499_v4, %v3158_v39  ;;  %v1505_v43 = vsel %vm363_vm3, %v3158_v39, %v3159_v37  ;;  %v1583_v48 = vsel %vm279_vm1, %v3168_v31, %v3169_v40 }
 0x42f   : > { %v2874_v44 = vpack.c.bf16 %v1504_v41, %v3868_v49  ;;  %v1577_v45 = vpop.permute.xlu1 %1576  ;;  %v3162_v46 = vpop.permute.xlu0 %3161  ;;  %v2872_v35 = vpack.c.bf16 %v1505_v43, %v3873_v21 }
 0x430   : > { %v3164_v25 = vunpack.i.h.bf16 %v3162_v46  ;;  %v3163_v42 = vunpack.i.l.bf16 %v3162_v46  ;;  %v1582_v16 = vsel %vm279_vm1, %v1577_v45, %v3168_v31 }
 0x431   : > { %2873 = vmatprep.subr.bf16.mxu0 %v2872_v35 }
 0x432   : > { %v1543_v34 = vsel %vm321_vm2, %v1538_v32, %v3163_v42  ;;  %2875 = vmatpush1.bf16.msra.mxu0 %v2874_v44  ;;  %v1544_v47 = vsel %vm321_vm2, %v3163_v42, %v3164_v25 }
 0x433   : > { %v2878_v50 = vpack.c.bf16 %v1582_v16, %v1543_v34  ;;  %v1620_v18 = vpop.permute.xlu1 %1619  ;;  %v1618_v38 = vpop.permute.xlu0 %1617  ;;  %v2876_v49 = vpack.c.bf16 %v1583_v48, %v1544_v47 }
 0x434   : > { %v1622_v21 = vsel %vm237_vm0, %v1618_v38, %v1620_v18 }
 0x435   : > { %2877 = vmatprep.subr.bf16.mxu0 %v2876_v49 }
 0x436   : > { %2879 = vmatpush1.bf16.msra.mxu0 %v2878_v50 }
 0x437   : > { %v1616_v51 = vpop.permute.xlu0 %1615  ;;  %1666 = vmatprep.subr.mxu0 %v1622_v21 }
 0x438   : > { %v1621_v52 = vsel %vm237_vm0, %v1616_v51, %v1618_v38 }
 0x43a   : > { %1667 = vmatpush1.msra.mxu0 %v1621_v52 }
 0x43b   : > { %2782 = vmatmul.mubr.msk.f32.vlgmr.msra.gmra.mrb[4].mxu0 %vm571_vm8, %v1628_v53 }
 0x43c   : > { %2143 = vmatprep.mubr.f32.mxu0 %v3358_v19 }
 0x444   : > { %v1726_v54 = vpop.permute.xlu1 %1725 }
 0x448   : > { %v1754_v55 = vpop.permute.xlu1 %1753  ;;  %v1732_v56 = vpop.permute.xlu0 %1731 }
 0x449   : > { %v1761_v57 = vmul.f32 0.0, %v1754_v55 }
 0x44b   : > { %1767 = vrot.lane.b32.xlu0 %v1761_v57, %s3357_s8 }
 0x44c   : > { %v1793_v58 = vpop.permute.xlu0 %1792  ;;  %v1756_v0 = vpop.permute.xlu1 %1755 }
 0x44d   : > { %v1800_v59 = vmul.f32 0.0, %v1793_v58  ;;  %v1757_v17 = vsel %vm237_vm0, %v1754_v55, %v1756_v0 }
 0x44f   : > { %1806 = vrot.lane.b32.xlu1 %v1800_v59, %s3356_s7 }
 0x450   : > { %v1832_v60 = vpop.permute.xlu0 %1831  ;;  %v1795_v19 = vpop.permute.xlu1 %1794 }
 0x451   : > { %v1839_v61 = vmul.f32 0.0, %v1832_v60  ;;  %v1796_v20 = vsel %vm279_vm1, %v1793_v58, %v1795_v19  ;;  %v2793_v58 = vld [vmem:[%s4252_s2 + $0x30] sm:$0xff] }
 0x453   : > { %1845 = vrot.lane.b32.xlu0 %v1839_v61, %s3355_s29  ;;  %v2795_v61 = vld [vmem:[%s4253_s3 + $0x3] ss:$8 sm:$0x3] }
 0x454   : > { %v1871_v62 = vpop.permute.xlu0 %1870  ;;  %v1834_v1 = vpop.permute.xlu1 %1833 }
 0x455   : > { %v1878_v63 = vmul.f32 0.0, %v1871_v62  ;;  %v1835_v26 = vsel %vm321_vm2, %v1832_v60, %v1834_v1  ;;  %v2794_v60 = vld [vmem:[%s4253_s3 + $0x2] ss:$8 sm:$0x3] }
 0x457   : > { %1884 = vrot.lane.b32.xlu1 %v1878_v63, %s3354_s22  ;;  %v2181_v63 = vrot.slane %v2794_v60, %v3474_v3 }
 0x458   : > { %v1873_v5 = vpop.permute.xlu1 %1872  ;;  %v1914_v10 = vpop.permute.xlu0 %1913 }
 0x459   : > { %v1874_v23 = vsel %vm363_vm3, %v1871_v62, %v1873_v5  ;;  %v2177_v62 = vrot.slane %v2794_v60, %v3472_v2 }
 0x45c   : > { %v1916_v9 = vpop.permute.xlu1 %1915  ;;  %v1953_v4 = vpop.permute.xlu0 %1952 }
 0x45d   : > { %v1917_v46 = vsel %vm380_vm4, %v1914_v10, %v1916_v9  ;;  %v1923_v25 = vmul.f32 0.0, %v1916_v9 }
 0x460   : > { %v1955_v29 = vpop.permute.xlu1 %1954  ;;  %v1992_v43 = vpop.permute.xlu0 %1991 }
 0x461   : > { %v1956_v50 = vsel %vm338_vm5, %v1953_v4, %v1955_v29  ;;  %v1962_v18 = vmul.f32 0.0, %v1955_v29 }
 0x464   : > { %v1994_v41 = vpop.permute.xlu1 %1993  ;;  %v2031_v52 = vpop.permute.xlu0 %2030 }
 0x465   : > { %v1995_v35 = vsel %vm296_vm6, %v1992_v43, %v1994_v41  ;;  %v2001_v42 = vmul.f32 0.0, %v1994_v41 }
 0x468   : > { %v2033_v51 = vpop.permute.xlu1 %2032 }
 0x469   : > { %v2034_v55 = vsel %vm254_vm7, %v2031_v52, %v2033_v51 }
 0x50e   : > { %v1716_v7 = vpop.f32.mrb[4].mxu0 }
 0x50f   : > { %v1728_v8 = vmul.f32 %v1726_v54, %v1716_v7  ;;  %v1718_v6 = vpop.f32.mrb[5].mxu0  ;;  %v2797_v7 = vld [vmem:[%s4253_s3 + $0x5] ss:$8 sm:$0x3] }
 0x510   : > { %v1729_v12 = vmul.f32 %v1726_v54, %v1718_v6  ;;  %v2294_v6 = vrot.slane %v2797_v7, %v3472_v2  ;;  %v2298_v9 = vrot.slane %v2797_v7, %v3474_v3 }
 0x511   : > { %v1734_v13 = vadd.f32 %v1732_v56, %v1728_v8 }
 0x512   : > { %v1735_v14 = vadd.f32 %v1732_v56, %v1729_v12  ;;  %v2040_v56 = vmul.f32 0.0, %v2033_v51  ;;  %v2799_v12 = vld [vmem:[%s4253_s3 + $0x10] ss:$8 sm:$0x3] }
 0x513   : > { %v3992_v15 = vmax.f32 %v1734_v13, 0.0 }
 0x514   : > { %v3997_v24 = vmax.f32 %v1735_v14, 0.0  ;;  %v2376_v14 = vrot.slane %v2799_v12, %v3472_v2 }
 0x515   : > { %v1801_v27 = vmul.f32 %v1796_v20, %v3992_v15  ;;  %v1762_v28 = vmul.f32 %v1757_v17, %v3992_v15  ;;  %v1879_v33 = vmul.f32 %v1874_v23, %v3992_v15  ;;  %v1840_v40 = vmul.f32 %v1835_v26, %v3992_v15  ;;  %v2800_v17 = vld [vmem:[%s4253_s3 + $0x11] ss:$8 sm:$0x3]  ;;  %v2801_v26 = vld [vmem:[%s4253_s3 + $0x12] ss:$8 sm:$0x3] }
 0x516   : > { %v1802_v32 = vmul.f32 %v1795_v19, %v3997_v24  ;;  %v1763_v11 = vmul.f32 %v1756_v0, %v3997_v24  ;;  %v1880_v36 = vmul.f32 %v1873_v5, %v3997_v24  ;;  %v1841_v31 = vmul.f32 %v1834_v1, %v3997_v24  ;;  %v2796_v19 = vld [vmem:[%s4253_s3 + $0x4] ss:$8 sm:$0x3] }
 0x517   : > { %v2000_v16 = vmul.f32 %v1995_v35, %v3997_v24  ;;  %v1921_v34 = vmul.f32 %v1914_v10, %v3992_v15  ;;  %v1960_v47 = vmul.f32 %v1953_v4, %v3992_v15  ;;  %v1922_v48 = vmul.f32 %v1917_v46, %v3997_v24  ;;  %v1807_v4 = vpop.permute.xlu1 %1806 }
 0x518   : > { %v3177_v37 = vpack.i.bf16 %v1802_v32, %v1801_v27  ;;  %v3172_v39 = vpack.i.bf16 %v1763_v11, %v1762_v28  ;;  %v3187_v44 = vpack.i.bf16 %v1880_v36, %v1879_v33  ;;  %v3182_v45 = vpack.i.bf16 %v1841_v31, %v1840_v40  ;;  %v1768_v32 = vpop.permute.xlu0 %1767 }
 0x519   : > { %v3202_v38 = vpack.i.bf16 %v2001_v42, %v2000_v16  ;;  %v3192_v49 = vpack.i.bf16 %v1923_v25, %v1922_v48  ;;  %v1961_v21 = vmul.f32 %v1956_v50, %v3997_v24  ;;  %v1999_v53 = vmul.f32 %v1992_v43, %v3992_v15 }
 0x51a   : > { %3178 = vrot.lane.b32.xlu1 %v3177_v37, %s3356_s7  ;;  %3173 = vrot.lane.b32.xlu0 %v3172_v39, %s3357_s8  ;;  %v2039_v57 = vmul.f32 %v2034_v55, %v3997_v24  ;;  %v2038_v59 = vmul.f32 %v2031_v52, %v3992_v15  ;;  %v2216_v0 = vrot.slane %v2795_v61, %v3472_v2 }
 0x51b   : > { %v3197_v54 = vpack.i.bf16 %v1962_v18, %v1961_v21  ;;  %v2220_v1 = vrot.slane %v2795_v61, %v3474_v3  ;;  %v2255_v5 = vrot.slane %v2796_v19, %v3472_v2  ;;  %v2259_v8 = vrot.slane %v2796_v19, %v3474_v3  ;;  %v1885_v33 = vpop.permute.xlu1 %1884 }
 0x51c   : > { %v2380_v20 = vrot.slane %v2799_v12, %v3474_v3  ;;  %v2415_v23 = vrot.slane %v2800_v17, %v3472_v2  ;;  %v2419_v27 = vrot.slane %v2800_v17, %v3474_v3  ;;  %v2454_v28 = vrot.slane %v2801_v26, %v3472_v2  ;;  %v1846_v11 = vpop.permute.xlu0 %1845 }
 0x51d   : > { %v2458_v29 = vrot.slane %v2801_v26, %v3474_v3 }
 0x51e   : > { %3188 = vrot.lane.b32.xlu1 %v3187_v44, %s3354_s22  ;;  %3183 = vrot.lane.b32.xlu0 %v3182_v45, %s3355_s29 }
 0x522   : > { %1927 = vrot.lane.b32.xlu1 %v1921_v34, %s3353_s13  ;;  %1966 = vrot.lane.b32.xlu0 %v1960_v47, %s3352_s10 }
 0x526   : > { %3203 = vrot.lane.b32.xlu1 %v3202_v38, %s3350_s27  ;;  %3193 = vrot.lane.b32.xlu0 %v3192_v49, %s3353_s13 }
 0x52a   : > { %2005 = vrot.lane.b32.xlu1 %v1999_v53, %s3350_s27  ;;  %3198 = vrot.lane.b32.xlu0 %v3197_v54, %s3352_s10 }
 0x52e   : > { %2048 = vrot.lane.b32.xlu1 %v2040_v56, %s3351_s5  ;;  %2046 = vrot.lane.b32.xlu0 %v2039_v57, %s3351_s5 }
 0x532   : > { %2154 = vperm.xlu1 %3170, %v2793_v58   ;;  %2044 = vrot.lane.b32.xlu0 %v2038_v59, %s3351_s5 }
 0x536   : > { %2160 = vperm.xlu0 %3171, %v2793_v58   ;;  %3243 = vset.pattern.permute.xlu1 %v3360_v30 }
 0x537   : > { %2182 = vrot.lane.b32.xlu1 %v2177_v62, %s3351_s5 }
 0x53a   : > { %2184 = vrot.lane.b32.xlu0 %v2181_v63, %s3351_s5 }
 0x53b   : > { %3242 = vset.pattern.permute.xlu0 %v3359_v22  ;;  %2221 = vrot.lane.b32.xlu1 %v2216_v0, %s3350_s27  ;;  %v2798_v22 = vld [vmem:[%s4253_s3 + $0x7] ss:$8 sm:$0x3] }
 0x53c   : > { %v2337_v10 = vrot.slane %v2798_v22, %v3472_v2  ;;  %v2341_v13 = vrot.slane %v2798_v22, %v3474_v3 }
 0x53e   : > { %2223 = vrot.lane.b32.xlu0 %v2220_v1, %s3350_s27 }
 0x53f   : > { %2260 = vrot.lane.b32.xlu1 %v2255_v5, %s3352_s10 }
 0x542   : > { %2262 = vrot.lane.b32.xlu0 %v2259_v8, %s3352_s10 }
 0x543   : > { %2299 = vrot.lane.b32.xlu1 %v2294_v6, %s3353_s13 }
 0x546   : > { %2301 = vrot.lane.b32.xlu0 %v2298_v9, %s3353_s13 }
 0x547   : > { %2342 = vrot.lane.b32.xlu1 %v2337_v10, %s3354_s22 }
 0x54a   : > { %2344 = vrot.lane.b32.xlu0 %v2341_v13, %s3354_s22 }
 0x54b   : > { %2381 = vrot.lane.b32.xlu1 %v2376_v14, %s3355_s29 }
 0x54e   : > { %2383 = vrot.lane.b32.xlu0 %v2380_v20, %s3355_s29  ;;  %v2057_v20 = vld [vmem:[#allocation4 + $0x60] sm:$0xff] }
 0x54f   : > { %2420 = vrot.lane.b32.xlu1 %v2415_v23, %s3356_s7 }
 0x552   : > { %2422 = vrot.lane.b32.xlu0 %v2419_v27, %s3356_s7 }
 0x553   : > { %2459 = vrot.lane.b32.xlu1 %v2454_v28, %s3357_s8 }
 0x556   : > { %2461 = vrot.lane.b32.xlu0 %v2458_v29, %s3357_s8 }
 0x58c   : > { %v3179_v36 = vpop.permute.xlu1 %3178  ;;  %v3174_v37 = vpop.permute.xlu0 %3173 }
 0x58d   : > { %v3181_v39 = vunpack.i.h.bf16 %v3179_v36  ;;  %v3180_v40 = vunpack.i.l.bf16 %v3179_v36  ;;  %v3176_v31 = vunpack.i.h.bf16 %v3174_v37  ;;  %v3175_v41 = vunpack.i.l.bf16 %v3174_v37 }
 0x58f   : > { %v1812_v43 = vsel %vm296_vm6, %v1807_v4, %v3180_v40  ;;  %v1773_v44 = vsel %vm254_vm7, %v1768_v32, %v3175_v41  ;;  %v1774_v45 = vsel %vm254_vm7, %v3175_v41, %v3176_v31  ;;  %v1813_v46 = vsel %vm296_vm6, %v3180_v40, %v3181_v39 }
 0x590   : > { %v2882_v35 = vpack.c.bf16 %v1812_v43, %v1773_v44  ;;  %v3189_v25 = vpop.permute.xlu1 %3188  ;;  %v3184_v42 = vpop.permute.xlu0 %3183  ;;  %v2880_v16 = vpack.c.bf16 %v1813_v46, %v1774_v45 }
 0x591   : > { %v3191_v34 = vunpack.i.h.bf16 %v3189_v25  ;;  %v3190_v47 = vunpack.i.l.bf16 %v3189_v25  ;;  %v3186_v48 = vunpack.i.h.bf16 %v3184_v42  ;;  %v3185_v50 = vunpack.i.l.bf16 %v3184_v42 }
 0x592   : > { %2881 = vmatprep.subr.bf16.mxu0 %v2880_v16 }
 0x593   : > { %v1890_v18 = vsel %vm380_vm4, %v1885_v33, %v3190_v47  ;;  %v1851_v38 = vsel %vm338_vm5, %v1846_v11, %v3185_v50  ;;  %2883 = vmatpush1.bf16.msra.mxu0 %v2882_v35  ;;  %v1852_v49 = vsel %vm338_vm5, %v3185_v50, %v3186_v48  ;;  %v1891_v21 = vsel %vm380_vm4, %v3190_v47, %v3191_v34 }
 0x594   : > { %v2886_v51 = vpack.c.bf16 %v1890_v18, %v1851_v38  ;;  %v1928_v52 = vpop.permute.xlu1 %1927  ;;  %v1967_v53 = vpop.permute.xlu0 %1966  ;;  %v2884_v54 = vpack.c.bf16 %v1891_v21, %v1852_v49 }
 0x596   : > { %2885 = vmatprep.subr.bf16.mxu0 %v2884_v54 }
 0x597   : > { %2887 = vmatpush1.bf16.msra.mxu0 %v2886_v51 }
 0x598   : > { %v3204_v55 = vpop.permute.xlu1 %3203  ;;  %v3194_v56 = vpop.permute.xlu0 %3193 }
 0x599   : > { %v3196_v57 = vunpack.i.h.bf16 %v3194_v56  ;;  %v3195_v58 = vunpack.i.l.bf16 %v3194_v56  ;;  %v3206_v59 = vunpack.i.h.bf16 %v3204_v55  ;;  %v3205_v60 = vunpack.i.l.bf16 %v3204_v55 }
 0x59b   : > { %v1933_v61 = vsel %vm363_vm3, %v1928_v52, %v3195_v58  ;;  %v1934_v62 = vsel %vm363_vm3, %v3195_v58, %v3196_v57  ;;  %v2012_v9 = vsel %vm279_vm1, %v3205_v60, %v3206_v59 }
 0x59c   : > { %v2890_v63 = vpack.c.bf16 %v1933_v61, %v3992_v15  ;;  %v2006_v0 = vpop.permute.xlu1 %2005  ;;  %v3199_v19 = vpop.permute.xlu0 %3198  ;;  %v2888_v1 = vpack.c.bf16 %v1934_v62, %v3997_v24 }
 0x59d   : > { %v3201_v5 = vunpack.i.h.bf16 %v3199_v19  ;;  %v3200_v7 = vunpack.i.l.bf16 %v3199_v19  ;;  %v2011_v8 = vsel %vm279_vm1, %v2006_v0, %v3205_v60 }
 0x59e   : > { %2889 = vmatprep.subr.bf16.mxu0 %v2888_v1 }
 0x59f   : > { %v1972_v6 = vsel %vm321_vm2, %v1967_v53, %v3200_v7  ;;  %2891 = vmatpush1.bf16.msra.mxu0 %v2890_v63  ;;  %v1973_v22 = vsel %vm321_vm2, %v3200_v7, %v3201_v5 }
 0x5a0   : > { %v2894_v10 = vpack.c.bf16 %v2011_v8, %v1972_v6  ;;  %v2049_v12 = vpop.permute.xlu1 %2048  ;;  %v2047_v13 = vpop.permute.xlu0 %2046  ;;  %v2892_v15 = vpack.c.bf16 %v2012_v9, %v1973_v22 }
 0x5a1   : > { %v2051_v24 = vsel %vm237_vm0, %v2047_v13, %v2049_v12 }
 0x5a2   : > { %2893 = vmatprep.subr.bf16.mxu0 %v2892_v15 }
 0x5a3   : > { %2895 = vmatpush1.bf16.msra.mxu0 %v2894_v10 }
 0x5a4   : > { %v2045_v14 = vpop.permute.xlu0 %2044  ;;  %2095 = vmatprep.subr.mxu0 %v2051_v24 }
 0x5a5   : > { %v2050_v17 = vsel %vm237_vm0, %v2045_v14, %v2047_v13 }
 0x5a7   : > { %2096 = vmatpush1.msra.mxu0 %v2050_v17 }
 0x5a8   : > { %2792 = vmatmul.mubr.msk.f32.vlgmr.msra.gmra.mrb[6].mxu0 %vm571_vm8, %v2057_v20 }
 0x5b1   : > { %v2155_v23 = vpop.permute.xlu1 %2154 }
 0x5b5   : > { %v2183_v26 = vpop.permute.xlu1 %2182  ;;  %v2161_v36 = vpop.permute.xlu0 %2160 }
 0x5b6   : > { %v2190_v27 = vmul.f32 0.0, %v2183_v26 }
 0x5b8   : > { %2196 = vrot.lane.b32.xlu1 %v2190_v27, %s3357_s8 }
 0x5b9   : > { %v2222_v28 = vpop.permute.xlu1 %2221  ;;  %v2185_v37 = vpop.permute.xlu0 %2184 }
 0x5ba   : > { %v2229_v29 = vmul.f32 0.0, %v2222_v28  ;;  %v2186_v34 = vsel %vm237_vm0, %v2183_v26, %v2185_v37 }
 0x5bc   : > { %2235 = vrot.lane.b32.xlu0 %v2229_v29, %s3356_s7 }
 0x5bd   : > { %v2261_v4 = vpop.permute.xlu1 %2260  ;;  %v2224_v39 = vpop.permute.xlu0 %2223 }
 0x5be   : > { %v2268_v32 = vmul.f32 0.0, %v2261_v4  ;;  %v2225_v47 = vsel %vm279_vm1, %v2222_v28, %v2224_v39  ;;  %v2803_v28 = vld [vmem:[%s4252_s2 + $0x40] sm:$0xff] }
 0x5c0   : > { %2274 = vrot.lane.b32.xlu1 %v2268_v32, %s3355_s29 }
 0x5c1   : > { %v2300_v11 = vpop.permute.xlu1 %2299  ;;  %v2263_v40 = vpop.permute.xlu0 %2262 }
 0x5c2   : > { %v2307_v33 = vmul.f32 0.0, %v2300_v11  ;;  %v2264_v18 = vsel %vm321_vm2, %v2261_v4, %v2263_v40 }
 0x5c4   : > { %2313 = vrot.lane.b32.xlu0 %v2307_v33, %s3354_s22 }
 0x5c5   : > { %v2302_v31 = vpop.permute.xlu0 %2301  ;;  %v2343_v45 = vpop.permute.xlu1 %2342 }
 0x5c6   : > { %v2303_v48 = vsel %vm363_vm3, %v2300_v11, %v2302_v31 }
 0x5c9   : > { %v2345_v46 = vpop.permute.xlu0 %2344  ;;  %v2382_v21 = vpop.permute.xlu1 %2381 }
 0x5ca   : > { %v2346_v0 = vsel %vm380_vm4, %v2343_v45, %v2345_v46  ;;  %v2352_v1 = vmul.f32 0.0, %v2345_v46 }
 0x5cd   : > { %v2384_v51 = vpop.permute.xlu0 %2383  ;;  %v2421_v60 = vpop.permute.xlu1 %2420 }
 0x5ce   : > { %v2385_v9 = vsel %vm338_vm5, %v2382_v21, %v2384_v51  ;;  %v2391_v10 = vmul.f32 0.0, %v2384_v51 }
 0x5d1   : > { %v2423_v61 = vpop.permute.xlu0 %2422  ;;  %v2460_v24 = vpop.permute.xlu1 %2459 }
 0x5d2   : > { %v2424_v19 = vsel %vm296_vm6, %v2421_v60, %v2423_v61  ;;  %v2430_v5 = vmul.f32 0.0, %v2423_v61 }
 0x5d5   : > { %v2462_v14 = vpop.permute.xlu0 %2461 }
 0x5d6   : > { %v2469_v26 = vmul.f32 0.0, %v2462_v14 }
 0x62a   : > { %v2197_v32 = vpop.permute.xlu1 %2196 }
 0x62e   : > { %v2236_v4 = vpop.permute.xlu0 %2235 }
 0x632   : > { %v2275_v11 = vpop.permute.xlu1 %2274 }
 0x636   : > { %v2314_v33 = vpop.permute.xlu0 %2313 }
 0x67b   : > { %v2145_v41 = vpop.f32.mrb[6].mxu0 }
 0x67c   : > { %v2157_v43 = vmul.f32 %v2155_v23, %v2145_v41  ;;  %v2147_v44 = vpop.f32.mrb[7].mxu0 }
 0x67d   : > { %v2158_v35 = vmul.f32 %v2155_v23, %v2147_v44  ;;  %v2463_v23 = vsel %vm254_vm7, %v2460_v24, %v2462_v14 }
 0x67e   : > { %v2163_v25 = vadd.f32 %v2161_v36, %v2157_v43 }
 0x67f   : > { %v2164_v42 = vadd.f32 %v2161_v36, %v2158_v35 }
 0x680   : > { %v4117_v16 = vmax.f32 %v2163_v25, 0.0 }
 0x681   : > { %v4122_v50 = vmax.f32 %v2164_v42, 0.0 }
 0x682   : > { %v2230_v38 = vmul.f32 %v2225_v47, %v4117_v16  ;;  %v2191_v49 = vmul.f32 %v2186_v34, %v4117_v16  ;;  %v2308_v54 = vmul.f32 %v2303_v48, %v4117_v16  ;;  %v2269_v58 = vmul.f32 %v2264_v18, %v4117_v16 }
 0x683   : > { %v2231_v52 = vmul.f32 %v2224_v39, %v4122_v50  ;;  %v2192_v53 = vmul.f32 %v2185_v37, %v4122_v50  ;;  %v2309_v55 = vmul.f32 %v2302_v31, %v4122_v50  ;;  %v2270_v59 = vmul.f32 %v2263_v40, %v4122_v50 }
 0x684   : > { %v2429_v7 = vmul.f32 %v2424_v19, %v4122_v50  ;;  %v2350_v8 = vmul.f32 %v2343_v45, %v4117_v16  ;;  %v2389_v6 = vmul.f32 %v2382_v21, %v4117_v16  ;;  %v2351_v22 = vmul.f32 %v2346_v0, %v4122_v50 }
 0x685   : > { %v3212_v56 = vpack.i.bf16 %v2231_v52, %v2230_v38  ;;  %v3207_v57 = vpack.i.bf16 %v2192_v53, %v2191_v49  ;;  %v3222_v62 = vpack.i.bf16 %v2309_v55, %v2308_v54  ;;  %v3217_v63 = vpack.i.bf16 %v2270_v59, %v2269_v58 }
 0x686   : > { %v3237_v12 = vpack.i.bf16 %v2430_v5, %v2429_v7  ;;  %v3227_v13 = vpack.i.bf16 %v2352_v1, %v2351_v22  ;;  %v2390_v15 = vmul.f32 %v2385_v9, %v4122_v50  ;;  %v2428_v17 = vmul.f32 %v2421_v60, %v4117_v16 }
 0x687   : > { %3213 = vrot.lane.b32.xlu0 %v3212_v56, %s3356_s7  ;;  %3208 = vrot.lane.b32.xlu1 %v3207_v57, %s3357_s8  ;;  %v2468_v27 = vmul.f32 %v2463_v23, %v4122_v50  ;;  %v2467_v29 = vmul.f32 %v2460_v24, %v4117_v16  ;;  %s203_s7 = sand.u32 1, %s3337_s16  }
 0x688   : > { %v3232_v20 = vpack.i.bf16 %v2391_v10, %v2390_v15  ;;  %s2751_s8 = sshll.u32 %s203_s7, 4  ;;  %s4209_s19 = scalar_lea.sflag [#allocation6], %s203_s7 }
 0x689   : > { %s205_s6 = scalar_lea.vmem [#allocation7], %s2751_s8 }
 0x68a   : > { %s2671_s9 = sshll.u32 %s205_s6, 4  ;;  %s4206_s9 = int_to_ptr.vmem [resolvable:$true] %s2671_s9 }
 0x68b   : > { %3223 = vrot.lane.b32.xlu0 %v3222_v62, %s3354_s22  ;;  %3218 = vrot.lane.b32.xlu1 %v3217_v63, %s3355_s29  ;;  %s3279_s20 = scalar_lea.vmem %s4206_s9, 256  ;;  %s3285_s22 = scalar_lea.vmem %s3284_s28, 512 }
 0x68c   : > { %p3280_p6 = scmp.ne.s32.totalorder %s4206_s9, %s3279_s20  ;;  %p3286_p2 = scmp.lt.s32.totalorder %s4206_s9, %s3284_s28 }
 0x68d   : > { %p3287_p3 = scmp.lt.s32.totalorder %s3285_s22, %s3279_s20 }
 0x68e   : > { %p3281_p10 = pnand %p3280_p6, %p4265_p9 }
 0x68f   : > { %2356 = vrot.lane.b32.xlu0 %v2350_v8, %s3353_s13  ;;  %2395 = vrot.lane.b32.xlu1 %v2389_v6, %s3352_s10  ;;  %p3288_p4 = por %p3287_p3, %p3286_p2 }
 0x690   : > { %p3282_p12 = pneg %p3281_p10 }
 0x692   : > { %p3289_p7 = pnand %p3288_p4, %p3282_p12 }
 0x693   : > { %3238 = vrot.lane.b32.xlu0 %v3237_v12, %s3350_s27  ;;  %3228 = vrot.lane.b32.xlu1 %v3227_v13, %s3353_s13 }
 0x697   : > { %2434 = vrot.lane.b32.xlu0 %v2428_v17, %s3350_s27  ;;  %3233 = vrot.lane.b32.xlu1 %v3232_v20, %s3352_s10  ;;  %v2486_v17 = vld [vmem:[#allocation4 + $0x80] sm:$0xff] }
 0x69b   : > { %2477 = vrot.lane.b32.xlu0 %v2469_v26, %s3351_s5  ;;  %2475 = vrot.lane.b32.xlu1 %v2468_v27, %s3351_s5 }
 0x69f   : > { %2473 = vrot.lane.b32.xlu1 %v2467_v29, %s3351_s5  ;;  %2583 = vperm.xlu0 %3242, %v2803_v28  }
 0x6a3   : > { %2589 = vperm.xlu1 %3243, %v2803_v28   ;;  %3244 = vset.pattern.permute.xlu0 %v3360_v30 }
 0x6f9   : > { %v3214_v36 = vpop.permute.xlu0 %3213  ;;  %v3209_v37 = vpop.permute.xlu1 %3208 }
 0x6fa   : > { %v3216_v39 = vunpack.i.h.bf16 %v3214_v36  ;;  %v3215_v40 = vunpack.i.l.bf16 %v3214_v36  ;;  %v3211_v31 = vunpack.i.h.bf16 %v3209_v37  ;;  %v3210_v41 = vunpack.i.l.bf16 %v3209_v37 }
 0x6fc   : > { %v2241_v43 = vsel %vm296_vm6, %v2236_v4, %v3215_v40  ;;  %v2202_v44 = vsel %vm254_vm7, %v2197_v32, %v3210_v41  ;;  %v2203_v45 = vsel %vm254_vm7, %v3210_v41, %v3211_v31  ;;  %v2242_v46 = vsel %vm296_vm6, %v3215_v40, %v3216_v39 }
 0x6fd   : > { %v2898_v35 = vpack.c.bf16 %v2241_v43, %v2202_v44  ;;  %v3224_v30 = vpop.permute.xlu0 %3223  ;;  %v3219_v25 = vpop.permute.xlu1 %3218  ;;  %v2896_v42 = vpack.c.bf16 %v2242_v46, %v2203_v45  ;;  %v2804_v43 = vld [vmem:[%s4253_s3 + $0x1] ss:$8 sm:$0x3]  ;;  %v2594_v44 = vld [vmem:[%s4253_s3] ss:$8 sm:$0x3] }
 0x6fe   : > { %v3226_v34 = vunpack.i.h.bf16 %v3224_v30  ;;  %v3225_v47 = vunpack.i.l.bf16 %v3224_v30  ;;  %v3221_v48 = vunpack.i.h.bf16 %v3219_v25  ;;  %v3220_v18 = vunpack.i.l.bf16 %v3219_v25 }
 0x6ff   : > { %2897 = vmatprep.subr.bf16.mxu1 %v2896_v42  ;;  %v2639_v45 = vrot.slane %v2804_v43, %v3472_v2  ;;  %v2620_v46 = vrot.slane %v2594_v44, %v3472_v2  ;;  %v2624_v30 = vrot.slane %v2594_v44, %v3474_v3 }
 0x700   : > { %v2319_v38 = vsel %vm380_vm4, %v2314_v33, %v3225_v47  ;;  %v2280_v49 = vsel %vm338_vm5, %v2275_v11, %v3220_v18  ;;  %2899 = vmatpush1.bf16.msra.mxu1 %v2898_v35  ;;  %v2281_v21 = vsel %vm338_vm5, %v3220_v18, %v3221_v48  ;;  %v2320_v51 = vsel %vm380_vm4, %v3225_v47, %v3226_v34 }
 0x701   : > { %v2902_v52 = vpack.c.bf16 %v2319_v38, %v2280_v49  ;;  %v2357_v53 = vpop.permute.xlu0 %2356  ;;  %v2396_v54 = vpop.permute.xlu1 %2395  ;;  %v2900_v55 = vpack.c.bf16 %v2320_v51, %v2281_v21  ;;  %v2643_v35 = vrot.slane %v2804_v43, %v3474_v3 }
 0x703   : > { %2901 = vmatprep.subr.bf16.mxu1 %v2900_v55 }
 0x704   : > { %2903 = vmatpush1.bf16.msra.mxu1 %v2902_v52 }
 0x705   : > { %v3239_v56 = vpop.permute.xlu0 %3238  ;;  %v3229_v57 = vpop.permute.xlu1 %3228 }
 0x706   : > { %v3231_v58 = vunpack.i.h.bf16 %v3229_v57  ;;  %v3230_v59 = vunpack.i.l.bf16 %v3229_v57  ;;  %v3241_v60 = vunpack.i.h.bf16 %v3239_v56  ;;  %v3240_v61 = vunpack.i.l.bf16 %v3239_v56 }
 0x708   : > { %v2362_v62 = vsel %vm363_vm3, %v2357_v53, %v3230_v59  ;;  %v2363_v63 = vsel %vm363_vm3, %v3230_v59, %v3231_v58  ;;  %v2441_v10 = vsel %vm279_vm1, %v3240_v61, %v3241_v60 }
 0x709   : > { %v2906_v0 = vpack.c.bf16 %v2362_v62, %v4117_v16  ;;  %v2435_v19 = vpop.permute.xlu0 %2434  ;;  %v3234_v1 = vpop.permute.xlu1 %3233  ;;  %v2904_v5 = vpack.c.bf16 %v2363_v63, %v4122_v50 }
 0x70a   : > { %v3236_v7 = vunpack.i.h.bf16 %v3234_v1  ;;  %v3235_v8 = vunpack.i.l.bf16 %v3234_v1  ;;  %v2440_v6 = vsel %vm279_vm1, %v2435_v19, %v3240_v61 }
 0x70b   : > { %2905 = vmatprep.subr.bf16.mxu1 %v2904_v5 }
 0x70c   : > { %v2401_v22 = vsel %vm321_vm2, %v2396_v54, %v3235_v8  ;;  %2907 = vmatpush1.bf16.msra.mxu1 %v2906_v0  ;;  %v2402_v9 = vsel %vm321_vm2, %v3235_v8, %v3236_v7 }
 0x70d   : > { %v2910_v12 = vpack.c.bf16 %v2440_v6, %v2401_v22  ;;  %v2478_v13 = vpop.permute.xlu0 %2477  ;;  %v2476_v15 = vpop.permute.xlu1 %2475  ;;  %v2908_v16 = vpack.c.bf16 %v2441_v10, %v2402_v9 }
 0x70e   : > { %v2480_v50 = vsel %vm237_vm0, %v2476_v15, %v2478_v13 }
 0x70f   : > { %2909 = vmatprep.subr.bf16.mxu1 %v2908_v16 }
 0x710   : > { %2911 = vmatpush1.bf16.msra.mxu1 %v2910_v12 }
 0x711   : > { %v2474_v24 = vpop.permute.xlu1 %2473  ;;  %2524 = vmatprep.subr.mxu1 %v2480_v50 }
 0x712   : > { %v2479_v14 = vsel %vm237_vm0, %v2474_v24, %v2476_v15 }
 0x714   : > { %2525 = vmatpush1.msra.mxu1 %v2479_v14 }
 0x715   : > { %2802 = vmatmul.mubr.msk.f32.vlgmr.msra.gmra.mrb[2].mxu1 %vm571_vm8, %v2486_v17 }
 0x71e   : > { %v2584_v20 = vpop.permute.xlu0 %2583 }
 0x722   : > { %v2590_v26 = vpop.permute.xlu1 %2589 }
 0x7e8   : > { %v2574_v23 = vpop.f32.mrb[2].mxu1 }
 0x7e9   : > { %v2586_v27 = vmul.f32 %v2584_v20, %v2574_v23  ;;  %v2576_v28 = vpop.f32.mrb[3].mxu1 }
 0x7ea   : > { %v2587_v29 = vmul.f32 %v2584_v20, %v2576_v28 }
 0x7eb   : > { %v2592_v4 = vadd.f32 %v2590_v26, %v2586_v27 }
 0x7ec   : > { %v2593_v32 = vadd.f32 %v2590_v26, %v2587_v29 }
 0x7ed   : > { %v2598_v11 = vsel %vm2597_vm9, %v2592_v4, -inf }
 0x7ee   : > { %v2599_v33 = vsel %vm2597_vm9, %v2593_v32, -inf }
 0x7ef   : > { %v2600_v36 = vmax.f32 %v2598_v11, %v2599_v33 }
 0x7f1   : > { %2601 = vmax.xlane.f32.xlu1 %v2600_v36 }
 0x87e   : > { %v2602_v37 = vpop.xlane.xlu1 %2601 }
 0x87f   : > { %v2603_v39 = vsub.f32 %v2592_v4, %v2602_v37  ;;  %v2604_v40 = vsub.f32 %v2593_v32, %v2602_v37 }
 0x881   : > { %v2605_v31 = vmul.f32 1.442695, %v2603_v39  ;;  %v2607_v41 = vmul.f32 1.442695, %v2604_v40 }
 0x883   : > { %3245 = vpow2.f32 %v2605_v31 }
 0x884   : > { %3247 = vpow2.f32 %v2607_v41 }
 0x88d   : > { %v3246_v25 = vpop.eup %3245 }
 0x88e   : > { %v3248_v42 = vpop.eup %3247  ;;  %v2609_v34 = vsel %vm2597_vm9, %v3246_v25, 0.0  ;;  %v2646_v47 = vmul.f32 %v3246_v25, %v2639_v45  ;;  %v2627_v48 = vmul.f32 %v3246_v25, %v2620_v46 }
 0x88f   : > { %v2610_v18 = vsel %vm2597_vm9, %v3248_v42, 0.0  ;;  %v2647_v38 = vmul.f32 %v3248_v42, %v2643_v35  ;;  %v2628_v49 = vmul.f32 %v3248_v42, %v2624_v30 }
 0x890   : > { %v2611_v21 = vadd.f32 %v2610_v18, %v2609_v34  ;;  %v2648_v51 = vsel %vm2597_vm9, %v2646_v47, 0.0  ;;  %v2629_v52 = vsel %vm2597_vm9, %v2627_v48, 0.0 }
 0x891   : > { %v2649_v2 = vsel %vm2597_vm9, %v2647_v38, 0.0  ;;  %v2630_v3 = vsel %vm2597_vm9, %v2628_v49, 0.0 }
 0x892   : > { %2612 = vadd.xlane.f32.xlu0 %v2611_v21  ;;  %v2650_v53 = vadd.f32 %v2649_v2, %v2648_v51  ;;  %v2631_v54 = vadd.f32 %v2630_v3, %v2629_v52 }
 0x894   : > { %2651 = vadd.xlane.f32.xlu1 %v2650_v53 }
 0x896   : > { %2632 = vadd.xlane.f32.xlu0 %v2631_v54 }
 0x91f   : > { %v2613_v55 = vpop.xlane.xlu0 %2612 }
 0x920   : > { %3249 = vrcp.f32 %v2613_v55 }
 0x921   : > { %v2652_v57 = vpop.xlane.xlu1 %2651 }
 0x923   : > { %v2633_v58 = vpop.xlane.xlu0 %2632 }
 0x92a   : > { %v3250_v56 = vpop.eup %3249 }
 0x92b   : > { %v2653_v59 = vmul.f32 %v3250_v56, %v2652_v57  ;;  %v2634_v60 = vmul.f32 %v3250_v56, %v2633_v58 }
 0x92d   : > { %v2654_v61 = vsel %vm380_vm4, %v2634_v60, %v2653_v59 }
 0x92e   : > { %2656 = vst.msk [vmem:[%s205_s6] sm:$0x3] %vm2655_vm10, %v2654_v61 }
 0x92f   : > { %3292 = shalt.err (!%p3289_p7)
}
 0x930   : > { %s3293_s29 = scalar_lea.hbm %s4204_s14, 256  ;;  %s3297_s10 = scalar_lea.hbm %s4254_s4, 512 }
 0x931   : > { %p3294_p8 = scmp.ne.s32.totalorder %s4204_s14, %s3293_s29  ;;  %p3298_p1 = scmp.lt.u32.totalorder %s4204_s14, %s4254_s4 }
 0x932   : > { %p3299_p0 = scmp.lt.u32.totalorder %s3297_s10, %s3293_s29  ;;  %p3301_p6 = scmp.lt.u32.totalorder %s3293_s29, %s4204_s14 }
 0x933   : > { %p3295_p11 = pnand %p3294_p8, %p4265_p9 }
 0x934   : > { %p3300_p5 = por %p3299_p0, %p3298_p1 }
 0x935   : > { %p3296_p13 = pneg %p3295_p11 }
 0x936   : > { %p3302_p10 = por %p3301_p6, %p3300_p5 }
 0x938   : > { %p3303_p12 = pnand %p3302_p10, %p3296_p13 }
 0x93a   : > { %3306 = shalt.err (!%p3303_p12)
}
 0x93b   : > { %s3362_s8 = smov 128   ;;  %s3363_s30 = smov 8  }
 0x93c   : > { %2916 = dma.vmem_to_hbm [thread:$0]  (%p4265_p9), %s4206_s9, 256, %s4204_s14, %s4209_s19, %s3362_s8, %s3362_s8, %s3363_s30  }
 0x93d PF: > { %p2928_p2 = scmp.ge.s32.totalorder %s3345_s18, 2  ;;  %s2686_s6 = sand.u32 1, %s3333_s15  }
 0x93e   : > { %p4266_p3 = scmp.ne.s32.totalorder %s4259_s26, 0  ;;  %s2687_s11 = scalar_lea.sflag [#allocation6], %s2686_s6 }
 0x940   : > { %p2923_p4 = pnand %p2928_p2, %p4266_p3 }
 0x942   : > { %3328 = dma.done.wait (!%p2923_p4), %s2687_s11, 256  }
 0x943   : > { %3330 = vsyncadd (!%p2923_p4), %s2687_s11, 4294967040  ;;  %p15_p7 = scmp.ge.s32.totalorder %s3414_s21, 4   ;;  %s4267_s15 = smov %s3337_s16 }
 0x944   : > { %s4268_s16 = smov %s3341_s17  ;;  %s4269_s17 = smov %s3425_s24 }
 0x945   : > { %s4270_s18 = smov %s3414_s21  ;;  %17 = sbr.rel (!%p15_p7) target bundleno = 4 (0x4), region = 93 }
 0x94c   :  { %2692 = vsyncpa [#allocation5], 1 }
 0x94d   :  { %2694 = vsyncpa [#allocation5 + $0x1], 1 }
 0x94e   :  { %2695 = vsyncpa [#allocation6], 1 }
 0x94f   :  { %2697 = vsyncpa [#allocation6 + $0x1], 1 }

</bundles_post_ra>
